<compile_context>
chip_gen: v5e
topology: v5e:2x2
jax: 0.10.0
libtpu: 0.0.40
codegen_flags: <defaults>
</compile_context>

<pallas_src>
import math

import numpy as np
import jax
import jax.numpy as jnp
from jax.experimental import pallas as pl
from jax.experimental.pallas import tpu as pltpu


_CONV_CHANNELS = [(1, 16), (16, 32), (32, 64), (64, 128)]
_SEQ_LEN = 100
_DS_SIZE = 7                                   # 100 -> 50 -> 25 -> 13 -> 7
_FC_DIMS = [(128 * _DS_SIZE, 448), (448, 224), (224, 100)]


def _conv_out_len(l):
    # Conv1d(kernel=3, stride=2, padding=1)
    return (l + 2 * 1 - 3) // 2 + 1


def _conv_lengths():
    ls = [_SEQ_LEN]
    for _ in range(4):
        ls.append(_conv_out_len(ls[-1]))
    return ls                                  # [100, 50, 25, 13, 7]


def _make_selections(batch):
    """Block-diagonal (batch-interleaved) 0/1 gather matrices, bf16.

    For each conv layer: sel[k][t*B + b, l*B + b'] = 1 iff b == b' and
    l == 2*t + k - 1 (indices outside [0, L) select nothing == zero padding).
    Built once at trace time; 0/1 is exact in bf16.
    """
    sels = []
    eye_b = np.eye(batch, dtype=np.float32)
    ls = _conv_lengths()
    for L, Lout in zip(ls[:-1], ls[1:]):
        t = np.arange(Lout)[:, None]
        l = np.arange(L)[None, :]
        taps = [np.kron((l == (2 * t + k - 1)).astype(np.float32), eye_b)
                for k in range(3)]
        sels.append(jnp.asarray(np.stack(taps, 0), dtype=jnp.bfloat16))
    return sels


def _leaky(v):
    return jnp.maximum(v, 0.2 * v)


# ----------------------------------------------------------------------------
# Fused kernel: 4 strided convs + 3 FC layers, everything resident in VMEM.
# ----------------------------------------------------------------------------
def _decoder_kernel(x_ref,
                    s0_ref, s1_ref, s2_ref, s3_ref,
                    w0_ref, ws1_ref, ws2_ref, ws3_ref,
                    b0_ref, b1_ref, b2_ref, b3_ref,
                    fc0w_ref, fc0b_ref, fc1w_ref, fc1b_ref, fc2w_ref, fc2b_ref,
                    o_ref,
                    flat_ref):
    f32 = jnp.float32
    bf16 = jnp.bfloat16

    # ---- layer 0 (Cin = 1): VPU broadcast-mul weight, then 3 gather matmuls ----
    x = x_ref[...]                                        # (L0*B, 1) f32
    lout0 = s0_ref.shape[1]
    cout0 = w0_ref.shape[2]
    acc = jnp.zeros((lout0, cout0), f32)
    for k in range(3):
        xk = (x * w0_ref[k]).astype(bf16)                 # (L0*B, 16) bf16
        acc = acc + jnp.dot(s0_ref[k], xk, preferred_element_type=f32)
    h = _leaky(acc + b0_ref[...])                         # (L1*B, 16) f32

    # ---- layers 1..3: stacked tap weights (1 weight matmul + 3 gathers) ----
    for s_ref, ws_ref, b_ref in ((s1_ref, ws1_ref, b1_ref),
                                 (s2_ref, ws2_ref, b2_ref),
                                 (s3_ref, ws3_ref, b3_ref)):
        cout = ws_ref.shape[1] // 3
        lout = s_ref.shape[1]
        hw = jnp.dot(h.astype(bf16), ws_ref[...],
                     preferred_element_type=f32)          # (L*B, 3*Cout)
        hwb = hw.astype(bf16)
        acc = jnp.zeros((lout, cout), f32)
        for k in range(3):
            acc = acc + jnp.dot(s_ref[k], hwb[:, k * cout:(k + 1) * cout],
                                preferred_element_type=f32)
        h = _leaky(acc + b_ref[...])                      # (Lout*B, Cout) f32

    # ---- flatten (7*B, 128) -> (B, 896) via lane-aligned stores to scratch ----
    # Rows of h are batch-interleaved (t*B + b), so tap t for all batch
    # elements is a contiguous 2-row slice written at lane offset t*128.
    B = flat_ref.shape[0]
    c = h.shape[1]                                        # 128
    nt = h.shape[0] // B                                  # 7
    for t in range(nt):
        flat_ref[:, t * c:(t + 1) * c] = h[t * B:(t + 1) * B, :]

    # ---- dense head: 3 clean matmuls, bf16 operands, f32 accum ----
    flat = flat_ref[...].astype(bf16)                     # (B, 896)
    h = _leaky(jnp.dot(flat, fc0w_ref[...], preferred_element_type=f32)
               + fc0b_ref[...])
    h = _leaky(jnp.dot(h.astype(bf16), fc1w_ref[...], preferred_element_type=f32)
               + fc1b_ref[...])
    out = jnp.tanh(jnp.dot(h.astype(bf16), fc2w_ref[...],
                           preferred_element_type=f32) + fc2b_ref[...])
    o_ref[...] = out.astype(o_ref.dtype)


# ----------------------------------------------------------------------------
# Public forward
# ----------------------------------------------------------------------------
def decoder_forward(params, x_ncl):
    """x_ncl: (B, 1, 100) f32, PyTorch NCL layout. Returns (B, 100) f32 in (-1, 1)."""
    B, C, L = x_ncl.shape
    assert C == 1 and L == _SEQ_LEN, (C, L)

    # Batch-interleaved channels-last layout: row index = l*B + b, width Cin=1.
    x = jnp.transpose(x_ncl[:, 0, :]).reshape(L * B, 1)

    sels = _make_selections(B)

    args = [x]
    args += sels
    args += [params["conv0_w"],
             params["conv1_wstack"], params["conv2_wstack"], params["conv3_wstack"]]
    args += [params[f"conv{i}_b"] for i in range(4)]
    args += [params["fc0_w"], params["fc0_b"],
             params["fc1_w"], params["fc1_b"],
             params["fc2_w"], params["fc2_b"]]

    # Advisory cost estimate (this op is tiny / latency bound).
    ls = _conv_lengths()
    chans = [c for _, c in _CONV_CHANNELS]
    flops = 3 * 2 * (ls[1] * B) * (ls[0] * B) * chans[0]
    for i in range(1, 4):
        cin, cout = chans[i - 1], chans[i]
        flops += 2 * (ls[i] * B) * cin * (3 * cout)               # stacked weight matmul
        flops += 3 * 2 * (ls[i + 1] * B) * (ls[i] * B) * cout     # gather matmuls
    for din, dout in _FC_DIMS:
        flops += 2 * B * din * dout
    bytes_accessed = sum(int(a.size) * a.dtype.itemsize for a in args) + B * 100 * 4

    return pl.pallas_call(
        _decoder_kernel,
        out_shape=jax.ShapeDtypeStruct((B, 100), jnp.float32),
        in_specs=[pl.BlockSpec(memory_space=pltpu.MemorySpace.VMEM)
                  for _ in args],
        out_specs=pl.BlockSpec(memory_space=pltpu.MemorySpace.VMEM),
        scratch_shapes=[pltpu.VMEM((B, 128 * _DS_SIZE), jnp.float32)],
        cost_estimate=pl.CostEstimate(flops=int(flops),
                                      transcendentals=int(B * 100),
                                      bytes_accessed=int(bytes_accessed)),
    )(*args)


# ----------------------------------------------------------------------------
# Parameter init (deterministic, PyTorch-default-style uniform), kernel layout.
# ----------------------------------------------------------------------------
def init_params(key):
    """Weights in kernel-native layout.

    To load trained torch weights instead (one-time host-side conversion):
      conv0_w        = torch_conv0_w.transpose(2, 1, 0)                 # (3, 1, 16) f32
      conv{i}_wstack = torch_conv_w.transpose(2, 1, 0)                  # (3, Cin, Cout)
                         .transpose(1, 0, 2).reshape(Cin, 3*Cout).astype(bf16)
      conv{i}_b      = torch_conv_b[None, :]                            # f32
      fc0_w          = torch_fc0_w.T.reshape(128, 7, 448)               # channel-major ->
                         .transpose(1, 0, 2).reshape(896, 448).astype(bf16)   # L-major
      fc{1,2}_w      = torch_fc_w.T.astype(bf16) ; fc{i}_b = torch_fc_b[None, :]
    """
    def uni(k, shape, fan_in):
        bound = 1.0 / math.sqrt(fan_in)
        return jax.random.uniform(k, shape, jnp.float32, -bound, bound)

    params = {}
    keys = jax.random.split(key, 2 * len(_CONV_CHANNELS) + 2 * len(_FC_DIMS))
    ki = 0

    # conv0: Cin == 1, weight applied on the VPU -> keep f32, (3, 1, 16)
    cin, cout = _CONV_CHANNELS[0]
    params["conv0_w"] = uni(keys[ki], (3, cin, cout), cin * 3); ki += 1
    params["conv0_b"] = uni(keys[ki], (1, cout), cin * 3); ki += 1

    # conv1..3: stacked tap weights (Cin, 3*Cout) bf16, column k*Cout + co
    for i, (cin, cout) in enumerate(_CONV_CHANNELS[1:], start=1):
        w = uni(keys[ki], (3, cin, cout), cin * 3); ki += 1
        params[f"conv{i}_wstack"] = (
            jnp.transpose(w, (1, 0, 2)).reshape(cin, 3 * cout).astype(jnp.bfloat16))
        params[f"conv{i}_b"] = uni(keys[ki], (1, cout), cin * 3); ki += 1

    # fc0: (7, 128, 448) L-major layout collapsed to (896, 448)
    din, dout = _FC_DIMS[0]
    w = uni(keys[ki], (_DS_SIZE, 128, dout), din); ki += 1
    params["fc0_w"] = w.reshape(din, dout).astype(jnp.bfloat16)
    params["fc0_b"] = uni(keys[ki], (1, dout), din); ki += 1
    for i, (din, dout) in enumerate(_FC_DIMS[1:], start=1):
        params[f"fc{i}_w"] = uni(keys[ki], (din, dout), din).astype(jnp.bfloat16); ki += 1
        params[f"fc{i}_b"] = uni(keys[ki], (1, dout), din); ki += 1
    return params


if __name__ == "__main__":
    key = jax.random.PRNGKey(0)
    kx, kp = jax.random.split(key)

    # batch=2; length must be 100 so that 4 stride-2 convs yield ds_size=7
    x = jax.random.normal(kx, (2, 1, _SEQ_LEN), dtype=jnp.float32)
    params = init_params(kp)

    y = jax.jit(decoder_forward)(params, x)
    y = jax.block_until_ready(y)

    assert y.shape == (2, 100), y.shape
    assert bool(jnp.all(jnp.isfinite(y)))
    assert bool(jnp.all(jnp.abs(y) <= 1.0))   # tanh output range
    print("KERNEL_OK")
</pallas_src>

<mosaic_0001>
module attributes {stable_mosaic.version = 11 : i64} {
  func.func @_decoder_kernel(%arg0: memref<200x1xf32, #tpu.memory_space<vmem>>, %arg1: memref<3x100x200xbf16, #tpu.memory_space<vmem>>, %arg2: memref<3x50x100xbf16, #tpu.memory_space<vmem>>, %arg3: memref<3x26x50xbf16, #tpu.memory_space<vmem>>, %arg4: memref<3x14x26xbf16, #tpu.memory_space<vmem>>, %arg5: memref<3x1x16xf32, #tpu.memory_space<vmem>>, %arg6: memref<16x96xbf16, #tpu.memory_space<vmem>>, %arg7: memref<32x192xbf16, #tpu.memory_space<vmem>>, %arg8: memref<64x384xbf16, #tpu.memory_space<vmem>>, %arg9: memref<1x16xf32, #tpu.memory_space<vmem>>, %arg10: memref<1x32xf32, #tpu.memory_space<vmem>>, %arg11: memref<1x64xf32, #tpu.memory_space<vmem>>, %arg12: memref<1x128xf32, #tpu.memory_space<vmem>>, %arg13: memref<896x448xbf16, #tpu.memory_space<vmem>>, %arg14: memref<1x448xf32, #tpu.memory_space<vmem>>, %arg15: memref<448x224xbf16, #tpu.memory_space<vmem>>, %arg16: memref<1x224xf32, #tpu.memory_space<vmem>>, %arg17: memref<224x100xbf16, #tpu.memory_space<vmem>>, %arg18: memref<1x100xf32, #tpu.memory_space<vmem>>, %arg19: memref<2x100xf32, #tpu.memory_space<vmem>>, %arg20: memref<2x896xf32, #tpu.memory_space<vmem>>) attributes {dimension_semantics = [], scalar_prefetch = 0 : i64, scratch_operands = 1 : i64, tpu.core_type = #tpu.core_type<tc>} {
    %c0 = arith.constant 0 : index
    %c0_0 = arith.constant 0 : index
    %0 = vector.load %arg0[%c0, %c0_0] : memref<200x1xf32, #tpu.memory_space<vmem>>, vector<200x1xf32>
    %cst = arith.constant 0.000000e+00 : f32
    %1 = vector.broadcast %cst : f32 to vector<100x16xf32>
    %c0_1 = arith.constant 0 : index
    %c0_2 = arith.constant 0 : index
    %c0_3 = arith.constant 0 : index
    %2 = vector.load %arg5[%c0_1, %c0_2, %c0_3] : memref<3x1x16xf32, #tpu.memory_space<vmem>>, vector<1x1x16xf32>
    %3 = vector.shape_cast %2 : vector<1x1x16xf32> to vector<1x16xf32>
    %4 = vector.broadcast %0 : vector<200x1xf32> to vector<200x16xf32>
    %5 = vector.broadcast %3 : vector<1x16xf32> to vector<200x16xf32>
    %6 = arith.mulf %4, %5 : vector<200x16xf32>
    %7 = arith.truncf %6 : vector<200x16xf32> to vector<200x16xbf16>
    %c0_4 = arith.constant 0 : index
    %c0_5 = arith.constant 0 : index
    %c0_6 = arith.constant 0 : index
    %8 = vector.load %arg1[%c0_4, %c0_5, %c0_6] : memref<3x100x200xbf16, #tpu.memory_space<vmem>>, vector<1x100x200xbf16>
    %9 = vector.shape_cast %8 : vector<1x100x200xbf16> to vector<100x200xbf16>
    %cst_7 = arith.constant dense<0.000000e+00> : vector<100x16xf32>
    %10 = tpu.matmul %9, %7, %cst_7 {dimension_numbers = #tpu.dot_dimension_numbers<[1], [0], [0], [1], [0, 0, 1, 1], [], []>} : vector<100x200xbf16>, vector<200x16xbf16>, vector<100x16xf32> -> vector<100x16xf32>
    %11 = arith.addf %1, %10 : vector<100x16xf32>
    %c1 = arith.constant 1 : index
    %c0_8 = arith.constant 0 : index
    %c0_9 = arith.constant 0 : index
    %12 = vector.load %arg5[%c1, %c0_8, %c0_9] : memref<3x1x16xf32, #tpu.memory_space<vmem>>, vector<1x1x16xf32>
    %13 = vector.shape_cast %12 : vector<1x1x16xf32> to vector<1x16xf32>
    %14 = vector.broadcast %0 : vector<200x1xf32> to vector<200x16xf32>
    %15 = vector.broadcast %13 : vector<1x16xf32> to vector<200x16xf32>
    %16 = arith.mulf %14, %15 : vector<200x16xf32>
    %17 = arith.truncf %16 : vector<200x16xf32> to vector<200x16xbf16>
    %c1_10 = arith.constant 1 : index
    %c0_11 = arith.constant 0 : index
    %c0_12 = arith.constant 0 : index
    %18 = vector.load %arg1[%c1_10, %c0_11, %c0_12] : memref<3x100x200xbf16, #tpu.memory_space<vmem>>, vector<1x100x200xbf16>
    %19 = vector.shape_cast %18 : vector<1x100x200xbf16> to vector<100x200xbf16>
    %cst_13 = arith.constant dense<0.000000e+00> : vector<100x16xf32>
    %20 = tpu.matmul %19, %17, %cst_13 {dimension_numbers = #tpu.dot_dimension_numbers<[1], [0], [0], [1], [0, 0, 1, 1], [], []>} : vector<100x200xbf16>, vector<200x16xbf16>, vector<100x16xf32> -> vector<100x16xf32>
    %21 = arith.addf %11, %20 : vector<100x16xf32>
    %c2 = arith.constant 2 : index
    %c0_14 = arith.constant 0 : index
    %c0_15 = arith.constant 0 : index
    %22 = vector.load %arg5[%c2, %c0_14, %c0_15] : memref<3x1x16xf32, #tpu.memory_space<vmem>>, vector<1x1x16xf32>
    %23 = vector.shape_cast %22 : vector<1x1x16xf32> to vector<1x16xf32>
    %24 = vector.broadcast %0 : vector<200x1xf32> to vector<200x16xf32>
    %25 = vector.broadcast %23 : vector<1x16xf32> to vector<200x16xf32>
    %26 = arith.mulf %24, %25 : vector<200x16xf32>
    %27 = arith.truncf %26 : vector<200x16xf32> to vector<200x16xbf16>
    %c2_16 = arith.constant 2 : index
    %c0_17 = arith.constant 0 : index
    %c0_18 = arith.constant 0 : index
    %28 = vector.load %arg1[%c2_16, %c0_17, %c0_18] : memref<3x100x200xbf16, #tpu.memory_space<vmem>>, vector<1x100x200xbf16>
    %29 = vector.shape_cast %28 : vector<1x100x200xbf16> to vector<100x200xbf16>
    %cst_19 = arith.constant dense<0.000000e+00> : vector<100x16xf32>
    %30 = tpu.matmul %29, %27, %cst_19 {dimension_numbers = #tpu.dot_dimension_numbers<[1], [0], [0], [1], [0, 0, 1, 1], [], []>} : vector<100x200xbf16>, vector<200x16xbf16>, vector<100x16xf32> -> vector<100x16xf32>
    %31 = arith.addf %21, %30 : vector<100x16xf32>
    %c0_20 = arith.constant 0 : index
    %c0_21 = arith.constant 0 : index
    %32 = vector.load %arg9[%c0_20, %c0_21] : memref<1x16xf32, #tpu.memory_space<vmem>>, vector<1x16xf32>
    %33 = vector.broadcast %32 : vector<1x16xf32> to vector<100x16xf32>
    %34 = arith.addf %31, %33 : vector<100x16xf32>
    %cst_22 = arith.constant 2.000000e-01 : f32
    %35 = vector.broadcast %cst_22 : f32 to vector<100x16xf32>
    %36 = arith.mulf %35, %34 : vector<100x16xf32>
    %37 = arith.maximumf %34, %36 : vector<100x16xf32>
    %38 = arith.truncf %37 : vector<100x16xf32> to vector<100x16xbf16>
    %c0_23 = arith.constant 0 : index
    %c0_24 = arith.constant 0 : index
    %39 = vector.load %arg6[%c0_23, %c0_24] : memref<16x96xbf16, #tpu.memory_space<vmem>>, vector<16x96xbf16>
    %cst_25 = arith.constant dense<0.000000e+00> : vector<100x96xf32>
    %40 = tpu.matmul %38, %39, %cst_25 {dimension_numbers = #tpu.dot_dimension_numbers<[1], [0], [0], [1], [0, 0, 1, 1], [], []>} : vector<100x16xbf16>, vector<16x96xbf16>, vector<100x96xf32> -> vector<100x96xf32>
    %41 = arith.truncf %40 : vector<100x96xf32> to vector<100x96xbf16>
    %cst_26 = arith.constant 0.000000e+00 : f32
    %42 = vector.broadcast %cst_26 : f32 to vector<50x32xf32>
    %c0_27 = arith.constant 0 : index
    %c0_28 = arith.constant 0 : index
    %c0_29 = arith.constant 0 : index
    %43 = vector.load %arg2[%c0_27, %c0_28, %c0_29] : memref<3x50x100xbf16, #tpu.memory_space<vmem>>, vector<1x50x100xbf16>
    %44 = vector.shape_cast %43 : vector<1x50x100xbf16> to vector<50x100xbf16>
    %45 = vector.extract_strided_slice %41 {offsets = [0, 0], sizes = [100, 32], strides = [1, 1]} : vector<100x96xbf16> to vector<100x32xbf16>
    %cst_30 = arith.constant dense<0.000000e+00> : vector<50x32xf32>
    %46 = tpu.matmul %44, %45, %cst_30 {dimension_numbers = #tpu.dot_dimension_numbers<[1], [0], [0], [1], [0, 0, 1, 1], [], []>} : vector<50x100xbf16>, vector<100x32xbf16>, vector<50x32xf32> -> vector<50x32xf32>
    %47 = arith.addf %42, %46 : vector<50x32xf32>
    %c1_31 = arith.constant 1 : index
    %c0_32 = arith.constant 0 : index
    %c0_33 = arith.constant 0 : index
    %48 = vector.load %arg2[%c1_31, %c0_32, %c0_33] : memref<3x50x100xbf16, #tpu.memory_space<vmem>>, vector<1x50x100xbf16>
    %49 = vector.shape_cast %48 : vector<1x50x100xbf16> to vector<50x100xbf16>
    %50 = vector.extract_strided_slice %41 {offsets = [0, 32], sizes = [100, 32], strides = [1, 1]} : vector<100x96xbf16> to vector<100x32xbf16>
    %cst_34 = arith.constant dense<0.000000e+00> : vector<50x32xf32>
    %51 = tpu.matmul %49, %50, %cst_34 {dimension_numbers = #tpu.dot_dimension_numbers<[1], [0], [0], [1], [0, 0, 1, 1], [], []>} : vector<50x100xbf16>, vector<100x32xbf16>, vector<50x32xf32> -> vector<50x32xf32>
    %52 = arith.addf %47, %51 : vector<50x32xf32>
    %c2_35 = arith.constant 2 : index
    %c0_36 = arith.constant 0 : index
    %c0_37 = arith.constant 0 : index
    %53 = vector.load %arg2[%c2_35, %c0_36, %c0_37] : memref<3x50x100xbf16, #tpu.memory_space<vmem>>, vector<1x50x100xbf16>
    %54 = vector.shape_cast %53 : vector<1x50x100xbf16> to vector<50x100xbf16>
    %55 = vector.extract_strided_slice %41 {offsets = [0, 64], sizes = [100, 32], strides = [1, 1]} : vector<100x96xbf16> to vector<100x32xbf16>
    %cst_38 = arith.constant dense<0.000000e+00> : vector<50x32xf32>
    %56 = tpu.matmul %54, %55, %cst_38 {dimension_numbers = #tpu.dot_dimension_numbers<[1], [0], [0], [1], [0, 0, 1, 1], [], []>} : vector<50x100xbf16>, vector<100x32xbf16>, vector<50x32xf32> -> vector<50x32xf32>
    %57 = arith.addf %52, %56 : vector<50x32xf32>
    %c0_39 = arith.constant 0 : index
    %c0_40 = arith.constant 0 : index
    %58 = vector.load %arg10[%c0_39, %c0_40] : memref<1x32xf32, #tpu.memory_space<vmem>>, vector<1x32xf32>
    %59 = vector.broadcast %58 : vector<1x32xf32> to vector<50x32xf32>
    %60 = arith.addf %57, %59 : vector<50x32xf32>
    %cst_41 = arith.constant 2.000000e-01 : f32
    %61 = vector.broadcast %cst_41 : f32 to vector<50x32xf32>
    %62 = arith.mulf %61, %60 : vector<50x32xf32>
    %63 = arith.maximumf %60, %62 : vector<50x32xf32>
    %64 = arith.truncf %63 : vector<50x32xf32> to vector<50x32xbf16>
    %c0_42 = arith.constant 0 : index
    %c0_43 = arith.constant 0 : index
    %65 = vector.load %arg7[%c0_42, %c0_43] : memref<32x192xbf16, #tpu.memory_space<vmem>>, vector<32x192xbf16>
    %cst_44 = arith.constant dense<0.000000e+00> : vector<50x192xf32>
    %66 = tpu.matmul %64, %65, %cst_44 {dimension_numbers = #tpu.dot_dimension_numbers<[1], [0], [0], [1], [0, 0, 1, 1], [], []>} : vector<50x32xbf16>, vector<32x192xbf16>, vector<50x192xf32> -> vector<50x192xf32>
    %67 = arith.truncf %66 : vector<50x192xf32> to vector<50x192xbf16>
    %cst_45 = arith.constant 0.000000e+00 : f32
    %68 = vector.broadcast %cst_45 : f32 to vector<26x64xf32>
    %c0_46 = arith.constant 0 : index
    %c0_47 = arith.constant 0 : index
    %c0_48 = arith.constant 0 : index
    %69 = vector.load %arg3[%c0_46, %c0_47, %c0_48] : memref<3x26x50xbf16, #tpu.memory_space<vmem>>, vector<1x26x50xbf16>
    %70 = vector.shape_cast %69 : vector<1x26x50xbf16> to vector<26x50xbf16>
    %71 = vector.extract_strided_slice %67 {offsets = [0, 0], sizes = [50, 64], strides = [1, 1]} : vector<50x192xbf16> to vector<50x64xbf16>
    %cst_49 = arith.constant dense<0.000000e+00> : vector<26x64xf32>
    %72 = tpu.matmul %70, %71, %cst_49 {dimension_numbers = #tpu.dot_dimension_numbers<[1], [0], [0], [1], [0, 0, 1, 1], [], []>} : vector<26x50xbf16>, vector<50x64xbf16>, vector<26x64xf32> -> vector<26x64xf32>
    %73 = arith.addf %68, %72 : vector<26x64xf32>
    %c1_50 = arith.constant 1 : index
    %c0_51 = arith.constant 0 : index
    %c0_52 = arith.constant 0 : index
    %74 = vector.load %arg3[%c1_50, %c0_51, %c0_52] : memref<3x26x50xbf16, #tpu.memory_space<vmem>>, vector<1x26x50xbf16>
    %75 = vector.shape_cast %74 : vector<1x26x50xbf16> to vector<26x50xbf16>
    %76 = vector.extract_strided_slice %67 {offsets = [0, 64], sizes = [50, 64], strides = [1, 1]} : vector<50x192xbf16> to vector<50x64xbf16>
    %cst_53 = arith.constant dense<0.000000e+00> : vector<26x64xf32>
    %77 = tpu.matmul %75, %76, %cst_53 {dimension_numbers = #tpu.dot_dimension_numbers<[1], [0], [0], [1], [0, 0, 1, 1], [], []>} : vector<26x50xbf16>, vector<50x64xbf16>, vector<26x64xf32> -> vector<26x64xf32>
    %78 = arith.addf %73, %77 : vector<26x64xf32>
    %c2_54 = arith.constant 2 : index
    %c0_55 = arith.constant 0 : index
    %c0_56 = arith.constant 0 : index
    %79 = vector.load %arg3[%c2_54, %c0_55, %c0_56] : memref<3x26x50xbf16, #tpu.memory_space<vmem>>, vector<1x26x50xbf16>
    %80 = vector.shape_cast %79 : vector<1x26x50xbf16> to vector<26x50xbf16>
    %81 = vector.extract_strided_slice %67 {offsets = [0, 128], sizes = [50, 64], strides = [1, 1]} : vector<50x192xbf16> to vector<50x64xbf16>
    %cst_57 = arith.constant dense<0.000000e+00> : vector<26x64xf32>
    %82 = tpu.matmul %80, %81, %cst_57 {dimension_numbers = #tpu.dot_dimension_numbers<[1], [0], [0], [1], [0, 0, 1, 1], [], []>} : vector<26x50xbf16>, vector<50x64xbf16>, vector<26x64xf32> -> vector<26x64xf32>
    %83 = arith.addf %78, %82 : vector<26x64xf32>
    %c0_58 = arith.constant 0 : index
    %c0_59 = arith.constant 0 : index
    %84 = vector.load %arg11[%c0_58, %c0_59] : memref<1x64xf32, #tpu.memory_space<vmem>>, vector<1x64xf32>
    %85 = vector.broadcast %84 : vector<1x64xf32> to vector<26x64xf32>
    %86 = arith.addf %83, %85 : vector<26x64xf32>
    %cst_60 = arith.constant 2.000000e-01 : f32
    %87 = vector.broadcast %cst_60 : f32 to vector<26x64xf32>
    %88 = arith.mulf %87, %86 : vector<26x64xf32>
    %89 = arith.maximumf %86, %88 : vector<26x64xf32>
    %90 = arith.truncf %89 : vector<26x64xf32> to vector<26x64xbf16>
    %c0_61 = arith.constant 0 : index
    %c0_62 = arith.constant 0 : index
    %91 = vector.load %arg8[%c0_61, %c0_62] : memref<64x384xbf16, #tpu.memory_space<vmem>>, vector<64x384xbf16>
    %cst_63 = arith.constant dense<0.000000e+00> : vector<26x384xf32>
    %92 = tpu.matmul %90, %91, %cst_63 {dimension_numbers = #tpu.dot_dimension_numbers<[1], [0], [0], [1], [0, 0, 1, 1], [], []>} : vector<26x64xbf16>, vector<64x384xbf16>, vector<26x384xf32> -> vector<26x384xf32>
    %93 = arith.truncf %92 : vector<26x384xf32> to vector<26x384xbf16>
    %cst_64 = arith.constant 0.000000e+00 : f32
    %94 = vector.broadcast %cst_64 : f32 to vector<14x128xf32>
    %c0_65 = arith.constant 0 : index
    %c0_66 = arith.constant 0 : index
    %c0_67 = arith.constant 0 : index
    %95 = vector.load %arg4[%c0_65, %c0_66, %c0_67] : memref<3x14x26xbf16, #tpu.memory_space<vmem>>, vector<1x14x26xbf16>
    %96 = vector.shape_cast %95 : vector<1x14x26xbf16> to vector<14x26xbf16>
    %97 = vector.extract_strided_slice %93 {offsets = [0, 0], sizes = [26, 128], strides = [1, 1]} : vector<26x384xbf16> to vector<26x128xbf16>
    %cst_68 = arith.constant dense<0.000000e+00> : vector<14x128xf32>
    %98 = tpu.matmul %96, %97, %cst_68 {dimension_numbers = #tpu.dot_dimension_numbers<[1], [0], [0], [1], [0, 0, 1, 1], [], []>} : vector<14x26xbf16>, vector<26x128xbf16>, vector<14x128xf32> -> vector<14x128xf32>
    %99 = arith.addf %94, %98 : vector<14x128xf32>
    %c1_69 = arith.constant 1 : index
    %c0_70 = arith.constant 0 : index
    %c0_71 = arith.constant 0 : index
    %100 = vector.load %arg4[%c1_69, %c0_70, %c0_71] : memref<3x14x26xbf16, #tpu.memory_space<vmem>>, vector<1x14x26xbf16>
    %101 = vector.shape_cast %100 : vector<1x14x26xbf16> to vector<14x26xbf16>
    %102 = vector.extract_strided_slice %93 {offsets = [0, 128], sizes = [26, 128], strides = [1, 1]} : vector<26x384xbf16> to vector<26x128xbf16>
    %cst_72 = arith.constant dense<0.000000e+00> : vector<14x128xf32>
    %103 = tpu.matmul %101, %102, %cst_72 {dimension_numbers = #tpu.dot_dimension_numbers<[1], [0], [0], [1], [0, 0, 1, 1], [], []>} : vector<14x26xbf16>, vector<26x128xbf16>, vector<14x128xf32> -> vector<14x128xf32>
    %104 = arith.addf %99, %103 : vector<14x128xf32>
    %c2_73 = arith.constant 2 : index
    %c0_74 = arith.constant 0 : index
    %c0_75 = arith.constant 0 : index
    %105 = vector.load %arg4[%c2_73, %c0_74, %c0_75] : memref<3x14x26xbf16, #tpu.memory_space<vmem>>, vector<1x14x26xbf16>
    %106 = vector.shape_cast %105 : vector<1x14x26xbf16> to vector<14x26xbf16>
    %107 = vector.extract_strided_slice %93 {offsets = [0, 256], sizes = [26, 128], strides = [1, 1]} : vector<26x384xbf16> to vector<26x128xbf16>
    %cst_76 = arith.constant dense<0.000000e+00> : vector<14x128xf32>
    %108 = tpu.matmul %106, %107, %cst_76 {dimension_numbers = #tpu.dot_dimension_numbers<[1], [0], [0], [1], [0, 0, 1, 1], [], []>} : vector<14x26xbf16>, vector<26x128xbf16>, vector<14x128xf32> -> vector<14x128xf32>
    %109 = arith.addf %104, %108 : vector<14x128xf32>
    %c0_77 = arith.constant 0 : index
    %c0_78 = arith.constant 0 : index
    %110 = vector.load %arg12[%c0_77, %c0_78] : memref<1x128xf32, #tpu.memory_space<vmem>>, vector<1x128xf32>
    %111 = vector.broadcast %110 : vector<1x128xf32> to vector<14x128xf32>
    %112 = arith.addf %109, %111 : vector<14x128xf32>
    %cst_79 = arith.constant 2.000000e-01 : f32
    %113 = vector.broadcast %cst_79 : f32 to vector<14x128xf32>
    %114 = arith.mulf %113, %112 : vector<14x128xf32>
    %115 = arith.maximumf %112, %114 : vector<14x128xf32>
    %116 = vector.extract_strided_slice %115 {offsets = [0, 0], sizes = [2, 128], strides = [1, 1]} : vector<14x128xf32> to vector<2x128xf32>
    %c0_80 = arith.constant 0 : index
    %c0_81 = arith.constant 0 : index
    %117 = vector.load %arg20[%c0_80, %c0_81] : memref<2x896xf32, #tpu.memory_space<vmem>>, vector<2x128xf32>
    tpu.vector_store %arg20[%c0_80, %c0_81], %116 {strides = array<i32>} : memref<2x896xf32, #tpu.memory_space<vmem>>, vector<2x128xf32>,
    %118 = vector.extract_strided_slice %115 {offsets = [2, 0], sizes = [2, 128], strides = [1, 1]} : vector<14x128xf32> to vector<2x128xf32>
    %c0_82 = arith.constant 0 : index
    %c128 = arith.constant 128 : index
    %119 = vector.load %arg20[%c0_82, %c128] : memref<2x896xf32, #tpu.memory_space<vmem>>, vector<2x128xf32>
    tpu.vector_store %arg20[%c0_82, %c128], %118 {strides = array<i32>} : memref<2x896xf32, #tpu.memory_space<vmem>>, vector<2x128xf32>,
    %120 = vector.extract_strided_slice %115 {offsets = [4, 0], sizes = [2, 128], strides = [1, 1]} : vector<14x128xf32> to vector<2x128xf32>
    %c0_83 = arith.constant 0 : index
    %c256 = arith.constant 256 : index
    %121 = vector.load %arg20[%c0_83, %c256] : memref<2x896xf32, #tpu.memory_space<vmem>>, vector<2x128xf32>
    tpu.vector_store %arg20[%c0_83, %c256], %120 {strides = array<i32>} : memref<2x896xf32, #tpu.memory_space<vmem>>, vector<2x128xf32>,
    %122 = vector.extract_strided_slice %115 {offsets = [6, 0], sizes = [2, 128], strides = [1, 1]} : vector<14x128xf32> to vector<2x128xf32>
    %c0_84 = arith.constant 0 : index
    %c384 = arith.constant 384 : index
    %123 = vector.load %arg20[%c0_84, %c384] : memref<2x896xf32, #tpu.memory_space<vmem>>, vector<2x128xf32>
    tpu.vector_store %arg20[%c0_84, %c384], %122 {strides = array<i32>} : memref<2x896xf32, #tpu.memory_space<vmem>>, vector<2x128xf32>,
    %124 = vector.extract_strided_slice %115 {offsets = [8, 0], sizes = [2, 128], strides = [1, 1]} : vector<14x128xf32> to vector<2x128xf32>
    %c0_85 = arith.constant 0 : index
    %c512 = arith.constant 512 : index
    %125 = vector.load %arg20[%c0_85, %c512] : memref<2x896xf32, #tpu.memory_space<vmem>>, vector<2x128xf32>
    tpu.vector_store %arg20[%c0_85, %c512], %124 {strides = array<i32>} : memref<2x896xf32, #tpu.memory_space<vmem>>, vector<2x128xf32>,
    %126 = vector.extract_strided_slice %115 {offsets = [10, 0], sizes = [2, 128], strides = [1, 1]} : vector<14x128xf32> to vector<2x128xf32>
    %c0_86 = arith.constant 0 : index
    %c640 = arith.constant 640 : index
    %127 = vector.load %arg20[%c0_86, %c640] : memref<2x896xf32, #tpu.memory_space<vmem>>, vector<2x128xf32>
    tpu.vector_store %arg20[%c0_86, %c640], %126 {strides = array<i32>} : memref<2x896xf32, #tpu.memory_space<vmem>>, vector<2x128xf32>,
    %128 = vector.extract_strided_slice %115 {offsets = [12, 0], sizes = [2, 128], strides = [1, 1]} : vector<14x128xf32> to vector<2x128xf32>
    %c0_87 = arith.constant 0 : index
    %c768 = arith.constant 768 : index
    %129 = vector.load %arg20[%c0_87, %c768] : memref<2x896xf32, #tpu.memory_space<vmem>>, vector<2x128xf32>
    tpu.vector_store %arg20[%c0_87, %c768], %128 {strides = array<i32>} : memref<2x896xf32, #tpu.memory_space<vmem>>, vector<2x128xf32>,
    %c0_88 = arith.constant 0 : index
    %c0_89 = arith.constant 0 : index
    %130 = vector.load %arg20[%c0_88, %c0_89] : memref<2x896xf32, #tpu.memory_space<vmem>>, vector<2x896xf32>
    %131 = arith.truncf %130 : vector<2x896xf32> to vector<2x896xbf16>
    %c0_90 = arith.constant 0 : index
    %c0_91 = arith.constant 0 : index
    %132 = vector.load %arg13[%c0_90, %c0_91] : memref<896x448xbf16, #tpu.memory_space<vmem>>, vector<896x448xbf16>
    %cst_92 = arith.constant dense<0.000000e+00> : vector<2x448xf32>
    %133 = tpu.matmul %131, %132, %cst_92 {dimension_numbers = #tpu.dot_dimension_numbers<[1], [0], [0], [1], [0, 0, 1, 1], [], []>} : vector<2x896xbf16>, vector<896x448xbf16>, vector<2x448xf32> -> vector<2x448xf32>
    %c0_93 = arith.constant 0 : index
    %c0_94 = arith.constant 0 : index
    %134 = vector.load %arg14[%c0_93, %c0_94] : memref<1x448xf32, #tpu.memory_space<vmem>>, vector<1x448xf32>
    %135 = vector.broadcast %134 : vector<1x448xf32> to vector<2x448xf32>
    %136 = arith.addf %133, %135 : vector<2x448xf32>
    %cst_95 = arith.constant 2.000000e-01 : f32
    %137 = vector.broadcast %cst_95 : f32 to vector<2x448xf32>
    %138 = arith.mulf %137, %136 : vector<2x448xf32>
    %139 = arith.maximumf %136, %138 : vector<2x448xf32>
    %140 = arith.truncf %139 : vector<2x448xf32> to vector<2x448xbf16>
    %c0_96 = arith.constant 0 : index
    %c0_97 = arith.constant 0 : index
    %141 = vector.load %arg15[%c0_96, %c0_97] : memref<448x224xbf16, #tpu.memory_space<vmem>>, vector<448x224xbf16>
    %cst_98 = arith.constant dense<0.000000e+00> : vector<2x224xf32>
    %142 = tpu.matmul %140, %141, %cst_98 {dimension_numbers = #tpu.dot_dimension_numbers<[1], [0], [0], [1], [0, 0, 1, 1], [], []>} : vector<2x448xbf16>, vector<448x224xbf16>, vector<2x224xf32> -> vector<2x224xf32>
    %c0_99 = arith.constant 0 : index
    %c0_100 = arith.constant 0 : index
    %143 = vector.load %arg16[%c0_99, %c0_100] : memref<1x224xf32, #tpu.memory_space<vmem>>, vector<1x224xf32>
    %144 = vector.broadcast %143 : vector<1x224xf32> to vector<2x224xf32>
    %145 = arith.addf %142, %144 : vector<2x224xf32>
    %cst_101 = arith.constant 2.000000e-01 : f32
    %146 = vector.broadcast %cst_101 : f32 to vector<2x224xf32>
    %147 = arith.mulf %146, %145 : vector<2x224xf32>
    %148 = arith.maximumf %145, %147 : vector<2x224xf32>
    %149 = arith.truncf %148 : vector<2x224xf32> to vector<2x224xbf16>
    %c0_102 = arith.constant 0 : index
    %c0_103 = arith.constant 0 : index
    %150 = vector.load %arg17[%c0_102, %c0_103] : memref<224x100xbf16, #tpu.memory_space<vmem>>, vector<224x100xbf16>
    %cst_104 = arith.constant dense<0.000000e+00> : vector<2x100xf32>
    %151 = tpu.matmul %149, %150, %cst_104 {dimension_numbers = #tpu.dot_dimension_numbers<[1], [0], [0], [1], [0, 0, 1, 1], [], []>} : vector<2x224xbf16>, vector<224x100xbf16>, vector<2x100xf32> -> vector<2x100xf32>
    %c0_105 = arith.constant 0 : index
    %c0_106 = arith.constant 0 : index
    %152 = vector.load %arg18[%c0_105, %c0_106] : memref<1x100xf32, #tpu.memory_space<vmem>>, vector<1x100xf32>
    %153 = vector.broadcast %152 : vector<1x100xf32> to vector<2x100xf32>
    %154 = arith.addf %151, %153 : vector<2x100xf32>
    %155 = math.tanh %154 : vector<2x100xf32>
    %c0_107 = arith.constant 0 : index
    %c0_108 = arith.constant 0 : index
    %156 = vector.load %arg19[%c0_107, %c0_108] : memref<2x100xf32, #tpu.memory_space<vmem>>, vector<2x100xf32>
    tpu.vector_store %arg19[%c0_107, %c0_108], %155 {strides = array<i32>} : memref<2x100xf32, #tpu.memory_space<vmem>>, vector<2x100xf32>,
    return
  }
}

</mosaic_0001>

<bundles_post_ra>
// kernel: decoder_forward.1
= control target key start
LH: loop header
LB: loop body
LE: loop exit
PB: predicated region body
PF: predicated region fallthrough
CT: control target
= control target key end

     0   :  { %s9078_s0 = inlined_call_operand.vmem [shape: f32[200,1], index: 0, kind: input, shape index: {}]   ;;  %s9079_s1 = inlined_call_operand.vmem [shape: bf16[3,100,200], index: 1, kind: input, shape index: {}]   ;;  %s9080_s2 = inlined_call_operand.vmem [shape: bf16[3,50,100], index: 2, kind: input, shape index: {}]   ;;  %s9081_s3 = inlined_call_operand.vmem [shape: bf16[3,26,50], index: 3, kind: input, shape index: {}]   ;;  %s9082_s4 = inlined_call_operand.vmem [shape: bf16[3,14,26], index: 4, kind: input, shape index: {}]   ;;  %s9083_s5 = inlined_call_operand.vmem [shape: f32[3,1,16], index: 5, kind: input, shape index: {}]   ;;  %s9084_s6 = inlined_call_operand.vmem [shape: bf16[16,96], index: 6, kind: input, shape index: {}]   ;;  %s9085_s7 = inlined_call_operand.vmem [shape: bf16[32,192], index: 7, kind: input, shape index: {}]   ;;  %s9086_s8 = inlined_call_operand.vmem [shape: bf16[64,384], index: 8, kind: input, shape index: {}]   ;;  %s9087_s9 = inlined_call_operand.vmem [shape: f32[1,16], index: 9, kind: input, shape index: {}]   ;;  %s9088_s10 = inlined_call_operand.vmem [shape: f32[1,32], index: 10, kind: input, shape index: {}]   ;;  %s9089_s11 = inlined_call_operand.vmem [shape: f32[1,64], index: 11, kind: input, shape index: {}]   ;;  %s9090_s12 = inlined_call_operand.vmem [shape: f32[1,128], index: 12, kind: input, shape index: {}]   ;;  %s9091_s13 = inlined_call_operand.vmem [shape: bf16[896,448], index: 13, kind: input, shape index: {}]   ;;  %s9092_s14 = inlined_call_operand.vmem [shape: f32[1,448], index: 14, kind: input, shape index: {}]   ;;  %s9093_s15 = inlined_call_operand.vmem [shape: bf16[448,224], index: 15, kind: input, shape index: {}]   ;;  %s9094_s16 = inlined_call_operand.vmem [shape: f32[1,224], index: 16, kind: input, shape index: {}]   ;;  %s9095_s17 = inlined_call_operand.vmem [shape: bf16[224,100], index: 17, kind: input, shape index: {}]   ;;  %s9096_s18 = inlined_call_operand.vmem [shape: f32[1,100], index: 18, kind: input, shape index: {}]   ;;  %s9097_s19 = inlined_call_operand.hbm [shape: f32[2,100], index: 19, kind: output, shape index: {}]  }
   0x1   :  { %9102 = sst [smem:[#allocation6_spill]] %s9078_s0 }
   0x2   :  { %9103 = sst [smem:[#allocation7_spill]] %s9079_s1 }
   0x3   :  { %9104 = sst [smem:[#allocation8_spill]] %s9080_s2 }
   0x4   :  { %9105 = sst [smem:[#allocation9_spill]] %s9081_s3 }
   0x5   :  { %s9106_s20 = sld [smem:[#allocation6_spill]]  ;;  %v6342_v3 = vmov 0  }
   0x6   :  { %6305 = vset.pattern.permute.xlu2 %v6342_v3  ;;  %6304 = vset.pattern.permute.xlu1 %v6342_v3 }
   0x7   :  { %6303 = vset.pattern.permute.xlu0 %v6342_v3 }
   0xb   :  { %v88_v0 = vld [vmem:[%s9106_s20 + $0xc0] sm:$0xff]  ;;  %v87_v1 = vld [vmem:[%s9106_s20 + $0xb8] sm:$0xff]  ;;  %v85_v2 = vld [vmem:[%s9106_s20 + $0xa8] sm:$0xff] }
   0xc   :  { %207 = vperm.xlu1 %6304, %v87_v1   ;;  %212 = vperm.xlu0 %6303, %v88_v0   ;;  %v84_v4 = vld [vmem:[%s9106_s20 + $0xa0] sm:$0xff]  ;;  %v86_v5 = vld [vmem:[%s9106_s20 + $0xb0] sm:$0xff] }
   0xd   :  { %197 = vperm.xlu2 %6305, %v85_v2   ;;  %v82_v6 = vld [vmem:[%s9106_s20 + $0x90] sm:$0xff] }
   0xe   :  { %24 = vsyncpa [#allocation4], 0  ;;  %v80_v7 = vld [vmem:[%s9106_s20 + $0x80] sm:$0xff]  ;;  %v83_v8 = vld [vmem:[%s9106_s20 + $0x98] sm:$0xff]  ;;  %vm408_vm0 = vcmask 1043456   ;;  %s9107_s0 = sld [smem:[#allocation7_spill]] }
   0xf   :  { %v81_v9 = vld [vmem:[%s9106_s20 + $0x88] sm:$0xff]  ;;  %v79_v10 = vld [vmem:[%s9106_s20 + $0x78] sm:$0xff]  ;;  %v78_v11 = vld [vmem:[%s9106_s20 + $0x70] sm:$0xff]  ;;  %vm386_vm1 = vcmask 588800   ;;  %vm966_vm2 = vcmask 130048   ;;  %s6344_s30 = smov 64  }
  0x10   :  { %v76_v12 = vld [vmem:[%s9106_s20 + $0x60] sm:$0xff]  ;;  %v74_v13 = vld [vmem:[%s9106_s20 + $0x50] sm:$0xff]  ;;  %v77_v14 = vld [vmem:[%s9106_s20 + $0x68] sm:$0xff]  ;;  %vm1143_vm3 = vcmask 1041408   ;;  %s9108_s22 = sld [smem:[#allocation8_spill]]  ;;  %vm1130_vm4 = vcmask 818176  }
  0x11   :  { %v75_v15 = vld [vmem:[%s9106_s20 + $0x58] sm:$0xff]  ;;  %v73_v16 = vld [vmem:[%s9106_s20 + $0x48] sm:$0xff]  ;;  %v72_v17 = vld [vmem:[%s9106_s20 + $0x40] sm:$0xff]  ;;  %vm1391_vm5 = vcmask 261120   ;;  %vm1522_vm6 = vcmask 1040384   ;;  %vm1515_vm7 = vcmask 408576  }
  0x12   :  { %v70_v18 = vld [vmem:[%s9106_s20 + $0x30] sm:$0xff]  ;;  %v68_v19 = vld [vmem:[%s9106_s20 + $0x20] sm:$0xff]  ;;  %v71_v20 = vld [vmem:[%s9106_s20 + $0x38] sm:$0xff]  ;;  %vm1745_vm8 = vcmask 523264   ;;  %vm1842_vm9 = vcmask 1044480   ;;  %vm1838_vm10 = vcmask 211968  }
  0x13   :  { %v69_v21 = vld [vmem:[%s9106_s20 + $0x28] sm:$0xff]  ;;  %v67_v22 = vld [vmem:[%s9106_s20 + $0x18] sm:$0xff]  ;;  %v66_v23 = vld [vmem:[%s9106_s20 + $0x10] sm:$0xff]  ;;  %vm4301_vm11 = vcmask 785408   ;;  %vm4332_vm12 = vcmask 812032  }
  0x14   :  { %192 = vperm.xlu1 %6304, %v84_v4   ;;  %202 = vperm.xlu0 %6303, %v86_v5   ;;  %v64_v24 = vld [vmem:[%s9106_s20] sm:$0xff]  ;;  %v65_v25 = vld [vmem:[%s9106_s20 + $0x8] sm:$0xff]  ;;  %v4368_v2 = vld [vmem:[%s9107_s0 + $0x70] sm:$0xf0]  ;;  %s9109_s20 = sld [smem:[#allocation9_spill]] }
  0x15   :  { %182 = vperm.xlu2 %6305, %v82_v6   ;;  %v6526_v27 = vld [vmem:[%s9083_s5 + $0x1] ss:$0 sm:$0xff]  ;;  %v6531_v28 = vld [vmem:[%s9083_s5] ss:$0 sm:$0xff]  ;;  %v6562_v51 = vld [vmem:[%s9083_s5 + $0x2] ss:$0 sm:$0xff] }
  0x16   :  { %v5942_v1 = vld [vmem:[%s9107_s0 + $0x6c] sm:$0xf]  ;;  %v5930_v4 = vld [vmem:[%s9107_s0 + $0x4] sm:$0xf] }
  0x17   :  { %v4423_v5 = vld [vmem:[%s9107_s0 + $0x8] sm:$0xf0] }
  0x1c   :  { %172 = vperm.xlu1 %6304, %v80_v7   ;;  %187 = vperm.xlu0 %6303, %v83_v8  }
  0x1d   :  { %177 = vperm.xlu2 %6305, %v81_v9   ;;  %v4371_v9 = vor.u32 %v5942_v1, %v4368_v2 }
  0x24   :  { %167 = vperm.xlu1 %6304, %v79_v10   ;;  %162 = vperm.xlu0 %6303, %v78_v11  }
  0x25   :  { %152 = vperm.xlu2 %6305, %v76_v12  }
  0x2c   :  { %142 = vperm.xlu1 %6304, %v74_v13   ;;  %157 = vperm.xlu0 %6303, %v77_v14   ;;  %v4426_v13 = vor.u32 %v5930_v4, %v4423_v5 }
  0x2d   :  { %147 = vperm.xlu2 %6305, %v75_v15  }
  0x34   :  { %137 = vperm.xlu1 %6304, %v73_v16   ;;  %132 = vperm.xlu0 %6303, %v72_v17  }
  0x35   :  { %122 = vperm.xlu2 %6305, %v70_v18  }
  0x3c   :  { %112 = vperm.xlu1 %6304, %v68_v19   ;;  %127 = vperm.xlu0 %6303, %v71_v20  }
  0x3d   :  { %117 = vperm.xlu2 %6305, %v69_v21  }
  0x44   :  { %107 = vperm.xlu1 %6304, %v67_v22   ;;  %102 = vperm.xlu0 %6303, %v66_v23  }
  0x45   :  { %92 = vperm.xlu2 %6305, %v64_v24  }
  0x4c   :  { %97 = vperm.xlu0 %6303, %v65_v25  }
  0x67   :  { %v6521_v26 = vpop.permute.xlu2 %197 }
  0x68   :  { %v295_v49 = vmul.f32 %v6526_v27, %v6521_v26  ;;  %v239_v50 = vmul.f32 %v6531_v28, %v6521_v26 }
  0x6f   :  { %v6535_v30 = vpop.permute.xlu2 %182 }
  0x70   :  { %v292_v56 = vmul.f32 %v6526_v27, %v6535_v30  ;;  %v236_v57 = vmul.f32 %v6531_v28, %v6535_v30 }
  0x77   :  { %v6549_v44 = vpop.permute.xlu2 %177 }
  0x78   :  { %v291_v6 = vmul.f32 %v6526_v27, %v6549_v44  ;;  %v235_v7 = vmul.f32 %v6531_v28, %v6549_v44 }
  0x7e   :  { %v6533_v29 = vpop.permute.xlu1 %207  ;;  %v213_v31 = vpop.permute.xlu0 %212 }
  0x7f   :  { %v298_v32 = vmul.f32 %v6526_v27, %v213_v31  ;;  %v242_v33 = vmul.f32 %v6531_v28, %v213_v31  ;;  %v297_v41 = vmul.f32 %v6526_v27, %v6533_v29  ;;  %v241_v43 = vmul.f32 %v6531_v28, %v6533_v29  ;;  %v153_v3 = vpop.permute.xlu2 %152 }
  0x80   :  { %v697_v60 = vmul.f32 %v6562_v51, %v213_v31  ;;  %v696_v23 = vmul.f32 %v6562_v51, %v6533_v29 }
  0x81   :  { %v311_v34 = vpack.c.bf16 %v298_v32, %v298_v32  ;;  %v255_v35 = vpack.c.bf16 %v242_v33, %v242_v33 }
  0x82   :  { %v710_v8 = vpack.c.bf16 %v697_v60, %v697_v60  ;;  %v690_v60 = vmul.f32 %v6562_v51, %v6549_v44 }
  0x83   :  { %v410_v36 = vsel %vm408_vm0, %v311_v34, 0  ;;  %v580_v37 = vsel %vm408_vm0, %v255_v35, 0  ;;  %v694_v35 = vmul.f32 %v6562_v51, %v6521_v26  ;;  %v691_v26 = vmul.f32 %v6562_v51, %v6535_v30 }
  0x84   :  { %458 = vmatpush.bf16.msra.mxu1 %v410_v36  ;;  %628 = vmatpush.bf16.msra.mxu3 %v580_v37  ;;  %v807_v19 = vsel %vm408_vm0, %v710_v8, 0 }
  0x86   :  { %v6541_v38 = vpop.permute.xlu1 %192  ;;  %v203_v39 = vpop.permute.xlu0 %202 }
  0x87   :  { %v296_v40 = vmul.f32 %v6526_v27, %v203_v39  ;;  %v240_v42 = vmul.f32 %v6531_v28, %v203_v39  ;;  %v294_v47 = vmul.f32 %v6526_v27, %v6541_v38  ;;  %v238_v48 = vmul.f32 %v6531_v28, %v6541_v38  ;;  %v148_v34 = vpop.permute.xlu2 %147 }
  0x88   :  { %v695_v18 = vmul.f32 %v6562_v51, %v203_v39  ;;  %v693_v33 = vmul.f32 %v6562_v51, %v6541_v38  ;;  %v286_v39 = vmul.f32 %v6526_v27, %v153_v3 }
  0x89   :  { %v310_v45 = vpack.c.bf16 %v297_v41, %v296_v40  ;;  %v254_v46 = vpack.c.bf16 %v241_v43, %v240_v42  ;;  %v309_v53 = vpack.c.bf16 %v295_v49, %v294_v47  ;;  %v253_v54 = vpack.c.bf16 %v239_v50, %v238_v48 }
  0x8a   :  { %v709_v32 = vpack.c.bf16 %v696_v23, %v695_v18  ;;  %v708_v37 = vpack.c.bf16 %v694_v35, %v693_v33  ;;  %v230_v40 = vmul.f32 %v6531_v28, %v153_v3  ;;  %v685_v43 = vmul.f32 %v6562_v51, %v153_v3 }
  0x8b   :  { %459 = vmatpush.bf16.msra.mxu1 %v310_v45  ;;  %629 = vmatpush.bf16.msra.mxu3 %v254_v46 }
  0x8e   :  { %v6564_v52 = vpop.permute.xlu1 %172  ;;  %v188_v55 = vpop.permute.xlu0 %187 }
  0x8f   :  { %460 = vmatpush.bf16.msra.mxu1 %v309_v53  ;;  %630 = vmatpush.bf16.msra.mxu3 %v253_v54  ;;  %v293_v58 = vmul.f32 %v6526_v27, %v188_v55  ;;  %v237_v59 = vmul.f32 %v6531_v28, %v188_v55  ;;  %v290_v63 = vmul.f32 %v6526_v27, %v6564_v52  ;;  %v5944_v54 = vld [vmem:[%s9107_s0 + $0x7c] sm:$0xf]  ;;  %v123_v4 = vpop.permute.xlu2 %122 }
  0x90   :  { %v234_v0 = vmul.f32 %v6531_v28, %v6564_v52  ;;  %v692_v41 = vmul.f32 %v6562_v51, %v188_v55  ;;  %v689_v47 = vmul.f32 %v6562_v51, %v6564_v52  ;;  %v4376_v55 = vld [vmem:[%s9107_s0 + $0x80] sm:$0xf0]  ;;  %v5932_v52 = vld [vmem:[%s9107_s0 + $0x14] sm:$0xf]  ;;  %v224_v18 = vmul.f32 %v6531_v28, %v123_v4 }
  0x91   :  { %v308_v61 = vpack.c.bf16 %v293_v58, %v292_v56  ;;  %v252_v62 = vpack.c.bf16 %v237_v59, %v236_v57  ;;  %v307_v11 = vpack.c.bf16 %v291_v6, %v290_v63  ;;  %v4431_v57 = vld [vmem:[%s9107_s0 + $0x18] sm:$0xf0]  ;;  %v285_v58 = vmul.f32 %v6526_v27, %v148_v34 }
  0x92   :  { %v251_v12 = vpack.c.bf16 %v235_v7, %v234_v0  ;;  %v707_v56 = vpack.c.bf16 %v692_v41, %v691_v26  ;;  %v229_v59 = vmul.f32 %v6531_v28, %v148_v34  ;;  %v706_v2 = vpack.c.bf16 %v690_v60, %v689_v47 }
  0x93   :  { %461 = vmatpush.bf16.msra.mxu1 %v308_v61  ;;  %631 = vmatpush.bf16.msra.mxu3 %v252_v62  ;;  %v684_v61 = vmul.f32 %v6562_v51, %v148_v34  ;;  %v4379_v62 = vor.u32 %v5944_v54, %v4376_v55  ;;  %v4434_v3 = vor.u32 %v5932_v52, %v4431_v57  ;;  %v5946_v34 = vld [vmem:[%s9107_s0 + $0x8c] sm:$0xf] }
  0x96   :  { %v168_v10 = vpop.permute.xlu1 %167  ;;  %v163_v14 = vpop.permute.xlu0 %162 }
  0x97   :  { %v289_v15 = vmul.f32 %v6526_v27, %v168_v10  ;;  %v233_v16 = vmul.f32 %v6531_v28, %v168_v10  ;;  %v688_v17 = vmul.f32 %v6562_v51, %v168_v10  ;;  %462 = vmatpush.bf16.msra.mxu1 %v307_v11  ;;  %632 = vmatpush.bf16.msra.mxu3 %v251_v12  ;;  %v118_v23 = vpop.permute.xlu2 %117 }
  0x98   :  { %v288_v20 = vmul.f32 %v6526_v27, %v163_v14  ;;  %v232_v21 = vmul.f32 %v6531_v28, %v163_v14  ;;  %v687_v22 = vmul.f32 %v6562_v51, %v163_v14  ;;  %v678_v41 = vmul.f32 %v6562_v51, %v118_v23 }
  0x9a   :  { %v306_v24 = vpack.c.bf16 %v289_v15, %v288_v20  ;;  %v250_v25 = vpack.c.bf16 %v233_v16, %v232_v21  ;;  %v705_v31 = vpack.c.bf16 %v688_v17, %v687_v22  ;;  %4412 = vmatmul.msk.bf16.vlgmr.msra.gmra.mxu1 %vm386_vm1, %v4371_v9  ;;  %4467 = vmatmul.msk.bf16.vlgmr.msra.gmra.mxu3 %vm386_vm1, %v4426_v13 }
  0x9b   :  { %855 = vmatpush.bf16.msrb.mxu3 %v807_v19  ;;  %v280_v17 = vmul.f32 %v6526_v27, %v123_v4  ;;  %v679_v21 = vmul.f32 %v6562_v51, %v123_v4  ;;  %v5931_v4 = vld [vmem:[%s9107_s0 + $0x4] sm:$0xf0] }
  0x9c   :  { %412 = vmatpush.bf16.msra.mxu0 %v306_v24  ;;  %582 = vmatpush.bf16.msra.mxu2 %v250_v25 }
  0x9d   :  { %809 = vmatpush.bf16.msrb.mxu1 %v705_v31 }
  0x9e   :  { %v143_v29 = vpop.permute.xlu1 %142  ;;  %v158_v36 = vpop.permute.xlu0 %157 }
  0x9f   :  { %856 = vmatpush.bf16.msrb.mxu3 %v709_v32  ;;  %v287_v42 = vmul.f32 %v6526_v27, %v158_v36  ;;  %v231_v38 = vmul.f32 %v6531_v28, %v158_v36  ;;  %v686_v45 = vmul.f32 %v6562_v51, %v158_v36  ;;  %v284_v46 = vmul.f32 %v6526_v27, %v143_v29  ;;  %v5934_v36 = vld [vmem:[%s9107_s0 + $0x24] sm:$0xf]  ;;  %v93_v57 = vpop.permute.xlu2 %92 }
  0xa0   :  { %v228_v53 = vmul.f32 %v6531_v28, %v143_v29  ;;  %v683_v30 = vmul.f32 %v6562_v51, %v143_v29  ;;  %v4384_v29 = vld [vmem:[%s9107_s0 + $0x90] sm:$0xf0]  ;;  %v218_v60 = vmul.f32 %v6531_v28, %v93_v57 }
  0xa1   :  { %v305_v48 = vpack.c.bf16 %v287_v42, %v286_v39  ;;  %v249_v49 = vpack.c.bf16 %v231_v38, %v230_v40  ;;  %v704_v50 = vpack.c.bf16 %v686_v45, %v685_v43  ;;  %v304_v0 = vpack.c.bf16 %v285_v58, %v284_v46 }
  0xa2   :  { %v248_v1 = vpack.c.bf16 %v229_v59, %v228_v53  ;;  %v703_v6 = vpack.c.bf16 %v684_v61, %v683_v30  ;;  %v279_v39 = vmul.f32 %v6526_v27, %v118_v23  ;;  %v223_v40 = vmul.f32 %v6531_v28, %v118_v23  ;;  %v4366_v61 = vld [vmem:[%s9107_s0 + $0x68] sm:$0xf] }
  0xa3   :  { %857 = vmatpush.bf16.msrb.mxu3 %v708_v37  ;;  %413 = vmatpush.bf16.msra.mxu0 %v305_v48  ;;  %v4439_v37 = vld [vmem:[%s9107_s0 + $0x28] sm:$0xf0]  ;;  %v4387_v45 = vor.u32 %v5946_v34, %v4384_v29  ;;  %v274_v59 = vmul.f32 %v6526_v27, %v93_v57  ;;  %v4408_v29 = vld [vmem:[%s9107_s0 + $0xc0] sm:$0xf0] }
  0xa4   :  { %583 = vmatpush.bf16.msra.mxu2 %v249_v49  ;;  %810 = vmatpush.bf16.msrb.mxu1 %v704_v50  ;;  %v4442_v26 = vor.u32 %v5934_v36, %v4439_v37  ;;  %v5940_v36 = vld [vmem:[%s9107_s0 + $0x54] sm:$0xf]  ;;  %v4463_v37 = vld [vmem:[%s9107_s0 + $0x58] sm:$0xf0] }
  0xa6   :  { %v138_v63 = vpop.permute.xlu1 %137  ;;  %v133_v5 = vpop.permute.xlu0 %132 }
  0xa7   :  { %858 = vmatpush.bf16.msrb.mxu3 %v707_v56  ;;  %v283_v7 = vmul.f32 %v6526_v27, %v138_v63  ;;  %v227_v8 = vmul.f32 %v6531_v28, %v138_v63  ;;  %v682_v9 = vmul.f32 %v6562_v51, %v138_v63  ;;  %414 = vmatpush.bf16.msra.mxu0 %v304_v0 }
  0xa8   :  { %584 = vmatpush.bf16.msra.mxu2 %v248_v1  ;;  %v282_v44 = vmul.f32 %v6526_v27, %v133_v5  ;;  %v226_v10 = vmul.f32 %v6531_v28, %v133_v5  ;;  %v681_v11 = vmul.f32 %v6562_v51, %v133_v5  ;;  %811 = vmatpush.bf16.msrb.mxu1 %v703_v6 }
  0xa9   :  { %v673_v0 = vmul.f32 %v6562_v51, %v93_v57 }
  0xaa   :  { %v303_v12 = vpack.c.bf16 %v283_v7, %v282_v44  ;;  %v247_v13 = vpack.c.bf16 %v227_v8, %v226_v10  ;;  %v702_v14 = vpack.c.bf16 %v682_v9, %v681_v11  ;;  %4413 = vmatmul.msk.bf16.gmra.mxu1 %vm386_vm1, %v4379_v62  ;;  %4468 = vmatmul.msk.bf16.gmra.mxu3 %vm386_vm1, %v4434_v3  ;;  %v4421_v3 = vld [vmem:[%s9107_s0] sm:$0xf]  ;;  %v4392_v8 = vld [vmem:[%s9107_s0 + $0xa0] sm:$0xf0]  ;;  %v5936_v9 = vld [vmem:[%s9107_s0 + $0x34] sm:$0xf] }
  0xab   :  { %859 = vmatpush.bf16.msrb.mxu3 %v706_v2  ;;  %v5943_v2 = vld [vmem:[%s9107_s0 + $0x6c] sm:$0xf0]  ;;  %v4422_v7 = vor.u32 %v5931_v4, %v4421_v3  ;;  %v4447_v44 = vld [vmem:[%s9107_s0 + $0x38] sm:$0xf0]  ;;  %v5941_v3 = vld [vmem:[%s9107_s0 + $0x54] sm:$0xf0] }
  0xac   :  { %415 = vmatpush.bf16.msra.mxu0 %v303_v12  ;;  %585 = vmatpush.bf16.msra.mxu2 %v247_v13  ;;  %v4450_v11 = vor.u32 %v5936_v9, %v4447_v44  ;;  %v4374_v12 = vld [vmem:[%s9107_s0 + $0x78] sm:$0xf]  ;;  %v5945_v13 = vld [vmem:[%s9107_s0 + $0x7c] sm:$0xf0] }
  0xad   :  { %812 = vmatpush.bf16.msrb.mxu1 %v702_v14  ;;  %v4429_v14 = vld [vmem:[%s9107_s0 + $0x10] sm:$0xf] }
  0xae   :  { %v113_v15 = vpop.permute.xlu1 %112  ;;  %v128_v16 = vpop.permute.xlu0 %127 }
  0xaf   :  { %v281_v19 = vmul.f32 %v6526_v27, %v128_v16  ;;  %v225_v20 = vmul.f32 %v6531_v28, %v128_v16  ;;  %v680_v22 = vmul.f32 %v6562_v51, %v128_v16  ;;  %v278_v24 = vmul.f32 %v6526_v27, %v113_v15 }
  0xb0   :  { %v222_v33 = vmul.f32 %v6531_v28, %v113_v15  ;;  %v677_v35 = vmul.f32 %v6562_v51, %v113_v15  ;;  %v5933_v15 = vld [vmem:[%s9107_s0 + $0x14] sm:$0xf0]  ;;  %v4375_v16 = vor.u32 %v5945_v13, %v4374_v12 }
  0xb1   :  { %v302_v25 = vpack.c.bf16 %v281_v19, %v280_v17  ;;  %v246_v31 = vpack.c.bf16 %v225_v20, %v224_v18  ;;  %v701_v32 = vpack.c.bf16 %v680_v22, %v679_v21  ;;  %v301_v38 = vpack.c.bf16 %v279_v39, %v278_v24  ;;  %v5950_v18 = vld [vmem:[%s9107_s0 + $0xac] sm:$0xf]  ;;  %v4400_v19 = vld [vmem:[%s9107_s0 + $0xb0] sm:$0xf0]  ;;  %v5938_v20 = vld [vmem:[%s9107_s0 + $0x44] sm:$0xf] }
  0xb2   :  { %v245_v43 = vpack.c.bf16 %v223_v40, %v222_v33  ;;  %v700_v47 = vpack.c.bf16 %v678_v41, %v677_v35  ;;  %v4430_v17 = vor.u32 %v5933_v15, %v4429_v14  ;;  %v4455_v21 = vld [vmem:[%s9107_s0 + $0x48] sm:$0xf0]  ;;  %v4403_v22 = vor.u32 %v5950_v18, %v4400_v19  ;;  %v4382_v24 = vld [vmem:[%s9107_s0 + $0x88] sm:$0xf]  ;;  %v5952_v35 = vld [vmem:[%s9107_s0 + $0xbc] sm:$0xf] }
  0xb3   :  { %416 = vmatpush.bf16.msra.mxu0 %v302_v25  ;;  %586 = vmatpush.bf16.msra.mxu2 %v246_v31  ;;  %v4458_v23 = vor.u32 %v5938_v20, %v4455_v21  ;;  %v5947_v25 = vld [vmem:[%s9107_s0 + $0x8c] sm:$0xf0]  ;;  %v4437_v31 = vld [vmem:[%s9107_s0 + $0x20] sm:$0xf]  ;;  %v4411_v39 = vor.u32 %v5952_v35, %v4408_v29  ;;  %v4466_v40 = vor.u32 %v5940_v36, %v4463_v37  ;;  %v4390_v41 = vld [vmem:[%s9107_s0 + $0x98] sm:$0xf] }
  0xb4   :  { %813 = vmatpush.bf16.msrb.mxu1 %v701_v32  ;;  %v5935_v32 = vld [vmem:[%s9107_s0 + $0x24] sm:$0xf0]  ;;  %v4383_v33 = vor.u32 %v5947_v25, %v4382_v24  ;;  %v4506_v15 = vld [vmem:[%s9107_s0 + $0xf0] sm:$0xf]  ;;  %v4508_v18 = vld [vmem:[%s9107_s0 + $0xf8] sm:$0xf0] }
  0xb5   :  { %v4438_v34 = vor.u32 %v5935_v32, %v4437_v31  ;;  %v4514_v25 = vld [vmem:[%s9107_s0 + $0x100] sm:$0xf]  ;;  %v5961_v31 = vld [vmem:[%s9107_s0 + $0x104] sm:$0xf0]  ;;  %v5960_v32 = vld [vmem:[%s9107_s0 + $0x104] sm:$0xf] }
  0xb6   :  { %v108_v42 = vpop.permute.xlu1 %107  ;;  %v103_v46 = vpop.permute.xlu0 %102  ;;  %v4515_v35 = vor.u32 %v5961_v31, %v4514_v25 }
  0xb7   :  { %v277_v48 = vmul.f32 %v6526_v27, %v108_v42  ;;  %v221_v49 = vmul.f32 %v6531_v28, %v108_v42  ;;  %v676_v50 = vmul.f32 %v6562_v51, %v108_v42  ;;  %417 = vmatpush.bf16.msra.mxu0 %v301_v38  ;;  %587 = vmatpush.bf16.msra.mxu2 %v245_v43  ;;  %v5949_v42 = vld [vmem:[%s9107_s0 + $0x9c] sm:$0xf0]  ;;  %v4445_v38 = vld [vmem:[%s9107_s0 + $0x30] sm:$0xf]  ;;  %v5937_v43 = vld [vmem:[%s9107_s0 + $0x34] sm:$0xf0] }
  0xb8   :  { %v276_v53 = vmul.f32 %v6526_v27, %v103_v46  ;;  %v220_v54 = vmul.f32 %v6531_v28, %v103_v46  ;;  %v675_v55 = vmul.f32 %v6562_v51, %v103_v46  ;;  %814 = vmatpush.bf16.msrb.mxu1 %v700_v47  ;;  %v4391_v46 = vor.u32 %v5949_v42, %v4390_v41  ;;  %v5963_v42 = vld [vmem:[%s9107_s0 + $0x114] sm:$0xf0] }
  0xb9   :  { %v4446_v47 = vor.u32 %v5937_v43, %v4445_v38  ;;  %v5962_v38 = vld [vmem:[%s9107_s0 + $0x114] sm:$0xf]  ;;  %v4524_v43 = vld [vmem:[%s9107_s0 + $0x118] sm:$0xf0] }
  0xba   :  { %v300_v56 = vpack.c.bf16 %v277_v48, %v276_v53  ;;  %v244_v30 = vpack.c.bf16 %v221_v49, %v220_v54  ;;  %v699_v52 = vpack.c.bf16 %v676_v50, %v675_v55  ;;  %4414 = vmatmul.msk.bf16.gmra.mxu1 %vm386_vm1, %v4387_v45  ;;  %4469 = vmatmul.msk.bf16.gmra.mxu3 %vm386_vm1, %v4442_v26  ;;  %v4363_v45 = vld [vmem:[%s9107_s0 + $0xc8] sm:$0x33]  ;;  %v268_v26 = vld [vmem:[%s9107_s0 + $0x60] sm:$0x33]  ;;  %v5951_v55 = vld [vmem:[%s9107_s0 + $0xac] sm:$0xf0] }
  0xbb   :  { %v364_v48 = vunpack.c.h.b16 %v4363_v45  ;;  %v536_v49 = vunpack.c.h.b16 %v268_v26  ;;  %v4398_v54 = vld [vmem:[%s9107_s0 + $0xa8] sm:$0xf] }
  0xbc   :  { %418 = vmatpush.bf16.msra.mxu0 %v300_v56  ;;  %588 = vmatpush.bf16.msra.mxu2 %v244_v30  ;;  %v4453_v56 = vld [vmem:[%s9107_s0 + $0x40] sm:$0xf]  ;;  %v5939_v30 = vld [vmem:[%s9107_s0 + $0x44] sm:$0xf0] }
  0xbd   :  { %815 = vmatpush.bf16.msrb.mxu1 %v699_v52  ;;  %v378_v50 = vpack.c.b16 %v364_v48, %v364_v48  ;;  %v550_v53 = vpack.c.b16 %v536_v49, %v536_v49  ;;  %v4399_v52 = vor.u32 %v5951_v55, %v4398_v54  ;;  %v4454_v57 = vor.u32 %v5939_v30, %v4453_v56 }
  0xbe   :  { %v98_v58 = vpop.permute.xlu0 %97 }
  0xbf   :  { %v275_v62 = vmul.f32 %v6526_v27, %v98_v58  ;;  %v219_v63 = vmul.f32 %v6531_v28, %v98_v58  ;;  %v674_v1 = vmul.f32 %v6562_v51, %v98_v58  ;;  %v4367_v28 = vor.u32 %v5943_v2, %v4366_v61  ;;  %v5948_v51 = vld [vmem:[%s9107_s0 + $0x9c] sm:$0xf]  ;;  %v4490_v58 = vld [vmem:[%s9107_s0 + $0xd0] sm:$0xf] }
  0xc0   :  { %v4395_v10 = vor.u32 %v5948_v51, %v4392_v8  ;;  %v4492_v61 = vld [vmem:[%s9107_s0 + $0xd8] sm:$0xf0]  ;;  %v4461_v2 = vld [vmem:[%s9107_s0 + $0x50] sm:$0xf] }
  0xc1   :  { %v299_v5 = vpack.c.bf16 %v275_v62, %v274_v59  ;;  %v243_v27 = vpack.c.bf16 %v219_v63, %v218_v60  ;;  %v698_v6 = vpack.c.bf16 %v674_v1, %v673_v0  ;;  %v5955_v59 = vld [vmem:[%s9107_s0 + $0xd4] sm:$0xf0]  ;;  %v5954_v60 = vld [vmem:[%s9107_s0 + $0xd4] sm:$0xf]  ;;  %v5953_v1 = vld [vmem:[%s9107_s0 + $0xbc] sm:$0xf0] }
  0xc2   :  { %v4491_v62 = vor.u32 %v5955_v59, %v4490_v58  ;;  %v4495_v63 = vor.u32 %v5954_v60, %v4492_v61  ;;  %v4406_v0 = vld [vmem:[%s9107_s0 + $0xb8] sm:$0xf]  ;;  %v4530_v58 = vld [vmem:[%s9107_s0 + $0x120] sm:$0xf]  ;;  %v5965_v60 = vld [vmem:[%s9107_s0 + $0x124] sm:$0xf0] }
  0xc3   :  { %419 = vmatpush.bf16.msra.mxu0 %v299_v5  ;;  %589 = vmatpush.bf16.msra.mxu2 %v243_v27  ;;  %v4407_v4 = vor.u32 %v5953_v1, %v4406_v0  ;;  %v4462_v5 = vor.u32 %v5941_v3, %v4461_v2  ;;  %v4498_v27 = vld [vmem:[%s9107_s0 + $0xe0] sm:$0xf]  ;;  %v5964_v61 = vld [vmem:[%s9107_s0 + $0x124] sm:$0xf]  ;;  %v4531_v2 = vor.u32 %v5965_v60, %v4530_v58 }
  0xc4   :  { %816 = vmatpush.bf16.msrb.mxu1 %v698_v6  ;;  %v5957_v6 = vld [vmem:[%s9107_s0 + $0xe4] sm:$0xf0]  ;;  %v6939_v60 = vld [vmem:[%s9087_s9] ss:$0 sm:$0xff]  ;;  %s6343_s9 = smov 96  }
  0xc5   :  { %v4499_v51 = vor.u32 %v5957_v6, %v4498_v27 }
  0xc6   :  { %420 = vmatmul.bf16.vlgmr.msra.gmra.mxu0 %v4367_v28  ;;  %590 = vmatmul.bf16.vlgmr.msra.gmra.mxu2 %v4422_v7  ;;  %v5956_v28 = vld [vmem:[%s9107_s0 + $0xe4] sm:$0xf]  ;;  %v4500_v7 = vld [vmem:[%s9107_s0 + $0xe8] sm:$0xf0] }
  0xc7   :  { %v4503_v8 = vor.u32 %v5956_v28, %v4500_v7 }
  0xca   :  { %4415 = vmatmul.msk.bf16.gmra.mxu1 %vm386_vm1, %v4395_v10  ;;  %4470 = vmatmul.msk.bf16.gmra.mxu3 %vm386_vm1, %v4450_v11  ;;  %v363_v10 = vunpack.c.l.b16 %v4363_v45  ;;  %v535_v11 = vunpack.c.l.b16 %v268_v26 }
  0xcc   :  { %v377_v13 = vpack.c.b16 %v363_v10, %v363_v10  ;;  %v549_v14 = vpack.c.b16 %v535_v11, %v535_v11 }
  0xd6   :  { %425 = vmatmul.bf16.gmra.mxu0 %v4375_v16  ;;  %595 = vmatmul.bf16.gmra.mxu2 %v4430_v17  ;;  %v5959_v16 = vld [vmem:[%s9107_s0 + $0xf4] sm:$0xf0]  ;;  %v5958_v17 = vld [vmem:[%s9107_s0 + $0xf4] sm:$0xf] }
  0xd7   :  { %v4507_v20 = vor.u32 %v5959_v16, %v4506_v15  ;;  %v4511_v21 = vor.u32 %v5958_v17, %v4508_v18 }
  0xda   :  { %4416 = vmatmul.msk.bf16.gmra.mxu1 %vm386_vm1, %v4403_v22  ;;  %4471 = vmatmul.msk.bf16.gmra.mxu3 %vm386_vm1, %v4458_v23 }
  0xe6   :  { %430 = vmatmul.bf16.gmra.mxu0 %v4383_v33  ;;  %600 = vmatmul.bf16.gmra.mxu2 %v4438_v34  ;;  %v4516_v33 = vld [vmem:[%s9107_s0 + $0x108] sm:$0xf0] }
  0xe7   :  { %v4519_v29 = vor.u32 %v5960_v32, %v4516_v33 }
  0xea   :  { %4417 = vmatmul.msk.bf16.gmra.mxu1 %vm386_vm1, %v4411_v39  ;;  %4472 = vmatmul.msk.bf16.gmra.mxu3 %vm386_vm1, %v4466_v40  ;;  %v4522_v40 = vld [vmem:[%s9107_s0 + $0x110] sm:$0xf] }
  0xf6   :  { %435 = vmatmul.bf16.gmra.mxu0 %v4391_v46  ;;  %605 = vmatmul.bf16.gmra.mxu2 %v4446_v47  ;;  %v4523_v46 = vor.u32 %v5963_v42, %v4522_v40  ;;  %v4527_v47 = vor.u32 %v5962_v38, %v4524_v43 }
  0xfa   :  { %4418 = vmatmul.msk.bf16.gmra.mxu1 %vm386_vm1, %v378_v50  ;;  %4473 = vmatmul.msk.bf16.gmra.mxu3 %vm386_vm1, %v550_v53 }
 0x106   :  { %440 = vmatmul.bf16.gmra.mxu0 %v4399_v52  ;;  %610 = vmatmul.bf16.gmra.mxu2 %v4454_v57 }
 0x10a   :  { %817 = vmatmul.bf16.vlgmr.msrb.gmra.mxu1 %v4491_v62  ;;  %4536 = vmatmul.msk.bf16.vlgmr.msrb.gmra.mxu3 %vm386_vm1, %v4495_v63  ;;  %v4532_v62 = vld [vmem:[%s9107_s0 + $0x128] sm:$0xf0] }
 0x10b   :  { %v4535_v3 = vor.u32 %v5964_v61, %v4532_v62 }
 0x116   :  { %445 = vmatmul.bf16.gmra.mxu0 %v4407_v4  ;;  %615 = vmatmul.bf16.gmra.mxu2 %v4462_v5 }
 0x117   :  { %v464_v9 = vpop.f32.mrf.mxu1 }
 0x11a   :  { %822 = vmatmul.bf16.gmra.mxu1 %v4499_v51  ;;  %4537 = vmatmul.msk.bf16.gmra.mxu3 %vm386_vm1, %v4503_v8  ;;  %v4487_v8 = vld [vmem:[%s9107_s0 + $0x130] sm:$0x33] }
 0x11b   :  { %v763_v11 = vunpack.c.h.b16 %v4487_v8 }
 0x11d   :  { %v634_v44 = vpop.f32.mrf.mxu3  ;;  %v777_v17 = vpack.c.b16 %v763_v11, %v763_v11 }
 0x11f   :  { %v466_v12 = vpop.f32.mrf.mxu1 }
 0x125   :  { %v636_v19 = vpop.f32.mrf.mxu3 }
 0x126   :  { %450 = vmatmul.bf16.gmra.mxu0 %v377_v13  ;;  %620 = vmatmul.bf16.gmra.mxu2 %v549_v14 }
 0x127   :  { %v469_v22 = vpop.f32.mrf.mxu1 }
 0x12a   :  { %827 = vmatmul.bf16.gmra.mxu1 %v4507_v20  ;;  %4538 = vmatmul.msk.bf16.gmra.mxu3 %vm386_vm1, %v4511_v21  ;;  %v5966_v20 = vld [vmem:[%s9084_s6] sm:$0xff] }
 0x12b   :  { %995 = vmatpush.bf16.msrb.mxu0 %v5966_v20 }
 0x12d   :  { %v639_v23 = vpop.f32.mrf.mxu3 }
 0x12f   :  { %v471_v24 = vpop.f32.mrf.mxu1 }
 0x135   :  { %v641_v34 = vpop.f32.mrf.mxu3 }
 0x137   :  { %v474_v36 = vpop.f32.mrf.mxu1 }
 0x13a   :  { %832 = vmatmul.bf16.gmra.mxu1 %v4515_v35  ;;  %4539 = vmatmul.msk.bf16.gmra.mxu3 %vm386_vm1, %v4519_v29 }
 0x13d   :  { %v644_v37 = vpop.f32.mrf.mxu3 }
 0x13f   :  { %v6860_v39 = vpop.f32.mrf.mxu1 }
 0x143   :  { %v421_v41 = vpop.f32.mrf.mxu0 }
 0x144   :  { %v465_v45 = vadd.f32 %v464_v9, %v421_v41 }
 0x145   :  { %v6874_v26 = vpop.f32.mrf.mxu3 }
 0x147   :  { %v479_v48 = vpop.f32.mrf.mxu1 }
 0x149   :  { %v591_v49 = vpop.f32.mrf.mxu2 }
 0x14a   :  { %v592_v50 = vadd.f32 %v591_v49, %v465_v45  ;;  %837 = vmatmul.bf16.gmra.mxu1 %v4523_v46  ;;  %4540 = vmatmul.msk.bf16.gmra.mxu3 %vm386_vm1, %v4527_v47 }
 0x14b   :  { %v423_v53 = vpop.f32.mrf.mxu0 }
 0x14c   :  { %v6877_v54 = vadd.f32 %v634_v44, %v592_v50  ;;  %v467_v30 = vadd.f32 %v466_v12, %v423_v53  ;;  %v762_v12 = vunpack.c.l.b16 %v4487_v8 }
 0x14d   :  { %v649_v55 = vpop.f32.mrf.mxu3 }
 0x14e   :  { %v776_v18 = vpack.c.b16 %v762_v12, %v762_v12 }
 0x14f   :  { %v6879_v56 = vpop.f32.mrf.mxu1 }
 0x151   :  { %v593_v52 = vpop.f32.mrf.mxu2 }
 0x152   :  { %v594_v57 = vadd.f32 %v593_v52, %v467_v30 }
 0x153   :  { %v426_v59 = vpop.f32.mrf.mxu0 }
 0x154   :  { %v6893_v63 = vadd.f32 %v636_v19, %v594_v57  ;;  %v470_v0 = vadd.f32 %v469_v22, %v426_v59 }
 0x155   :  { %v6895_v1 = vpop.f32.mrf.mxu3 }
 0x157   :  { %v484_v4 = vpop.f32.mrf.mxu1 }
 0x159   :  { %v596_v5 = vpop.f32.mrf.mxu2 }
 0x15a   :  { %v597_v27 = vadd.f32 %v596_v5, %v470_v0  ;;  %842 = vmatmul.bf16.gmra.mxu1 %v4531_v2  ;;  %4541 = vmatmul.msk.bf16.gmra.mxu3 %vm386_vm1, %v4535_v3 }
 0x15b   :  { %v428_v6 = vpop.f32.mrf.mxu0 }
 0x15c   :  { %v6898_v28 = vadd.f32 %v639_v23, %v597_v27  ;;  %v472_v9 = vadd.f32 %v471_v24, %v428_v6 }
 0x15d   :  { %v654_v7 = vpop.f32.mrf.mxu3 }
 0x15f   :  { %v6900_v51 = vpop.f32.mrf.mxu1 }
 0x161   :  { %v598_v44 = vpop.f32.mrf.mxu2 }
 0x162   :  { %v599_v10 = vadd.f32 %v598_v44, %v472_v9 }
 0x163   :  { %v431_v13 = vpop.f32.mrf.mxu0 }
 0x164   :  { %v6905_v14 = vadd.f32 %v641_v34, %v599_v10  ;;  %v475_v15 = vadd.f32 %v474_v36, %v431_v13 }
 0x165   :  { %v6907_v16 = vpop.f32.mrf.mxu3 }
 0x167   :  { %v489_v19 = vpop.f32.mrf.mxu1 }
 0x169   :  { %v601_v21 = vpop.f32.mrf.mxu2 }
 0x16a   :  { %v602_v22 = vadd.f32 %v601_v21, %v475_v15  ;;  %4542 = vmatmul.msk.bf16.gmra.mxu3 %vm386_vm1, %v777_v17  ;;  %847 = vmatmul.bf16.gmra.mxu1 %v776_v18 }
 0x16b   :  { %v6913_v23 = vpop.f32.mrf.mxu0 }
 0x16c   :  { %v6915_v24 = vadd.f32 %v644_v37, %v602_v22 }
 0x16d   :  { %v659_v25 = vpop.f32.mrf.mxu3 }
 0x16f   :  { %v6917_v31 = vpop.f32.mrf.mxu1 }
 0x171   :  { %v6919_v32 = vpop.f32.mrf.mxu2 }
 0x173   :  { %v436_v33 = vpop.f32.mrf.mxu0 }
 0x174   :  { %v480_v34 = vadd.f32 %v479_v48, %v436_v33 }
 0x175   :  { %v6921_v35 = vpop.f32.mrf.mxu3 }
 0x177   :  { %v494_v29 = vpop.f32.mrf.mxu1 }
 0x179   :  { %v606_v36 = vpop.f32.mrf.mxu2 }
 0x17a   :  { %v607_v40 = vadd.f32 %v606_v36, %v480_v34 }
 0x17b   :  { %v6923_v41 = vpop.f32.mrf.mxu0 }
 0x17c   :  { %v6925_v42 = vadd.f32 %v649_v55, %v607_v40 }
 0x17d   :  { %v664_v38 = vpop.f32.mrf.mxu3 }
 0x17f   :  { %v496_v43 = vpop.f32.mrf.mxu1 }
 0x181   :  { %v6927_v37 = vpop.f32.mrf.mxu2 }
 0x183   :  { %v441_v45 = vpop.f32.mrf.mxu0 }
 0x184   :  { %v485_v46 = vadd.f32 %v484_v4, %v441_v45 }
 0x185   :  { %v666_v47 = vpop.f32.mrf.mxu3 }
 0x187   :  { %v818_v49 = vpop.f32.mrf.mxu1 }
 0x189   :  { %v611_v50 = vpop.f32.mrf.mxu2 }
 0x18a   :  { %v612_v53 = vadd.f32 %v611_v50, %v485_v46 }
 0x18b   :  { %v6929_v48 = vpop.f32.mrf.mxu0 }
 0x18c   :  { %v6931_v30 = vadd.f32 %v654_v7, %v612_v53 }
 0x18d   :  { %v861_v52 = vpop.f32.mrf.mxu3 }
 0x18e   :  { %v862_v57 = vadd.f32 %v861_v52, %v818_v49 }
 0x18f   :  { %v820_v58 = vpop.f32.mrf.mxu1 }
 0x190   :  { %v895_v55 = vadd.f32 %v862_v57, %v6877_v54  ;;  %v477_v57 = vadd.f32 %v6860_v39, %v6913_v23 }
 0x191   :  { %v6933_v59 = vpop.f32.mrf.mxu2 }
 0x192   :  { %v912_v2 = vadd.f32 %v6939_v60, %v895_v55 }
 0x193   :  { %v446_v61 = vpop.f32.mrf.mxu0 }
 0x194   :  { %v490_v62 = vadd.f32 %v489_v19, %v446_v61  ;;  %v925_v6 = vmul.f32 0.2, %v912_v2 }
 0x195   :  { %v863_v0 = vpop.f32.mrf.mxu3 }
 0x196   :  { %v864_v3 = vadd.f32 %v863_v0, %v820_v58  ;;  %v938_v11 = vmax.f32 %v912_v2, %v925_v6 }
 0x197   :  { %v823_v4 = vpop.f32.mrf.mxu1 }
 0x198   :  { %v896_v5 = vadd.f32 %v864_v3, %v6893_v63 }
 0x199   :  { %v616_v27 = vpop.f32.mrf.mxu2 }
 0x19a   :  { %v913_v7 = vadd.f32 %v6939_v60, %v896_v5  ;;  %v617_v8 = vadd.f32 %v616_v27, %v490_v62 }
 0x19b   :  { %v6944_v54 = vpop.f32.mrf.mxu0 }
 0x19c   :  { %v926_v9 = vmul.f32 0.2, %v913_v7  ;;  %v6946_v44 = vadd.f32 %v659_v25, %v617_v8 }
 0x19d   :  { %v866_v10 = vpop.f32.mrf.mxu3 }
 0x19e   :  { %v939_v12 = vmax.f32 %v913_v7, %v926_v9  ;;  %v867_v13 = vadd.f32 %v866_v10, %v823_v4 }
 0x19f   :  { %v825_v15 = vpop.f32.mrf.mxu1 }
 0x1a0   :  { %v951_v17 = vpack.c.bf16 %v939_v12, %v938_v11  ;;  %v897_v63 = vadd.f32 %v867_v13, %v6898_v28 }
 0x1a1   :  { %v6948_v18 = vpop.f32.mrf.mxu2 }
 0x1a2   :  { %4547 = vmatmul.msk.bf16.vlgmr.msrb.gmra.mxu0 %vm966_vm2, %v951_v17  ;;  %v914_v22 = vadd.f32 %v6939_v60, %v897_v63 }
 0x1a3   :  { %v451_v19 = vpop.f32.mrf.mxu0 }
 0x1a4   :  { %v495_v20 = vadd.f32 %v494_v29, %v451_v19  ;;  %v927_v40 = vmul.f32 0.2, %v914_v22 }
 0x1a5   :  { %v868_v21 = vpop.f32.mrf.mxu3 }
 0x1a6   :  { %v869_v25 = vadd.f32 %v868_v21, %v825_v15  ;;  %v940_v53 = vmax.f32 %v914_v22, %v927_v40 }
 0x1a7   :  { %v828_v33 = vpop.f32.mrf.mxu1 }
 0x1a8   :  { %v898_v34 = vadd.f32 %v869_v25, %v6905_v14  ;;  %v604_v14 = vadd.f32 %v6919_v32, %v477_v57 }
 0x1a9   :  { %v621_v36 = vpop.f32.mrf.mxu2 }
 0x1aa   :  { %v915_v43 = vadd.f32 %v6939_v60, %v898_v34  ;;  %v622_v45 = vadd.f32 %v621_v36, %v495_v20 }
 0x1ab   :  { %v453_v46 = vpop.f32.mrf.mxu0 }
 0x1ac   :  { %v928_v47 = vmul.f32 0.2, %v915_v43  ;;  %v6955_v49 = vadd.f32 %v664_v38, %v622_v45  ;;  %v647_v38 = vadd.f32 %v6874_v26, %v604_v14 }
 0x1ad   :  { %v871_v28 = vpop.f32.mrf.mxu3 }
 0x1ae   :  { %v872_v50 = vadd.f32 %v871_v28, %v828_v33  ;;  %v941_v29 = vmax.f32 %v915_v43, %v928_v47 }
 0x1af   :  { %v830_v52 = vpop.f32.mrf.mxu1 }
 0x1b0   :  { %v952_v58 = vpack.c.bf16 %v941_v29, %v940_v53  ;;  %v899_v61 = vadd.f32 %v872_v50, %v6915_v24  ;;  %v482_v24 = vadd.f32 %v6879_v56, %v6923_v41 }
 0x1b1   :  { %v623_v55 = vpop.f32.mrf.mxu2 }
 0x1b2   :  { %4548 = vmatmul.msk.bf16.gmra.mxu0 %vm966_vm2, %v952_v58  ;;  %v916_v0 = vadd.f32 %v6939_v60, %v899_v61  ;;  %v609_v26 = vadd.f32 %v6927_v37, %v482_v24 }
 0x1b4   :  { %v929_v5 = vmul.f32 0.2, %v916_v0  ;;  %v652_v12 = vadd.f32 %v6895_v1, %v609_v26 }
 0x1b5   :  { %v873_v62 = vpop.f32.mrf.mxu3 }
 0x1b6   :  { %v874_v2 = vadd.f32 %v873_v62, %v830_v52  ;;  %v942_v7 = vmax.f32 %v916_v0, %v929_v5 }
 0x1b7   :  { %v833_v3 = vpop.f32.mrf.mxu1 }
 0x1b8   :  { %v900_v4 = vadd.f32 %v874_v2, %v647_v38 }
 0x1ba   :  { %v917_v27 = vadd.f32 %v6939_v60, %v900_v4 }
 0x1bc   :  { %v930_v39 = vmul.f32 0.2, %v917_v27 }
 0x1bd   :  { %v876_v23 = vpop.f32.mrf.mxu3 }
 0x1be   :  { %v877_v6 = vadd.f32 %v876_v23, %v833_v3  ;;  %v943_v32 = vmax.f32 %v917_v27, %v930_v39 }
 0x1bf   :  { %v835_v8 = vpop.f32.mrf.mxu1 }
 0x1c0   :  { %v953_v9 = vpack.c.bf16 %v943_v32, %v942_v7  ;;  %v901_v10 = vadd.f32 %v877_v6, %v6925_v42  ;;  %v487_v42 = vadd.f32 %v6900_v51, %v6929_v48 }
 0x1c2   :  { %4549 = vmatmul.msk.bf16.gmra.mxu0 %vm966_vm2, %v953_v9  ;;  %v918_v13 = vadd.f32 %v6939_v60, %v901_v10  ;;  %v614_v1 = vadd.f32 %v6933_v59, %v487_v42 }
 0x1c4   :  { %v931_v19 = vmul.f32 0.2, %v918_v13  ;;  %v657_v40 = vadd.f32 %v6907_v16, %v614_v1 }
 0x1c5   :  { %v878_v11 = vpop.f32.mrf.mxu3 }
 0x1c6   :  { %v879_v15 = vadd.f32 %v878_v11, %v835_v8  ;;  %v944_v22 = vmax.f32 %v918_v13, %v931_v19 }
 0x1c7   :  { %v838_v17 = vpop.f32.mrf.mxu1 }
 0x1c8   :  { %v902_v63 = vadd.f32 %v879_v15, %v652_v12 }
 0x1ca   :  { %v919_v20 = vadd.f32 %v6939_v60, %v902_v63 }
 0x1cc   :  { %v932_v21 = vmul.f32 0.2, %v919_v20 }
 0x1cd   :  { %v881_v56 = vpop.f32.mrf.mxu3 }
 0x1ce   :  { %v882_v41 = vadd.f32 %v881_v56, %v838_v17  ;;  %v945_v37 = vmax.f32 %v919_v20, %v932_v21 }
 0x1cf   :  { %v840_v25 = vpop.f32.mrf.mxu1 }
 0x1d0   :  { %v954_v33 = vpack.c.bf16 %v945_v37, %v944_v22  ;;  %v903_v34 = vadd.f32 %v882_v41, %v6931_v30  ;;  %v492_v30 = vadd.f32 %v6917_v31, %v6944_v54 }
 0x1d2   :  { %4550 = vmatmul.msk.bf16.gmra.mxu0 %vm966_vm2, %v954_v33  ;;  %v920_v43 = vadd.f32 %v6939_v60, %v903_v34  ;;  %v619_v16 = vadd.f32 %v6948_v18, %v492_v30 }
 0x1d4   :  { %v933_v28 = vmul.f32 0.2, %v920_v43  ;;  %v662_v14 = vadd.f32 %v6921_v35, %v619_v16 }
 0x1d5   :  { %v883_v36 = vpop.f32.mrf.mxu3 }
 0x1d6   :  { %v884_v45 = vadd.f32 %v883_v36, %v840_v25  ;;  %v946_v29 = vmax.f32 %v920_v43, %v933_v28 }
 0x1d7   :  { %v843_v46 = vpop.f32.mrf.mxu1 }
 0x1d8   :  { %v904_v47 = vadd.f32 %v884_v45, %v657_v40 }
 0x1da   :  { %v921_v50 = vadd.f32 %v6939_v60, %v904_v47 }
 0x1dc   :  { %v934_v53 = vmul.f32 0.2, %v921_v50 }
 0x1dd   :  { %v886_v51 = vpop.f32.mrf.mxu3 }
 0x1de   :  { %v887_v48 = vadd.f32 %v886_v51, %v843_v46  ;;  %v947_v59 = vmax.f32 %v921_v50, %v934_v53 }
 0x1df   :  { %v845_v52 = vpop.f32.mrf.mxu1 }
 0x1e0   :  { %v955_v57 = vpack.c.bf16 %v947_v59, %v946_v29  ;;  %v905_v58 = vadd.f32 %v887_v48, %v6946_v44 }
 0x1e2   :  { %4551 = vmatmul.msk.bf16.gmra.mxu0 %vm966_vm2, %v955_v57  ;;  %v922_v61 = vadd.f32 %v6939_v60, %v905_v58 }
 0x1e4   :  { %v935_v2 = vmul.f32 0.2, %v922_v61 }
 0x1e5   :  { %v888_v55 = vpop.f32.mrf.mxu3 }
 0x1e6   :  { %v889_v62 = vadd.f32 %v888_v55, %v845_v52  ;;  %v948_v54 = vmax.f32 %v922_v61, %v935_v2 }
 0x1e7   :  { %v848_v38 = vpop.f32.mrf.mxu1 }
 0x1e8   :  { %v906_v0 = vadd.f32 %v889_v62, %v662_v14 }
 0x1ea   :  { %v923_v3 = vadd.f32 %v6939_v60, %v906_v0 }
 0x1ec   :  { %v936_v4 = vmul.f32 0.2, %v923_v3 }
 0x1ed   :  { %v891_v31 = vpop.f32.mrf.mxu3 }
 0x1ee   :  { %v949_v5 = vmax.f32 %v923_v3, %v936_v4  ;;  %v892_v18 = vadd.f32 %v891_v31, %v848_v38 }
 0x1ef   :  { %v850_v27 = vpop.f32.mrf.mxu1 }
 0x1f0   :  { %v907_v44 = vadd.f32 %v892_v18, %v6955_v49  ;;  %v956_v39 = vpack.c.bf16 %v949_v5, %v948_v54 }
 0x1f2   :  { %4552 = vmatmul.msk.bf16.gmra.mxu0 %vm966_vm2, %v956_v39  ;;  %v924_v35 = vadd.f32 %v6939_v60, %v907_v44 }
 0x1f4   :  { %v937_v6 = vmul.f32 0.2, %v924_v35 }
 0x1f5   :  { %v893_v23 = vpop.f32.mrf.mxu3 }
 0x1f6   :  { %v950_v7 = vmax.f32 %v924_v35, %v937_v6  ;;  %v5970_v35 = vld [vmem:[%s9108_s22 + $0x1c] sm:$0xff] }
 0x1f8   :  { %v957_v32 = vpack.c.bf16 %v950_v7, %v950_v7 }
 0x202   :  { %4553 = vmatmul.msk.bf16.gmra.mxu0 %vm966_vm2, %v957_v32 }
 0x21f   :  { %v997_v8 = vpop.f32.mrf.mxu0 }
 0x220   :  { %v1031_v55 = vpack.c.bf16 %v997_v8, %v997_v8 }
 0x222   :  { %v1090_v61 = vunpack.c.l.b16 %v1031_v55 }
 0x227   :  { %v999_v24 = vpop.f32.mrf.mxu0 }
 0x228   :  { %v1032_v16 = vpack.c.bf16 %v999_v24, %v999_v24  ;;  %v5971_v24 = vld [vmem:[%s9108_s22 + $0x24] sm:$0xff] }
 0x22a   :  { %v1091_v14 = vunpack.c.l.b16 %v1032_v16 }
 0x22c   :  { %v1103_v62 = vpack.c.b16 %v1091_v14, %v1090_v61 }
 0x22f   :  { %v1002_v9 = vpop.f32.mrf.mxu0 }
 0x230   :  { %v1033_v56 = vpack.c.bf16 %v1002_v9, %v1002_v9  ;;  %v5972_v9 = vld [vmem:[%s9108_s22 + $0x2c] sm:$0xff] }
 0x232   :  { %v1092_v37 = vunpack.c.l.b16 %v1033_v56 }
 0x237   :  { %v1004_v26 = vpop.f32.mrf.mxu0 }
 0x238   :  { %v1034_v20 = vpack.c.bf16 %v1004_v26, %v1004_v26  ;;  %v5973_v26 = vld [vmem:[%s9108_s22 + $0x38] sm:$0xff] }
 0x23a   :  { %v1093_v22 = vunpack.c.l.b16 %v1034_v20  ;;  %v5969_v20 = vld [vmem:[%s9108_s22 + $0x10] sm:$0xff] }
 0x23c   :  { %v6997_v25 = vpack.c.b16 %v1093_v22, %v1092_v37 }
 0x23f   :  { %v1007_v10 = vpop.f32.mrf.mxu0 }
 0x240   :  { %v1035_v45 = vpack.c.bf16 %v1007_v10, %v1007_v10  ;;  %v4560_v10 = vld [vmem:[%s9108_s22 + $0x34] sm:$0x1] }
 0x242   :  { %v1094_v50 = vunpack.c.l.b16 %v1035_v45  ;;  %v4628_v45 = vld [vmem:[%s9085_s7 + $0x18] sm:$0xf0] }
 0x247   :  { %v1009_v11 = vpop.f32.mrf.mxu0 }
 0x248   :  { %v1036_v40 = vpack.c.bf16 %v1009_v11, %v1009_v11  ;;  %v1072_v11 = vunpack.c.l.b16 %v4560_v10 }
 0x24a   :  { %v1095_v47 = vunpack.c.l.b16 %v1036_v40 }
 0x24c   :  { %v1105_v48 = vpack.c.b16 %v1095_v47, %v1094_v50 }
 0x24f   :  { %v1012_v12 = vpop.f32.mrf.mxu0 }
 0x250   :  { %v1037_v59 = vpack.c.bf16 %v1012_v12, %v1012_v12  ;;  %v1076_v12 = vpack.c.b16 %v1072_v11, %v1072_v11 }
 0x252   :  { %v1096_v57 = vunpack.c.l.b16 %v1037_v59 }
 0x257   :  { %v1014_v13 = vpop.f32.mrf.mxu0 }
 0x258   :  { %v1038_v29 = vpack.c.bf16 %v1014_v13, %v1014_v13  ;;  %v5974_v13 = vld [vmem:[%s9108_s22 + $0x40] sm:$0xff] }
 0x25a   :  { %v1097_v30 = vunpack.c.l.b16 %v1038_v29  ;;  %v5976_v29 = vld [vmem:[%s9085_s7 + $0x4] sm:$0xf] }
 0x25c   :  { %v1106_v58 = vpack.c.b16 %v1097_v30, %v1096_v57 }
 0x25f   :  { %v1017_v49 = vpop.f32.mrf.mxu0 }
 0x260   :  { %v1039_v15 = vpack.c.bf16 %v1017_v49, %v1017_v49  ;;  %v5967_v49 = vld [vmem:[%s9108_s22] sm:$0xff] }
 0x262   :  { %v1098_v19 = vunpack.c.l.b16 %v1039_v15  ;;  %v5975_v15 = vld [vmem:[%s9108_s22 + $0x48] sm:$0xff] }
 0x267   :  { %v1019_v17 = vpop.f32.mrf.mxu0 }
 0x268   :  { %v1040_v63 = vpack.c.bf16 %v1019_v17, %v1019_v17  ;;  %v5968_v17 = vld [vmem:[%s9108_s22 + $0x8] sm:$0xff] }
 0x26a   :  { %v1099_v60 = vunpack.c.l.b16 %v1040_v63  ;;  %v4599_v63 = vld [vmem:[%s9108_s22 + $0x50] sm:$0x1] }
 0x26c   :  { %v6993_v21 = vpack.c.b16 %v1099_v60, %v1098_v19  ;;  %v1263_v19 = vunpack.c.l.b16 %v4599_v63 }
 0x26e   :  { %1118 = vrot.lane.b32.xlu0 %v6993_v21, %s6343_s9  ;;  %v1267_v60 = vpack.c.b16 %v1263_v19, %v1263_v19 }
 0x26f   :  { %v1022_v41 = vpop.f32.mrf.mxu0 }
 0x270   :  { %v1041_v42 = vpack.c.bf16 %v1022_v41, %v1022_v41 }
 0x272   :  { %v1100_v34 = vunpack.c.l.b16 %v1041_v42 }
 0x276   :  { %1112 = vrot.lane.b32.xlu0 %v6997_v25, %s6343_s9 }
 0x277   :  { %v1024_v33 = vpop.f32.mrf.mxu0 }
 0x278   :  { %v1042_v1 = vpack.c.bf16 %v1024_v33, %v1024_v33  ;;  %v4626_v33 = vld [vmem:[%s9085_s7 + $0x10] sm:$0xf] }
 0x27a   :  { %v1101_v36 = vunpack.c.l.b16 %v1042_v1  ;;  %v5979_v1 = vld [vmem:[%s9085_s7 + $0x14] sm:$0xf0] }
 0x27c   :  { %v1108_v43 = vpack.c.b16 %v1101_v36, %v1100_v34  ;;  %v4627_v34 = vor.u32 %v5979_v1, %v4626_v33 }
 0x27e   :  { %1278 = vrot.lane.b32.xlu0 %v1108_v43, %s6344_s30  ;;  %1120 = vrot.lane.b32.xlu2 %v1108_v43, %s6343_s9 }
 0x27f   :  { %v1027_v46 = vpop.f32.mrf.mxu0  ;;  %1410 = vmatpush.bf16.msra.mxu3 %v4627_v34 }
 0x280   :  { %v1043_v28 = vpack.c.bf16 %v1027_v46, %v1027_v46 }
 0x282   :  { %v1102_v53 = vunpack.c.l.b16 %v1043_v28 }
 0x284   :  { %v1109_v51 = vpack.c.b16 %v1102_v53, %v1102_v53 }
 0x286   :  { %1272 = vrot.lane.b32.xlu0 %v1105_v48, %s6344_s30  ;;  %1114 = vrot.lane.b32.xlu2 %v1105_v48, %s6343_s9  ;;  %v1212_v23 = vsel %vm1143_vm3, %v1109_v51, 0 }
 0x287   :  { %1122 = vrot.lane.b32.xlu1 %v1109_v51, %s6343_s9  ;;  %v1029_v52 = vpop.f32.mrf.mxu0 }
 0x288   :  { %v4620_v52 = vld [vmem:[%s9085_s7 + $0x8] sm:$0xf0] }
 0x289   :  { %v4623_v30 = vor.u32 %v5976_v29, %v4620_v52 }
 0x28e   :  { %1280 = vrot.lane.b32.xlu2 %v1109_v51, %s6344_s30  ;;  %v4618_v51 = vld [vmem:[%s9085_s7] sm:$0xf] }
 0x28f   :  { %1116 = vrot.lane.b32.xlu1 %v1106_v58, %s6343_s9 }
 0x296   :  { %1274 = vrot.lane.b32.xlu2 %v1106_v58, %s6344_s30 }
 0x297   :  { %1110 = vrot.lane.b32.xlu1 %v1103_v62, %s6343_s9  ;;  %s4341_s9 = sshll.u32 %s9097_s19, 4  ;;  %s4342_s9 = int_to_ptr.hbm [resolvable:$true] %s4341_s9 }
 0x29e   :  { %1268 = vrot.lane.b32.xlu2 %v1103_v62, %s6344_s30 }
 0x29f   :  { %1276 = vrot.lane.b32.xlu1 %v6993_v21, %s6344_s30 }
 0x2a7   :  { %1270 = vrot.lane.b32.xlu1 %v6997_v25, %s6344_s30 }
 0x2d8   :  { %v1121_v38 = vpop.permute.xlu2 %1120 }
 0x2e0   :  { %v1119_v0 = vpop.permute.xlu0 %1118  ;;  %v1115_v2 = vpop.permute.xlu2 %1114 }
 0x2e8   :  { %v1113_v3 = vpop.permute.xlu0 %1112  ;;  %v1281_v4 = vpop.permute.xlu2 %1280 }
 0x2e9   :  { %v1301_v31 = vsel %vm1143_vm3, %v1281_v4, 0 }
 0x2ea   :  { %1304 = vmatpush.bf16.msra.mxu1 %v1301_v31 }
 0x2f0   :  { %v1279_v54 = vpop.permute.xlu0 %1278  ;;  %v1275_v6 = vpop.permute.xlu2 %1274 }
 0x2f1   :  { %1305 = vmatpush.bf16.msra.mxu1 %v1279_v54 }
 0x2f8   :  { %v1273_v7 = vpop.permute.xlu0 %1272  ;;  %v1269_v8 = vpop.permute.xlu2 %1268 }
 0x2f9   :  { %v1123_v5 = vpop.permute.xlu1 %1122 }
 0x2fa   :  { %v1145_v18 = vsel %vm1143_vm3, %v1123_v5, 0 }
 0x2fb   :  { %1148 = vmatpush.bf16.msrb.mxu2 %v1145_v18 }
 0x2ff   :  { %1149 = vmatpush.bf16.msrb.mxu2 %v1121_v38 }
 0x301   :  { %v1117_v27 = vpop.permute.xlu1 %1116 }
 0x303   :  { %1150 = vmatpush.bf16.msrb.mxu2 %v1119_v0 }
 0x307   :  { %1151 = vmatpush.bf16.msrb.mxu2 %v1117_v27 }
 0x309   :  { %v1111_v44 = vpop.permute.xlu1 %1110 }
 0x30b   :  { %1152 = vmatpush.bf16.msrb.mxu2 %v1115_v2 }
 0x30f   :  { %1153 = vmatpush.bf16.msrb.mxu2 %v1113_v3 }
 0x311   :  { %v1277_v39 = vpop.permute.xlu1 %1276 }
 0x312   :  { %1306 = vmatpush.bf16.msra.mxu1 %v1277_v39 }
 0x313   :  { %1154 = vmatpush.bf16.msrb.mxu2 %v1111_v44 }
 0x316   :  { %4573 = vmatmul.msk.bf16.vlgmr.msrb.gmra.mxu2 %vm1130_vm4, %v5970_v35  ;;  %1307 = vmatpush.bf16.msra.mxu1 %v1275_v6 }
 0x317   :  { %1215 = vmatpush.bf16.msra.mxu2 %v1212_v23 }
 0x319   :  { %v1271_v32 = vpop.permute.xlu1 %1270 }
 0x31a   :  { %1308 = vmatpush.bf16.msra.mxu1 %v1273_v7 }
 0x31b   :  { %1216 = vmatpush.bf16.msra.mxu2 %v1108_v43  ;;  %v5978_v43 = vld [vmem:[%s9085_s7 + $0x14] sm:$0xf] }
 0x31c   :  { %v4631_v46 = vor.u32 %v5978_v43, %v4628_v45 }
 0x31e   :  { %1309 = vmatpush.bf16.msra.mxu1 %v1271_v32  ;;  %1438 = vmatpush.bf16.msra.mxu0 %v4631_v46 }
 0x31f   :  { %1217 = vmatpush.bf16.msra.mxu2 %v6993_v21  ;;  %v1050_v21 = vld [vmem:[%s9108_s22 + $0x18] sm:$0x1] }
 0x320   :  { %v1188_v56 = vunpack.c.l.b16 %v1050_v21 }
 0x322   :  { %1310 = vmatpush.bf16.msra.mxu1 %v1269_v8  ;;  %v1192_v41 = vpack.c.b16 %v1188_v56, %v1188_v56  ;;  %1439 = vmatpush.bf16.msra.mxu0 %v4623_v30 }
 0x323   :  { %1218 = vmatpush.bf16.msra.mxu2 %v1106_v58 }
 0x325   :  { %4612 = vmatmul.msk.bf16.vlgmr.msra.gmra.mxu1 %vm1130_vm4, %v5973_v26 }
 0x326   :  { %4574 = vmatmul.msk.bf16.gmra.mxu2 %vm1130_vm4, %v5971_v24 }
 0x327   :  { %1219 = vmatpush.bf16.msra.mxu2 %v1105_v48  ;;  %v5977_v48 = vld [vmem:[%s9085_s7 + $0x4] sm:$0xf0] }
 0x328   :  { %v4619_v59 = vor.u32 %v5977_v48, %v4618_v51 }
 0x32a   :  { %1411 = vmatpush.bf16.msra.mxu3 %v4619_v59 }
 0x32b   :  { %1220 = vmatpush.bf16.msra.mxu2 %v6997_v25 }
 0x32f   :  { %1221 = vmatpush.bf16.msra.mxu2 %v1103_v62  ;;  %v6310_v62 = vld [vmem:[%s9088_s10] ss:$0 sm:$0xff] }
 0x335   :  { %4613 = vmatmul.msk.bf16.gmra.mxu1 %vm1130_vm4, %v5974_v13 }
 0x336   :  { %4575 = vmatmul.msk.bf16.gmra.mxu2 %vm1130_vm4, %v5972_v9 }
 0x345   :  { %4614 = vmatmul.msk.bf16.gmra.mxu1 %vm1130_vm4, %v5975_v15 }
 0x346   :  { %4576 = vmatmul.msk.bf16.gmra.mxu2 %vm1130_vm4, %v1076_v12 }
 0x355   :  { %4615 = vmatmul.msk.bf16.gmra.mxu1 %vm1130_vm4, %v1267_v60 }
 0x356   :  { %4589 = vmatmul.msk.bf16.vlgmr.msra.gmra.mxu2 %vm1130_vm4, %v5967_v49 }
 0x366   :  { %4590 = vmatmul.msk.bf16.gmra.mxu2 %vm1130_vm4, %v5968_v17 }
 0x376   :  { %4591 = vmatmul.msk.bf16.gmra.mxu2 %vm1130_vm4, %v5969_v20 }
 0x386   :  { %4592 = vmatmul.msk.bf16.gmra.mxu2 %vm1130_vm4, %v1192_v41 }
 0x399   :  { %v1156_v22 = vpop.f32.mrf.mxu2 }
 0x3a1   :  { %v1158_v37 = vpop.f32.mrf.mxu2 }
 0x3a2   :  { %v1312_v36 = vpop.f32.mrf.mxu1 }
 0x3a9   :  { %v1161_v25 = vpop.f32.mrf.mxu2 }
 0x3aa   :  { %v1314_v47 = vpop.f32.mrf.mxu1 }
 0x3b1   :  { %v1163_v42 = vpop.f32.mrf.mxu2 }
 0x3b2   :  { %v1317_v50 = vpop.f32.mrf.mxu1 }
 0x3b9   :  { %v1166_v40 = vpop.f32.mrf.mxu2 }
 0x3ba   :  { %v1319_v57 = vpop.f32.mrf.mxu1 }
 0x3c1   :  { %v1168_v28 = vpop.f32.mrf.mxu2 }
 0x3c2   :  { %v1322_v58 = vpop.f32.mrf.mxu1 }
 0x3c9   :  { %v1171_v53 = vpop.f32.mrf.mxu2 }
 0x3ca   :  { %v1324_v3 = vpop.f32.mrf.mxu1 }
 0x3d1   :  { %v1173_v16 = vpop.f32.mrf.mxu2 }
 0x3d2   :  { %v1327_v35 = vpop.f32.mrf.mxu1 }
 0x3d9   :  { %v1223_v55 = vpop.f32.mrf.mxu2 }
 0x3da   :  { %v1224_v14 = vadd.f32 %v1223_v55, %v1156_v22  ;;  %v1329_v24 = vpop.f32.mrf.mxu1 }
 0x3dc   :  { %v1331_v61 = vadd.f32 %v1312_v36, %v1224_v14 }
 0x3de   :  { %v1342_v0 = vadd.f32 %v6310_v62, %v1331_v61 }
 0x3e0   :  { %v1349_v31 = vmul.f32 0.2, %v1342_v0 }
 0x3e1   :  { %v1225_v38 = vpop.f32.mrf.mxu2 }
 0x3e2   :  { %v1226_v2 = vadd.f32 %v1225_v38, %v1158_v37  ;;  %v1356_v27 = vmax.f32 %v1342_v0, %v1349_v31 }
 0x3e4   :  { %v1332_v4 = vadd.f32 %v1314_v47, %v1226_v2 }
 0x3e6   :  { %v1343_v54 = vadd.f32 %v6310_v62, %v1332_v4 }
 0x3e8   :  { %v1350_v5 = vmul.f32 0.2, %v1343_v54 }
 0x3e9   :  { %v1228_v18 = vpop.f32.mrf.mxu2 }
 0x3ea   :  { %v1357_v44 = vmax.f32 %v1343_v54, %v1350_v5  ;;  %v1229_v39 = vadd.f32 %v1228_v18, %v1161_v25 }
 0x3ec   :  { %v1363_v23 = vpack.c.bf16 %v1357_v44, %v1356_v27  ;;  %v1333_v6 = vadd.f32 %v1317_v50, %v1229_v39 }
 0x3ee   :  { %4632 = vmatmul.msk.bf16.vlgmr.msra.gmra.mxu3 %vm1391_vm5, %v1363_v23  ;;  %4636 = vmatmul.msk.bf16.vlgmr.msra.gmra.mxu0 %vm1391_vm5, %v1363_v23  ;;  %v1344_v32 = vadd.f32 %v6310_v62, %v1333_v6 }
 0x3f0   :  { %v1351_v26 = vmul.f32 0.2, %v1344_v32 }
 0x3f1   :  { %v1230_v7 = vpop.f32.mrf.mxu2 }
 0x3f2   :  { %v1231_v8 = vadd.f32 %v1230_v7, %v1163_v42  ;;  %v1358_v13 = vmax.f32 %v1344_v32, %v1351_v26 }
 0x3f4   :  { %v1334_v9 = vadd.f32 %v1319_v57, %v1231_v8 }
 0x3f6   :  { %v1345_v10 = vadd.f32 %v6310_v62, %v1334_v9 }
 0x3f8   :  { %v1352_v11 = vmul.f32 0.2, %v1345_v10 }
 0x3f9   :  { %v1233_v12 = vpop.f32.mrf.mxu2 }
 0x3fa   :  { %v1359_v49 = vmax.f32 %v1345_v10, %v1352_v11  ;;  %v1234_v15 = vadd.f32 %v1233_v12, %v1166_v40 }
 0x3fc   :  { %v1364_v17 = vpack.c.bf16 %v1359_v49, %v1358_v13  ;;  %v1335_v63 = vadd.f32 %v1322_v58, %v1234_v15 }
 0x3fe   :  { %4633 = vmatmul.msk.bf16.gmra.mxu3 %vm1391_vm5, %v1364_v17  ;;  %4637 = vmatmul.msk.bf16.gmra.mxu0 %vm1391_vm5, %v1364_v17  ;;  %v1346_v60 = vadd.f32 %v6310_v62, %v1335_v63 }
 0x400   :  { %v1353_v56 = vmul.f32 0.2, %v1346_v60 }
 0x401   :  { %v1235_v19 = vpop.f32.mrf.mxu2 }
 0x402   :  { %v1236_v20 = vadd.f32 %v1235_v19, %v1168_v28  ;;  %v1360_v25 = vmax.f32 %v1346_v60, %v1353_v56 }
 0x404   :  { %v1336_v21 = vadd.f32 %v1324_v3, %v1236_v20 }
 0x406   :  { %v1347_v41 = vadd.f32 %v6310_v62, %v1336_v21 }
 0x408   :  { %v1354_v22 = vmul.f32 0.2, %v1347_v41 }
 0x409   :  { %v1238_v37 = vpop.f32.mrf.mxu2 }
 0x40a   :  { %v1361_v42 = vmax.f32 %v1347_v41, %v1354_v22  ;;  %v1239_v33 = vadd.f32 %v1238_v37, %v1171_v53  ;;  %v5982_v41 = vld [vmem:[%s9109_s20 + $0x10] sm:$0xff]  ;;  %v5984_v37 = vld [vmem:[%s9109_s20 + $0x20] sm:$0xff] }
 0x40c   :  { %v1337_v1 = vadd.f32 %v1327_v35, %v1239_v33  ;;  %v1365_v34 = vpack.c.bf16 %v1361_v42, %v1360_v25  ;;  %v4650_v25 = vld [vmem:[%s9109_s20 + $0x18] sm:$0xf]  ;;  %v5983_v42 = vld [vmem:[%s9109_s20 + $0x18] sm:$0x10] }
 0x40d   :  { %v4651_v33 = vor.u32 %v5983_v42, %v4650_v25 }
 0x40e   :  { %4634 = vmatmul.msk.bf16.gmra.mxu3 %vm1391_vm5, %v1365_v34  ;;  %4638 = vmatmul.msk.bf16.gmra.mxu0 %vm1391_vm5, %v1365_v34  ;;  %v1348_v36 = vadd.f32 %v6310_v62, %v1337_v1  ;;  %v4674_v1 = vld [vmem:[%s9109_s20 + $0x28] sm:$0xf]  ;;  %v5985_v34 = vld [vmem:[%s9109_s20 + $0x28] sm:$0x10] }
 0x410   :  { %v1355_v43 = vmul.f32 0.2, %v1348_v36 }
 0x411   :  { %v1240_v40 = vpop.f32.mrf.mxu2 }
 0x412   :  { %v1362_v45 = vmax.f32 %v1348_v36, %v1355_v43  ;;  %v4675_v36 = vor.u32 %v5985_v34, %v4674_v1  ;;  %v5980_v40 = vld [vmem:[%s9109_s20] sm:$0xff]  ;;  %v4660_v43 = vld [vmem:[%s9109_s20 + $0x8] sm:$0xf] }
 0x414   :  { %v1366_v46 = vpack.c.bf16 %v1362_v45, %v1362_v45  ;;  %v5981_v45 = vld [vmem:[%s9109_s20 + $0x8] sm:$0x10]  ;;  %s6345_s20 = smov [#allocation3]  }
 0x41e   :  { %4635 = vmatmul.msk.bf16.gmra.mxu3 %vm1391_vm5, %v1366_v46  ;;  %4639 = vmatmul.msk.bf16.gmra.mxu0 %vm1391_vm5, %v1366_v46  ;;  %v4661_v46 = vor.u32 %v5981_v45, %v4660_v43 }
 0x46b   :  { %v1441_v47 = vpop.f32.mrf.mxu0 }
 0x471   :  { %v1413_v28 = vpop.f32.mrf.mxu3 }
 0x472   :  { %v1460_v7 = vpack.c.bf16 %v1441_v47, %v1413_v28  ;;  %v4716_v28 = vld [vmem:[%s9086_s8 + $0x48] sm:$0xf] }
 0x473   :  { %v1443_v50 = vpop.f32.mrf.mxu0 }
 0x474   :  { %v1493_v11 = vunpack.c.l.b16 %v1460_v7  ;;  %v1601_v17 = vunpack.c.h.b16 %v1460_v7 }
 0x479   :  { %v1415_v51 = vpop.f32.mrf.mxu3 }
 0x47a   :  { %v1461_v39 = vpack.c.bf16 %v1443_v50, %v1415_v51  ;;  %v5996_v50 = vld [vmem:[%s9086_s8 + $0x50] sm:$0xf0]  ;;  %v5995_v51 = vld [vmem:[%s9086_s8 + $0x4c] sm:$0xf] }
 0x47b   :  { %v1446_v53 = vpop.f32.mrf.mxu0 }
 0x47c   :  { %v1494_v9 = vunpack.c.l.b16 %v1461_v39  ;;  %v1602_v49 = vunpack.c.h.b16 %v1461_v39 }
 0x47e   :  { %v1500_v13 = vpack.c.b16 %v1494_v9, %v1493_v11  ;;  %v1608_v63 = vpack.c.b16 %v1602_v49, %v1601_v17  ;;  %v5991_v17 = vld [vmem:[%s9086_s8 + $0x28] sm:$0xf0] }
 0x481   :  { %v1418_v48 = vpop.f32.mrf.mxu3 }
 0x482   :  { %v1462_v59 = vpack.c.bf16 %v1446_v53, %v1418_v48  ;;  %v4717_v53 = vor.u32 %v5996_v50, %v4716_v28  ;;  %v4718_v48 = vld [vmem:[%s9086_s8 + $0x54] sm:$0xf0] }
 0x483   :  { %v1448_v29 = vpop.f32.mrf.mxu0 }
 0x484   :  { %v1495_v16 = vunpack.c.l.b16 %v1462_v59  ;;  %v1603_v12 = vunpack.c.h.b16 %v1462_v59  ;;  %1756 = vmatpush.bf16.msrb.mxu3 %v4717_v53 }
 0x489   :  { %v1420_v52 = vpop.f32.mrf.mxu3 }
 0x48a   :  { %v1463_v30 = vpack.c.bf16 %v1448_v29, %v1420_v52  ;;  %v4721_v29 = vor.u32 %v5995_v51, %v4718_v48  ;;  %v4704_v52 = vld [vmem:[%s9086_s8 + $0x30] sm:$0xf] }
 0x48b   :  { %v1451_v57 = vpop.f32.mrf.mxu0 }
 0x48c   :  { %v1496_v58 = vunpack.c.l.b16 %v1463_v30  ;;  %v1604_v26 = vunpack.c.h.b16 %v1463_v30  ;;  %1775 = vmatpush.bf16.msrb.mxu0 %v4721_v29  ;;  %v5993_v30 = vld [vmem:[%s9086_s8 + $0x38] sm:$0xf0] }
 0x48e   :  { %v1501_v55 = vpack.c.b16 %v1496_v58, %v1495_v16  ;;  %v1609_v15 = vpack.c.b16 %v1604_v26, %v1603_v12  ;;  %v4705_v16 = vor.u32 %v5993_v30, %v4704_v52  ;;  %v4706_v58 = vld [vmem:[%s9086_s8 + $0x3c] sm:$0xf0] }
 0x490   :  { %1506 = vrot.lane.b32.xlu2 %v1501_v55, %s6344_s30  ;;  %1757 = vmatpush.bf16.msrb.mxu3 %v4705_v16 }
 0x491   :  { %v1423_v14 = vpop.f32.mrf.mxu3 }
 0x492   :  { %v1464_v62 = vpack.c.bf16 %v1451_v57, %v1423_v14  ;;  %v5992_v57 = vld [vmem:[%s9086_s8 + $0x34] sm:$0xf]  ;;  %v4692_v14 = vld [vmem:[%s9086_s8 + $0x18] sm:$0xf] }
 0x493   :  { %v1453_v61 = vpop.f32.mrf.mxu0 }
 0x494   :  { %v1497_v3 = vunpack.c.l.b16 %v1464_v62  ;;  %v1605_v8 = vunpack.c.h.b16 %v1464_v62  ;;  %v5989_v62 = vld [vmem:[%s9086_s8 + $0x1c] sm:$0xf] }
 0x499   :  { %v1425_v38 = vpop.f32.mrf.mxu3 }
 0x49a   :  { %v1465_v0 = vpack.c.bf16 %v1453_v61, %v1425_v38  ;;  %v5990_v61 = vld [vmem:[%s9086_s8 + $0x20] sm:$0xf0] }
 0x49b   :  { %v1456_v2 = vpop.f32.mrf.mxu0  ;;  %v4693_v38 = vor.u32 %v5990_v61, %v4692_v14 }
 0x49c   :  { %v1498_v4 = vunpack.c.l.b16 %v1465_v0  ;;  %v1606_v6 = vunpack.c.h.b16 %v1465_v0  ;;  %v4694_v0 = vld [vmem:[%s9086_s8 + $0x24] sm:$0xf0] }
 0x49d   :  { %1758 = vmatpush.bf16.msrb.mxu3 %v4693_v38 }
 0x49e   :  { %v1502_v31 = vpack.c.b16 %v1498_v4, %v1497_v3  ;;  %v1610_v10 = vpack.c.b16 %v1606_v6, %v1605_v8  ;;  %v4680_v4 = vld [vmem:[%s9086_s8] sm:$0xf]  ;;  %v5997_v8 = vld [vmem:[%s9086_s8 + $0x58] sm:$0xf0] }
 0x49f   :  { %v6311_v6 = vld [vmem:[%s9089_s11] ss:$0 sm:$0xff] }
 0x4a0   :  { %1508 = vrot.lane.b32.xlu1 %v1502_v31, %s6344_s30 }
 0x4a1   :  { %v1428_v54 = vpop.f32.mrf.mxu3 }
 0x4a2   :  { %v1466_v5 = vpack.c.bf16 %v1456_v2, %v1428_v54  ;;  %v4697_v2 = vor.u32 %v5989_v62, %v4694_v0  ;;  %v5986_v54 = vld [vmem:[%s9086_s8 + $0x4] sm:$0xf] }
 0x4a3   :  { %v1458_v18 = vpop.f32.mrf.mxu0 }
 0x4a4   :  { %v1499_v27 = vunpack.c.l.b16 %v1466_v5  ;;  %v1607_v44 = vunpack.c.h.b16 %v1466_v5  ;;  %v4682_v18 = vld [vmem:[%s9086_s8 + $0xc] sm:$0xf0] }
 0x4a6   :  { %v1503_v35 = vpack.c.b16 %v1499_v27, %v1499_v27  ;;  %v1611_v23 = vpack.c.b16 %v1607_v44, %v1607_v44  ;;  %v4685_v27 = vor.u32 %v5986_v54, %v4682_v18 }
 0x4a8   :  { %1510 = vrot.lane.b32.xlu0 %v1503_v35, %s6344_s30  ;;  %v1622_v32 = vsel %vm1522_vm6, %v1611_v23, 0  ;;  %v1565_v22 = vsel %vm1522_vm6, %v1503_v35, 0 }
 0x4a9   :  { %v1430_v24 = vpop.f32.mrf.mxu3  ;;  %1628 = vmatpush.bf16.msrb.mxu1 %v1622_v32  ;;  %v4724_v32 = vld [vmem:[%s9086_s8 + $0x50] sm:$0xf] }
 0x4aa   :  { %v4712_v24 = vld [vmem:[%s9086_s8 + $0x38] sm:$0xf]  ;;  %v4725_v26 = vor.u32 %v5997_v8, %v4724_v32  ;;  %v5998_v32 = vld [vmem:[%s9082_s4] sm:$0x70]  ;;  %v4736_v8 = vld [vmem:[%s9082_s4 + $0x8] sm:$0xf] }
 0x4ad   :  { %1629 = vmatpush.bf16.msrb.mxu1 %v1610_v10  ;;  %v5994_v10 = vld [vmem:[%s9086_s8 + $0x40] sm:$0xf0] }
 0x4ae   :  { %v4713_v12 = vor.u32 %v5994_v10, %v4712_v24  ;;  %v5999_v24 = vld [vmem:[%s9082_s4 + $0x8] sm:$0x70] }
 0x4b0   :  { %1504 = vrot.lane.b32.xlu0 %v1500_v13, %s6344_s30 }
 0x4b1   :  { %1630 = vmatpush.bf16.msrb.mxu1 %v1609_v15  ;;  %v4700_v15 = vld [vmem:[%s9086_s8 + $0x20] sm:$0xf] }
 0x4b5   :  { %1631 = vmatpush.bf16.msrb.mxu1 %v1608_v63 }
 0x4b8   :  { %4676 = vmatmul.msk.bf16.vlgmr.msrb.gmra.mxu1 %vm1515_vm7, %v5984_v37 }
 0x4c8   :  { %4677 = vmatmul.msk.bf16.gmra.mxu1 %vm1515_vm7, %v4675_v36 }
 0x4ea   :  { %v1507_v21 = vpop.permute.xlu2 %1506 }
 0x512   :  { %v1509_v20 = vpop.permute.xlu1 %1508 }
 0x51a   :  { %v1511_v19 = vpop.permute.xlu0 %1510 }
 0x51b   :  { %v1524_v60 = vsel %vm1522_vm6, %v1511_v19, 0  ;;  %v4701_v19 = vor.u32 %v5991_v17, %v4700_v15 }
 0x51c   :  { %1530 = vmatpush.bf16.msrb.mxu2 %v1524_v60 }
 0x520   :  { %1531 = vmatpush.bf16.msrb.mxu2 %v1509_v20 }
 0x522   :  { %v1505_v56 = vpop.permute.xlu0 %1504 }
 0x524   :  { %1532 = vmatpush.bf16.msrb.mxu2 %v1507_v21  ;;  %v4688_v21 = vld [vmem:[%s9086_s8 + $0x8] sm:$0xf] }
 0x528   :  { %1533 = vmatpush.bf16.msrb.mxu2 %v1505_v56  ;;  %v5988_v56 = vld [vmem:[%s9086_s8 + $0x10] sm:$0xf0] }
 0x529   :  { %v4689_v25 = vor.u32 %v5988_v56, %v4688_v21 }
 0x52b   :  { %4652 = vmatmul.msk.bf16.vlgmr.msrb.gmra.mxu2 %vm1515_vm7, %v5982_v41 }
 0x52c   :  { %1571 = vmatpush.bf16.msra.mxu2 %v1565_v22 }
 0x530   :  { %1572 = vmatpush.bf16.msra.mxu2 %v1502_v31  ;;  %v5987_v31 = vld [vmem:[%s9086_s8 + $0x8] sm:$0xf0]  ;;  %s4339_s8 = sshll.u32 %s6345_s20, 4  ;;  %s4340_s8 = int_to_ptr.vmem [resolvable:$true] %s4339_s8 }
 0x531   :  { %v4681_v5 = vor.u32 %v5987_v31, %v4680_v4 }
 0x533   :  { %1759 = vmatpush.bf16.msrb.mxu3 %v4681_v5 }
 0x534   :  { %1573 = vmatpush.bf16.msra.mxu2 %v1501_v55  ;;  %v4709_v55 = vor.u32 %v5992_v57, %v4706_v58 }
 0x535   :  { %v1633_v39 = vpop.f32.mrf.mxu1 }
 0x536   :  { %1776 = vmatpush.bf16.msrb.mxu0 %v4709_v55 }
 0x538   :  { %1574 = vmatpush.bf16.msra.mxu2 %v1500_v13 }
 0x53a   :  { %1777 = vmatpush.bf16.msrb.mxu0 %v4697_v2 }
 0x53b   :  { %4653 = vmatmul.msk.bf16.gmra.mxu2 %vm1515_vm7, %v4651_v33 }
 0x53c   :  { %6295 = vmatpush.bf16.msrb.mxu2 %v4721_v29 }
 0x53d   :  { %v1635_v9 = vpop.f32.mrf.mxu1 }
 0x53e   :  { %1778 = vmatpush.bf16.msrb.mxu0 %v4685_v27 }
 0x540   :  { %6296 = vmatpush.bf16.msrb.mxu2 %v4709_v55 }
 0x544   :  { %6297 = vmatpush.bf16.msrb.mxu2 %v4697_v2 }
 0x545   :  { %v1638_v37 = vpop.f32.mrf.mxu1 }
 0x548   :  { %6298 = vmatpush.bf16.msrb.mxu2 %v4685_v27 }
 0x54b   :  { %4662 = vmatmul.msk.bf16.vlgmr.msra.gmra.mxu2 %vm1515_vm7, %v5980_v40 }
 0x54c   :  { %1794 = vmatpush.bf16.msra.mxu2 %v4725_v26 }
 0x550   :  { %1795 = vmatpush.bf16.msra.mxu2 %v4713_v12  ;;  %v4865_v12 = vld [vmem:[%s9091_s13 + $0xe0] sm:$0xf] }
 0x554   :  { %1796 = vmatpush.bf16.msra.mxu2 %v4701_v19  ;;  %v5121_v19 = vld [vmem:[%s9091_s13 + $0x2e0] sm:$0xf] }
 0x558   :  { %1797 = vmatpush.bf16.msra.mxu2 %v4689_v25 }
 0x55b   :  { %4663 = vmatmul.msk.bf16.gmra.mxu2 %vm1515_vm7, %v4661_v46  ;;  %v1640_v46 = vpop.f32.mrf.mxu1 }
 0x5ae   :  { %v1535_v47 = vpop.f32.mrf.mxu2 }
 0x5b6   :  { %v1537_v59 = vpop.f32.mrf.mxu2 }
 0x5be   :  { %v1540_v3 = vpop.f32.mrf.mxu2 }
 0x5c6   :  { %v1542_v44 = vpop.f32.mrf.mxu2 }
 0x5ce   :  { %v1576_v35 = vpop.f32.mrf.mxu2 }
 0x5cf   :  { %v1577_v23 = vadd.f32 %v1576_v35, %v1535_v47  ;;  %v4741_v35 = vld [vmem:[%s9082_s4] sm:$0xf] }
 0x5d0   :  { %v4742_v10 = vor.u32 %v5998_v32, %v4741_v35  ;;  %v4817_v35 = vld [vmem:[%s9091_s13 + $0x80] sm:$0xf]  ;;  %v6051_v32 = vld [vmem:[%s9091_s13 + $0x18c] sm:$0xf0] }
 0x5d1   :  { %v1643_v7 = vadd.f32 %v1633_v39, %v1577_v23 }
 0x5d3   :  { %v1651_v13 = vadd.f32 %v6311_v6, %v1643_v7 }
 0x5d5   :  { %v1655_v60 = vmul.f32 0.2, %v1651_v13 }
 0x5d6   :  { %v1578_v11 = vpop.f32.mrf.mxu2 }
 0x5d7   :  { %v1579_v49 = vadd.f32 %v1578_v11, %v1537_v59  ;;  %v1659_v42 = vmax.f32 %v1651_v13, %v1655_v60  ;;  %v4737_v11 = vor.u32 %v5999_v24, %v4736_v8  ;;  %v6031_v13 = vld [vmem:[%s9091_s13 + $0xec] sm:$0xf0]  ;;  %v5073_v8 = vld [vmem:[%s9091_s13 + $0x280] sm:$0xf] }
 0x5d8   :  { %v4866_v17 = vor.u32 %v6031_v13, %v4865_v12  ;;  %v6095_v60 = vld [vmem:[%s9091_s13 + $0x2ec] sm:$0xf0]  ;;  %v4801_v13 = vld [vmem:[%s9091_s13 + $0x60] sm:$0xf] }
 0x5d9   :  { %v1644_v63 = vadd.f32 %v1635_v9, %v1579_v49  ;;  %v4993_v49 = vld [vmem:[%s9091_s13 + $0x1e0] sm:$0xf]  ;;  %v5122_v21 = vor.u32 %v6095_v60, %v5121_v19  ;;  %v6083_v24 = vld [vmem:[%s9091_s13 + $0x28c] sm:$0xf0] }
 0x5da   :  { %v5057_v19 = vld [vmem:[%s9091_s13 + $0x260] sm:$0xf]  ;;  %v6079_v60 = vld [vmem:[%s9091_s13 + $0x26c] sm:$0xf0] }
 0x5db   :  { %v1652_v20 = vadd.f32 %v6311_v6, %v1644_v63  ;;  %v6063_v63 = vld [vmem:[%s9091_s13 + $0x1ec] sm:$0xf0] }
 0x5dd   :  { %v1656_v41 = vmul.f32 0.2, %v1652_v20 }
 0x5de   :  { %v1581_v22 = vpop.f32.mrf.mxu2 }
 0x5df   :  { %v1660_v33 = vmax.f32 %v1652_v20, %v1656_v41  ;;  %v1582_v1 = vadd.f32 %v1581_v22, %v1540_v3  ;;  %v4994_v20 = vor.u32 %v6063_v63, %v4993_v49  ;;  %v6015_v49 = vld [vmem:[%s9091_s13 + $0x6c] sm:$0xf0] }
 0x5e0   :  { %v6047_v63 = vld [vmem:[%s9091_s13 + $0x16c] sm:$0xf0] }
 0x5e1   :  { %v1663_v34 = vpack.c.bf16 %v1660_v33, %v1659_v42  ;;  %v1645_v36 = vadd.f32 %v1638_v37, %v1582_v1 }
 0x5e3   :  { %4726 = vmatmul.msk.bf16.vlgmr.msrb.gmra.mxu3 %vm1745_vm8, %v1663_v34  ;;  %4728 = vmatmul.msk.bf16.vlgmr.msrb.gmra.mxu0 %vm1745_vm8, %v1663_v34  ;;  %v1653_v43 = vadd.f32 %v6311_v6, %v1645_v36 }
 0x5e5   :  { %v1657_v28 = vmul.f32 0.2, %v1653_v43 }
 0x5e6   :  { %v1583_v40 = vpop.f32.mrf.mxu2 }
 0x5e7   :  { %v1584_v45 = vadd.f32 %v1583_v40, %v1542_v44  ;;  %v1661_v53 = vmax.f32 %v1653_v43, %v1657_v28  ;;  %v5249_v40 = vld [vmem:[%s9091_s13 + $0x3e0] sm:$0xf]  ;;  %v6127_v43 = vld [vmem:[%s9091_s13 + $0x3ec] sm:$0xf0]  ;;  %v6000_v28 = vld [vmem:[%s9082_s4 + $0x10] sm:$0x70] }
 0x5e9   :  { %v1646_v47 = vadd.f32 %v1640_v46, %v1584_v45 }
 0x5eb   :  { %v1654_v50 = vadd.f32 %v6311_v6, %v1646_v47  ;;  %v4748_v47 = vld [vmem:[%s9082_s4 + $0x10] sm:$0xf] }
 0x5ed   :  { %v1658_v51 = vmul.f32 0.2, %v1654_v50 }
 0x5ef   :  { %v1662_v48 = vmax.f32 %v1654_v50, %v1658_v51  ;;  %v5250_v50 = vor.u32 %v6127_v43, %v5249_v40 }
 0x5f1   :  { %v1664_v29 = vpack.c.bf16 %v1662_v48, %v1661_v53  ;;  %v4749_v53 = vor.u32 %v6000_v28, %v4748_v47  ;;  %v4849_v48 = vld [vmem:[%s9091_s13 + $0xc0] sm:$0xf] }
 0x5f2   :  { %v4769_v28 = vld [vmem:[%s9091_s13 + $0x20] sm:$0xf] }
 0x5f3   :  { %4727 = vmatmul.msk.bf16.gmra.mxu3 %vm1745_vm8, %v1664_v29  ;;  %4729 = vmatmul.msk.bf16.vlgmr.msrb.gmra.mxu2 %vm1745_vm8, %v1664_v29 }
 0x5f4   :  { %3354 = vmatpush.bf16.msrb.mxu2 %v4866_v17  ;;  %v4802_v17 = vor.u32 %v6015_v49, %v4801_v13  ;;  %v6155_v13 = vld [vmem:[%s9091_s13 + $0x4cc] sm:$0xf0]  ;;  %v5489_v49 = vld [vmem:[%s9091_s13 + $0x5c0] sm:$0xf] }
 0x603   :  { %4730 = vmatmul.msk.bf16.vlgmr.msra.gmra.mxu2 %vm1745_vm8, %v1663_v34 }
 0x613   :  { %4731 = vmatmul.msk.bf16.gmra.mxu2 %vm1745_vm8, %v1664_v29  ;;  %v6027_v29 = vld [vmem:[%s9091_s13 + $0xcc] sm:$0xf0] }
 0x660   :  { %v1780_v30 = vpop.f32.mrf.mxu0 }
 0x666   :  { %v1761_v59 = vpop.f32.mrf.mxu3 }
 0x667   :  { %v1809_v31 = vpack.c.bf16 %v1780_v30, %v1761_v59  ;;  %v4977_v59 = vld [vmem:[%s9091_s13 + $0x1c0] sm:$0xf]  ;;  %v6059_v30 = vld [vmem:[%s9091_s13 + $0x1cc] sm:$0xf0] }
 0x668   :  { %v1782_v61 = vpop.f32.mrf.mxu0 }
 0x669   :  { %v1831_v23 = vunpack.c.h.b16 %v1809_v31  ;;  %v1865_v6 = vunpack.c.l.b16 %v1809_v31  ;;  %v5089_v31 = vld [vmem:[%s9091_s13 + $0x2a0] sm:$0xf] }
 0x66e   :  { %v1763_v52 = vpop.f32.mrf.mxu3 }
 0x66f   :  { %v1811_v38 = vpack.c.bf16 %v1782_v61, %v1763_v52  ;;  %v4850_v52 = vor.u32 %v6027_v29, %v4849_v48  ;;  %v6123_v61 = vld [vmem:[%s9091_s13 + $0x3cc] sm:$0xf0]  ;;  %v5025_v29 = vld [vmem:[%s9091_s13 + $0x220] sm:$0xf] }
 0x670   :  { %v6039_v48 = vld [vmem:[%s9091_s13 + $0x12c] sm:$0xf0] }
 0x671   :  { %v1832_v18 = vunpack.c.h.b16 %v1811_v38  ;;  %v1866_v27 = vunpack.c.l.b16 %v1811_v38  ;;  %3355 = vmatpush.bf16.msrb.mxu2 %v4850_v52  ;;  %v4833_v38 = vld [vmem:[%s9091_s13 + $0xa0] sm:$0xf] }
 0x673   :  { %v1835_v9 = vpack.c.b16 %v1832_v18, %v1831_v23  ;;  %v1869_v26 = vpack.c.b16 %v1866_v27, %v1865_v6  ;;  %v5217_v27 = vld [vmem:[%s9091_s13 + $0x3a0] sm:$0xf]  ;;  %v6019_v23 = vld [vmem:[%s9091_s13 + $0x8c] sm:$0xf0] }
 0x674   :  { %v4945_v6 = vld [vmem:[%s9091_s13 + $0x180] sm:$0xf] }
 0x676   :  { %v1766_v57 = vpop.f32.mrf.mxu3  ;;  %v1785_v16 = vpop.f32.mrf.mxu2 }
 0x677   :  { %v1813_v58 = vpack.c.bf16 %v1785_v16, %v1766_v57  ;;  %v5105_v57 = vld [vmem:[%s9091_s13 + $0x2c0] sm:$0xf]  ;;  %v6091_v16 = vld [vmem:[%s9091_s13 + $0x2cc] sm:$0xf0] }
 0x679   :  { %v1833_v0 = vunpack.c.h.b16 %v1813_v58  ;;  %v1867_v2 = vunpack.c.l.b16 %v1813_v58  ;;  %v4978_v58 = vor.u32 %v6059_v30, %v4977_v59  ;;  %v6071_v59 = vld [vmem:[%s9091_s13 + $0x22c] sm:$0xf0] }
 0x67a   :  { %v5026_v30 = vor.u32 %v6071_v59, %v5025_v29  ;;  %v5329_v59 = vld [vmem:[%s9091_s13 + $0x480] sm:$0xf] }
 0x67e   :  { %v1768_v55 = vpop.f32.mrf.mxu3  ;;  %v1787_v14 = vpop.f32.mrf.mxu2 }
 0x67f   :  { %v1815_v62 = vpack.c.bf16 %v1787_v14, %v1768_v55  ;;  %v5106_v55 = vor.u32 %v6091_v16, %v5105_v57  ;;  %v5233_v14 = vld [vmem:[%s9091_s13 + $0x3c0] sm:$0xf]  ;;  %v6103_v16 = vld [vmem:[%s9091_s13 + $0x32c] sm:$0xf0] }
 0x680   :  { %v5153_v57 = vld [vmem:[%s9091_s13 + $0x320] sm:$0xf] }
 0x681   :  { %v1834_v3 = vunpack.c.h.b16 %v1815_v62  ;;  %v1868_v4 = vunpack.c.l.b16 %v1815_v62  ;;  %v5234_v62 = vor.u32 %v6123_v61, %v5233_v14  ;;  %v6003_v14 = vld [vmem:[%s9091_s13 + $0xc] sm:$0xf0]  ;;  %v4881_v61 = vld [vmem:[%s9091_s13 + $0x100] sm:$0xf] }
 0x683   :  { %v1836_v54 = vpack.c.b16 %v1834_v3, %v1833_v0  ;;  %v1870_v5 = vpack.c.b16 %v1868_v4, %v1867_v2  ;;  %v6023_v0 = vld [vmem:[%s9091_s13 + $0xac] sm:$0xf0]  ;;  %v4961_v2 = vld [vmem:[%s9091_s13 + $0x1a0] sm:$0xf] }
 0x684   :  { %v4834_v3 = vor.u32 %v6023_v0, %v4833_v38  ;;  %v6055_v4 = vld [vmem:[%s9091_s13 + $0x1ac] sm:$0xf0]  ;;  %v5009_v0 = vld [vmem:[%s9091_s13 + $0x200] sm:$0xf] }
 0x685   :  { %v1844_v44 = vsel %vm1842_vm9, %v1836_v54, 0  ;;  %v1876_v39 = vsel %vm1842_vm9, %v1870_v5, 0  ;;  %v6087_v54 = vld [vmem:[%s9091_s13 + $0x2ac] sm:$0xf0]  ;;  %v4962_v5 = vor.u32 %v6055_v4, %v4961_v2 }
 0x686   :  { %v1799_v7 = vpop.f32.mrf.mxu2  ;;  %1852 = vmatpush.bf16.msra.mxu1 %v1844_v44  ;;  %1884 = vmatpush.bf16.msra.mxu3 %v1876_v39  ;;  %v5090_v18 = vor.u32 %v6087_v54, %v5089_v31  ;;  %v6119_v44 = vld [vmem:[%s9091_s13 + $0x3ac] sm:$0xf0]  ;;  %v5137_v31 = vld [vmem:[%s9091_s13 + $0x300] sm:$0xf] }
 0x687   :  { %v1810_v1 = vpack.c.bf16 %v1799_v7, %v1799_v7  ;;  %3356 = vmatpush.bf16.msrb.mxu2 %v4834_v3  ;;  %v5218_v39 = vor.u32 %v6119_v44, %v5217_v27  ;;  %v4818_v7 = vor.u32 %v6019_v23, %v4817_v35  ;;  %v6035_v38 = vld [vmem:[%s9091_s13 + $0x10c] sm:$0xf0]  ;;  %v5505_v44 = vld [vmem:[%s9091_s13 + $0x5e0] sm:$0xf] }
 0x688   :  { %v6067_v2 = vld [vmem:[%s9091_s13 + $0x20c] sm:$0xf0]  ;;  %v4882_v3 = vor.u32 %v6035_v38, %v4881_v61  ;;  %v6017_v38 = vld [vmem:[%s9091_s13 + $0x84] sm:$0xf] }
 0x689   :  { %v1904_v46 = vunpack.c.l.b16 %v1810_v1  ;;  %v6043_v1 = vld [vmem:[%s9091_s13 + $0x14c] sm:$0xf0]  ;;  %v5010_v4 = vor.u32 %v6067_v2, %v5009_v0  ;;  %v4819_v0 = vld [vmem:[%s9091_s13 + $0x90] sm:$0xf0] }
 0x68a   :  { %1853 = vmatpush.bf16.msra.mxu1 %v1835_v9  ;;  %1885 = vmatpush.bf16.msra.mxu3 %v1869_v26  ;;  %v4946_v9 = vor.u32 %v6051_v32, %v4945_v6  ;;  %v5074_v26 = vor.u32 %v6083_v24, %v5073_v8  ;;  %v6099_v54 = vld [vmem:[%s9091_s13 + $0x30c] sm:$0xf0]  ;;  %v5633_v32 = vld [vmem:[%s9091_s13 + $0x6e0] sm:$0xf]  ;;  %v6029_v24 = vld [vmem:[%s9091_s13 + $0xe4] sm:$0xf] }
 0x68b   :  { %3357 = vmatpush.bf16.msrb.mxu2 %v4818_v7  ;;  %v6159_v27 = vld [vmem:[%s9091_s13 + $0x4ec] sm:$0xf0] }
 0x68c   :  { %v6223_v8 = vld [vmem:[%s9091_s13 + $0x6ec] sm:$0xf0] }
 0x68d   :  { %4743 = vmatmul.msk.bf16.vlgmr.msra.gmra.mxu3 %vm1838_vm10, %v4742_v10  ;;  %4738 = vmatmul.msk.bf16.vlgmr.msra.gmra.mxu1 %vm1838_vm10, %v4737_v11  ;;  %v5201_v10 = vld [vmem:[%s9091_s13 + $0x380] sm:$0xf]  ;;  %v6115_v11 = vld [vmem:[%s9091_s13 + $0x38c] sm:$0xf0] }
 0x68e   :  { %v1801_v15 = vpop.f32.mrf.mxu2  ;;  %3367 = vmatpush.bf16.msrb.mxu1 %v4994_v20  ;;  %3380 = vmatpush.bf16.msrb.mxu3 %v5122_v21  ;;  %v5202_v12 = vor.u32 %v6115_v11, %v5201_v10  ;;  %v5058_v21 = vor.u32 %v6079_v60, %v5057_v19  ;;  %v6219_v19 = vld [vmem:[%s9091_s13 + $0x6cc] sm:$0xf0]  ;;  %v6312_v60 = vld [vmem:[%s9090_s12] ss:$0 sm:$0xff] }
 0x68f   :  { %v1812_v25 = vpack.c.bf16 %v1801_v15, %v1801_v15  ;;  %v4929_v15 = vld [vmem:[%s9091_s13 + $0x160] sm:$0xf]  ;;  %3358 = vmatpush.bf16.msrb.mxu2 %v4802_v17  ;;  %v6187_v17 = vld [vmem:[%s9091_s13 + $0x5cc] sm:$0xf0] }
 0x690   :  { %v4930_v20 = vor.u32 %v6047_v63, %v4929_v15  ;;  %v5617_v63 = vld [vmem:[%s9091_s13 + $0x6c0] sm:$0xf] }
 0x691   :  { %v1905_v36 = vunpack.c.l.b16 %v1812_v25  ;;  %v6011_v25 = vld [vmem:[%s9091_s13 + $0x4c] sm:$0xf0] }
 0x692   :  { %3368 = vmatpush.bf16.msrb.mxu1 %v4978_v58  ;;  %3381 = vmatpush.bf16.msrb.mxu3 %v5106_v55  ;;  %v5154_v58 = vor.u32 %v6103_v16, %v5153_v57  ;;  %v4753_v55 = vld [vmem:[%s9091_s13] sm:$0xf]  ;;  %v6179_v16 = vld [vmem:[%s9091_s13 + $0x58c] sm:$0xf0] }
 0x693   :  { %v1908_v51 = vpack.c.b16 %v1905_v36, %v1904_v46  ;;  %v6075_v36 = vld [vmem:[%s9091_s13 + $0x24c] sm:$0xf0]  ;;  %v5457_v57 = vld [vmem:[%s9091_s13 + $0x580] sm:$0xf] }
 0x694   :  { %v6107_v46 = vld [vmem:[%s9091_s13 + $0x34c] sm:$0xf0]  ;;  %v5458_v61 = vor.u32 %v6179_v16, %v5457_v57 }
 0x696   :  { %v1804_v56 = vpop.f32.mrf.mxu2  ;;  %3369 = vmatpush.bf16.msrb.mxu1 %v4962_v5  ;;  %3382 = vmatpush.bf16.msrb.mxu3 %v5090_v18  ;;  %v5377_v5 = vld [vmem:[%s9091_s13 + $0x4e0] sm:$0xf]  ;;  %v5138_v18 = vor.u32 %v6099_v54, %v5137_v31 }
 0x697   :  { %v1814_v41 = vpack.c.bf16 %v1804_v56, %v1804_v56  ;;  %v5185_v56 = vld [vmem:[%s9091_s13 + $0x360] sm:$0xf]  ;;  %v5378_v6 = vor.u32 %v6159_v27, %v5377_v5  ;;  %v6143_v5 = vld [vmem:[%s9091_s13 + $0x46c] sm:$0xf0] }
 0x698   :  { %v5313_v54 = vld [vmem:[%s9091_s13 + $0x460] sm:$0xf] }
 0x699   :  { %v1906_v42 = vunpack.c.l.b16 %v1814_v41  ;;  %v6111_v41 = vld [vmem:[%s9091_s13 + $0x36c] sm:$0xf0]  ;;  %v5441_v27 = vld [vmem:[%s9091_s13 + $0x560] sm:$0xf] }
 0x69a   :  { %3370 = vmatpush.bf16.msrb.mxu1 %v4946_v9  ;;  %3383 = vmatpush.bf16.msrb.mxu3 %v5074_v26  ;;  %v5634_v9 = vor.u32 %v6223_v8, %v5633_v32  ;;  %v4867_v26 = vld [vmem:[%s9091_s13 + $0xf0] sm:$0xf0]  ;;  %v6013_v32 = vld [vmem:[%s9091_s13 + $0x64] sm:$0xf] }
 0x69b   :  { %v4870_v10 = vor.u32 %v6029_v24, %v4867_v26  ;;  %v4803_v8 = vld [vmem:[%s9091_s13 + $0x70] sm:$0xf0]  ;;  %v5297_v26 = vld [vmem:[%s9091_s13 + $0x440] sm:$0xf] }
 0x69e   :  { %v1806_v22 = vpop.f32.mrf.mxu2  ;;  %3371 = vmatpush.bf16.msrb.mxu1 %v4930_v20  ;;  %3384 = vmatpush.bf16.msrb.mxu3 %v5058_v21  ;;  %v5490_v20 = vor.u32 %v6187_v17, %v5489_v49  ;;  %v5618_v21 = vor.u32 %v6219_v19, %v5617_v63  ;;  %v5553_v49 = vld [vmem:[%s9091_s13 + $0x640] sm:$0xf]  ;;  %v6203_v63 = vld [vmem:[%s9091_s13 + $0x64c] sm:$0xf0]  ;;  %v6009_v19 = vld [vmem:[%s9091_s13 + $0x44] sm:$0xf] }
 0x69f   :  { %v1816_v37 = vpack.c.bf16 %v1806_v22, %v1806_v22  ;;  %v5186_v22 = vor.u32 %v6111_v41, %v5185_v56  ;;  %v6025_v56 = vld [vmem:[%s9091_s13 + $0xc4] sm:$0xf]  ;;  %v4851_v41 = vld [vmem:[%s9091_s13 + $0xd0] sm:$0xf0] }
 0x6a1   :  { %v1907_v33 = vunpack.c.l.b16 %v1816_v37  ;;  %v4785_v37 = vld [vmem:[%s9091_s13 + $0x40] sm:$0xf] }
 0x6a3   :  { %v1909_v34 = vpack.c.b16 %v1907_v33, %v1906_v42  ;;  %v4913_v42 = vld [vmem:[%s9091_s13 + $0x140] sm:$0xf]  ;;  %v4786_v33 = vor.u32 %v6011_v25, %v4785_v37  ;;  %v4854_v37 = vor.u32 %v6025_v56, %v4851_v41 }
 0x6a4   :  { %v4914_v40 = vor.u32 %v6043_v1, %v4913_v42  ;;  %v5345_v42 = vld [vmem:[%s9091_s13 + $0x4a0] sm:$0xf] }
 0x6a5   :  { %v1915_v45 = vsel %vm1842_vm9, %v1909_v34, 0  ;;  %v5041_v34 = vld [vmem:[%s9091_s13 + $0x240] sm:$0xf]  ;;  %3359 = vmatpush.bf16.msrb.mxu2 %v4786_v33  ;;  %v6151_v33 = vld [vmem:[%s9091_s13 + $0x4ac] sm:$0xf0] }
 0x6a6   :  { %1923 = vmatpush.bf16.msra.mxu0 %v1915_v45  ;;  %v5042_v43 = vor.u32 %v6075_v36, %v5041_v34  ;;  %v5169_v45 = vld [vmem:[%s9091_s13 + $0x340] sm:$0xf]  ;;  %3372 = vmatpush.bf16.msrb.mxu1 %v4914_v40  ;;  %v5346_v34 = vor.u32 %v6151_v33, %v5345_v42  ;;  %v6183_v36 = vld [vmem:[%s9091_s13 + $0x5ac] sm:$0xf0] }
 0x6a7   :  { %v5170_v47 = vor.u32 %v6107_v46, %v5169_v45  ;;  %v5473_v1 = vld [vmem:[%s9091_s13 + $0x5a0] sm:$0xf]  ;;  %v6167_v42 = vld [vmem:[%s9091_s13 + $0x52c] sm:$0xf0] }
 0x6a8   :  { %3385 = vmatpush.bf16.msrb.mxu3 %v5042_v43  ;;  %v5601_v40 = vld [vmem:[%s9091_s13 + $0x6a0] sm:$0xf]  ;;  %v6215_v43 = vld [vmem:[%s9091_s13 + $0x6ac] sm:$0xf0]  ;;  %v5474_v46 = vor.u32 %v6183_v36, %v5473_v1  ;;  %v6005_v36 = vld [vmem:[%s9091_s13 + $0x24] sm:$0xf] }
 0x6a9   :  { %v5281_v41 = vld [vmem:[%s9091_s13 + $0x420] sm:$0xf] }
 0x6aa   :  { %1924 = vmatpush.bf16.msra.mxu0 %v1908_v51  ;;  %v4897_v51 = vld [vmem:[%s9091_s13 + $0x120] sm:$0xf] }
 0x6ab   :  { %v4898_v52 = vor.u32 %v6039_v48, %v4897_v51  ;;  %v5537_v1 = vld [vmem:[%s9091_s13 + $0x620] sm:$0xf] }
 0x6ac   :  { %3386 = vmatpush.bf16.msrb.mxu3 %v5026_v30 }
 0x6ad   :  { %4750 = vmatmul.msk.bf16.vlgmr.msra.gmra.mxu0 %vm1838_vm10, %v4749_v53  ;;  %3373 = vmatpush.bf16.msrb.mxu1 %v4898_v52  ;;  %v6147_v52 = vld [vmem:[%s9091_s13 + $0x48c] sm:$0xf0] }
 0x6ae   :  { %3393 = vmatpush.bf16.msrb.mxu0 %v5250_v50  ;;  %v6007_v50 = vld [vmem:[%s9091_s13 + $0x2c] sm:$0xf0]  ;;  %v5330_v30 = vor.u32 %v6147_v52, %v5329_v59  ;;  %v6001_v59 = vld [vmem:[%s9091_s13 + $0x4] sm:$0xf]  ;;  %v4755_v52 = vld [vmem:[%s9091_s13 + $0x10] sm:$0xf0] }
 0x6af   :  { %v4770_v53 = vor.u32 %v6007_v50, %v4769_v28  ;;  %v6021_v28 = vld [vmem:[%s9091_s13 + $0xa4] sm:$0xf]  ;;  %v4835_v50 = vld [vmem:[%s9091_s13 + $0xb0] sm:$0xf0]  ;;  %v4758_v57 = vor.u32 %v6001_v59, %v4755_v52 }
 0x6b0   :  { %3387 = vmatpush.bf16.msrb.mxu3 %v5010_v4  ;;  %v4838_v48 = vor.u32 %v6021_v28, %v4835_v50  ;;  %v4822_v4 = vor.u32 %v6017_v38, %v4819_v0  ;;  %v5393_v50 = vld [vmem:[%s9091_s13 + $0x500] sm:$0xf]  ;;  %v4995_v38 = vld [vmem:[%s9091_s13 + $0x1f0] sm:$0xf0]  ;;  %v6077_v52 = vld [vmem:[%s9091_s13 + $0x264] sm:$0xf] }
 0x6b1   :  { %3360 = vmatpush.bf16.msrb.mxu2 %v4770_v53  ;;  %3374 = vmatpush.bf16.msrb.mxu1 %v4882_v3  ;;  %v5123_v0 = vld [vmem:[%s9091_s13 + $0x2f0] sm:$0xf0] }
 0x6b2   :  { %3394 = vmatpush.bf16.msrb.mxu0 %v5234_v62  ;;  %v4754_v62 = vor.u32 %v6003_v14, %v4753_v55  ;;  %v4931_v59 = vld [vmem:[%s9091_s13 + $0x170] sm:$0xf0] }
 0x6b4   :  { %3432 = vmatpush.bf16.msra.mxu3 %v5634_v9  ;;  %v4806_v9 = vor.u32 %v6013_v32, %v4803_v8 }
 0x6b5   :  { %3361 = vmatpush.bf16.msrb.mxu2 %v4754_v62  ;;  %v6211_v62 = vld [vmem:[%s9091_s13 + $0x68c] sm:$0xf0] }
 0x6b6   :  { %3395 = vmatpush.bf16.msrb.mxu0 %v5218_v39  ;;  %v6191_v39 = vld [vmem:[%s9091_s13 + $0x5ec] sm:$0xf0] }
 0x6b7   :  { %v5506_v7 = vor.u32 %v6191_v39, %v5505_v44  ;;  %v6175_v39 = vld [vmem:[%s9091_s13 + $0x56c] sm:$0xf0] }
 0x6b8   :  { %3433 = vmatpush.bf16.msra.mxu3 %v5618_v21 }
 0x6b9   :  { %3406 = vmatpush.bf16.msra.mxu2 %v5378_v6  ;;  %3419 = vmatpush.bf16.msra.mxu1 %v5506_v7  ;;  %v5442_v6 = vor.u32 %v6175_v39, %v5441_v27  ;;  %v4979_v27 = vld [vmem:[%s9091_s13 + $0x1d0] sm:$0xf0] }
 0x6ba   :  { %3396 = vmatpush.bf16.msrb.mxu0 %v5202_v12  ;;  %v5361_v12 = vld [vmem:[%s9091_s13 + $0x4c0] sm:$0xf] }
 0x6bb   :  { %v5362_v15 = vor.u32 %v6155_v13, %v5361_v12  ;;  %v5425_v12 = vld [vmem:[%s9091_s13 + $0x540] sm:$0xf]  ;;  %v6171_v13 = vld [vmem:[%s9091_s13 + $0x54c] sm:$0xf0] }
 0x6bc   :  { %v5426_v17 = vor.u32 %v6171_v13, %v5425_v12  ;;  %v6121_v12 = vld [vmem:[%s9091_s13 + $0x3c4] sm:$0xf]  ;;  %v5235_v13 = vld [vmem:[%s9091_s13 + $0x3d0] sm:$0xf0] }
 0x6bd   :  { %3407 = vmatpush.bf16.msra.mxu2 %v5362_v15  ;;  %3420 = vmatpush.bf16.msra.mxu1 %v5490_v20  ;;  %v5554_v20 = vor.u32 %v6203_v63, %v5553_v49  ;;  %v6153_v49 = vld [vmem:[%s9091_s13 + $0x4c4] sm:$0xf] }
 0x6be   :  { %3397 = vmatpush.bf16.msrb.mxu0 %v5186_v22  ;;  %v6053_v63 = vld [vmem:[%s9091_s13 + $0x1a4] sm:$0xf] }
 0x6c1   :  { %3408 = vmatpush.bf16.msra.mxu2 %v5346_v34  ;;  %3421 = vmatpush.bf16.msra.mxu1 %v5474_v46  ;;  %v6199_v34 = vld [vmem:[%s9091_s13 + $0x62c] sm:$0xf0] }
 0x6c2   :  { %3398 = vmatpush.bf16.msrb.mxu0 %v5170_v47  ;;  %v5602_v47 = vor.u32 %v6215_v43, %v5601_v40  ;;  %v5538_v40 = vor.u32 %v6199_v34, %v5537_v1  ;;  %v4771_v43 = vld [vmem:[%s9091_s13 + $0x30] sm:$0xf0]  ;;  %v6131_v46 = vld [vmem:[%s9091_s13 + $0x40c] sm:$0xf0] }
 0x6c4   :  { %3434 = vmatpush.bf16.msra.mxu3 %v5602_v47  ;;  %v4774_v47 = vor.u32 %v6005_v36, %v4771_v43  ;;  %v4947_v43 = vld [vmem:[%s9091_s13 + $0x190] sm:$0xf0] }
 0x6c5   :  { %3409 = vmatpush.bf16.msra.mxu2 %v5330_v30  ;;  %3422 = vmatpush.bf16.msra.mxu1 %v5458_v61 }
 0x6c6   :  { %3399 = vmatpush.bf16.msrb.mxu0 %v5154_v58  ;;  %v5585_v58 = vld [vmem:[%s9091_s13 + $0x680] sm:$0xf] }
 0x6c7   :  { %v5586_v3 = vor.u32 %v6211_v62, %v5585_v58  ;;  %v6061_v62 = vld [vmem:[%s9091_s13 + $0x1e4] sm:$0xf] }
 0x6c9   :  { %3435 = vmatpush.bf16.msra.mxu3 %v5586_v3  ;;  %3423 = vmatpush.bf16.msra.mxu1 %v5442_v6  ;;  %v5251_v3 = vld [vmem:[%s9091_s13 + $0x3f0] sm:$0xf0] }
 0x6ca   :  { %3400 = vmatpush.bf16.msrb.mxu0 %v5138_v18  ;;  %v5314_v18 = vor.u32 %v6143_v5, %v5313_v54  ;;  %v5379_v54 = vld [vmem:[%s9091_s13 + $0x4f0] sm:$0xf0] }
 0x6cc   :  { %3410 = vmatpush.bf16.msra.mxu2 %v5314_v18  ;;  %v6057_v18 = vld [vmem:[%s9091_s13 + $0x1c4] sm:$0xf] }
 0x6cd   :  { %3424 = vmatpush.bf16.msra.mxu1 %v5426_v17  ;;  %v4982_v17 = vor.u32 %v6057_v18, %v4979_v27  ;;  %v6041_v27 = vld [vmem:[%s9091_s13 + $0x144] sm:$0xf] }
 0x6ce   :  { %3445 = vmatpush.bf16.msra.mxu0 %v4870_v10  ;;  %v6139_v10 = vld [vmem:[%s9091_s13 + $0x44c] sm:$0xf0] }
 0x6d2   :  { %3446 = vmatpush.bf16.msra.mxu0 %v4854_v37  ;;  %v5409_v37 = vld [vmem:[%s9091_s13 + $0x520] sm:$0xf] }
 0x6d3   :  { %v5410_v33 = vor.u32 %v6167_v42, %v5409_v37  ;;  %v6117_v37 = vld [vmem:[%s9091_s13 + $0x3a4] sm:$0xf] }
 0x6d4   :  { %v6149_v42 = vld [vmem:[%s9091_s13 + $0x4a4] sm:$0xf] }
 0x6d5   :  { %3425 = vmatpush.bf16.msra.mxu1 %v5410_v33  ;;  %v5347_v33 = vld [vmem:[%s9091_s13 + $0x4b0] sm:$0xf0] }
 0x6d6   :  { %3447 = vmatpush.bf16.msra.mxu0 %v4838_v48 }
 0x6da   :  { %3448 = vmatpush.bf16.msra.mxu0 %v4822_v4 }
 0x6de   :  { %3449 = vmatpush.bf16.msra.mxu0 %v4806_v9  ;;  %v6089_v9 = vld [vmem:[%s9091_s13 + $0x2c4] sm:$0xf] }
 0x70a   :  { %v1855_v35 = vpop.f32.mrf.mxu1 }
 0x710   :  { %v1887_v23 = vpop.f32.mrf.mxu3 }
 0x711   :  { %v1888_v11 = vadd.f32 %v1887_v23, %v1855_v35  ;;  %v5569_v35 = vld [vmem:[%s9091_s13 + $0x660] sm:$0xf]  ;;  %v6207_v23 = vld [vmem:[%s9091_s13 + $0x66c] sm:$0xf0] }
 0x712   :  { %v1857_v51 = vpop.f32.mrf.mxu1  ;;  %v5570_v7 = vor.u32 %v6207_v23, %v5569_v35  ;;  %v4998_v23 = vor.u32 %v6061_v62, %v4995_v38 }
 0x714   :  { %3436 = vmatpush.bf16.msra.mxu3 %v5570_v7 }
 0x718   :  { %v1889_v53 = vpop.f32.mrf.mxu3  ;;  %3437 = vmatpush.bf16.msra.mxu3 %v5554_v20  ;;  %v4963_v20 = vld [vmem:[%s9091_s13 + $0x1b0] sm:$0xf0] }
 0x719   :  { %v1890_v14 = vadd.f32 %v1889_v53, %v1857_v51  ;;  %v6163_v51 = vld [vmem:[%s9091_s13 + $0x50c] sm:$0xf0]  ;;  %v5521_v53 = vld [vmem:[%s9091_s13 + $0x600] sm:$0xf]  ;;  %v4966_v1 = vor.u32 %v6053_v63, %v4963_v20  ;;  %v5155_v20 = vld [vmem:[%s9091_s13 + $0x330] sm:$0xf0] }
 0x71a   :  { %v5394_v48 = vor.u32 %v6163_v51, %v5393_v50  ;;  %v5203_v50 = vld [vmem:[%s9091_s13 + $0x390] sm:$0xf0]  ;;  %v6145_v51 = vld [vmem:[%s9091_s13 + $0x484] sm:$0xf] }
 0x71c   :  { %3438 = vmatpush.bf16.msra.mxu3 %v5538_v40  ;;  %3426 = vmatpush.bf16.msra.mxu1 %v5394_v48  ;;  %v6049_v40 = vld [vmem:[%s9091_s13 + $0x184] sm:$0xf] }
 0x71d   :  { %v6045_v48 = vld [vmem:[%s9091_s13 + $0x164] sm:$0xf] }
 0x72a   :  { %v1926_v22 = vpop.f32.mrf.mxu0 }
 0x72b   :  { %v1931_v25 = vadd.f32 %v1926_v22, %v1888_v11  ;;  %v5298_v11 = vor.u32 %v6139_v10, %v5297_v26  ;;  %v6135_v22 = vld [vmem:[%s9091_s13 + $0x42c] sm:$0xf0] }
 0x72d   :  { %v1937_v45 = vadd.f32 %v6312_v60, %v1931_v25  ;;  %3411 = vmatpush.bf16.msra.mxu2 %v5298_v11  ;;  %v5282_v25 = vor.u32 %v6135_v22, %v5281_v41  ;;  %v5107_v11 = vld [vmem:[%s9091_s13 + $0x2d0] sm:$0xf0] }
 0x72f   :  { %v1939_v29 = vmul.f32 0.2, %v1937_v45 }
 0x731   :  { %v7530_v55 = vmax.f32 %v1937_v45, %v1939_v29  ;;  %3412 = vmatpush.bf16.msra.mxu2 %v5282_v25  ;;  %v5265_v45 = vld [vmem:[%s9091_s13 + $0x400] sm:$0xf]  ;;  %v6195_v29 = vld [vmem:[%s9091_s13 + $0x60c] sm:$0xf0]  ;;  %v5219_v25 = vld [vmem:[%s9091_s13 + $0x3b0] sm:$0xf0] }
 0x732   :  { %v1928_v2 = vpop.f32.mrf.mxu0  ;;  %v5266_v28 = vor.u32 %v6131_v46, %v5265_v45  ;;  %v5522_v30 = vor.u32 %v6195_v29, %v5521_v53  ;;  %v5222_v36 = vor.u32 %v6117_v37, %v5219_v25  ;;  %v6081_v45 = vld [vmem:[%s9091_s13 + $0x284] sm:$0xf]  ;;  %v5350_v46 = vor.u32 %v6149_v42, %v5347_v33  ;;  %v5331_v53 = vld [vmem:[%s9091_s13 + $0x490] sm:$0xf0] }
 0x733   :  { %1943 = vst [vmem:[#allocation2] sm:$0x3] %v7530_v55  ;;  %v1932_v31 = vadd.f32 %v1928_v2, %v1890_v14  ;;  %v6125_v2 = vld [vmem:[%s9091_s13 + $0x3e4] sm:$0xf]  ;;  %v4950_v29 = vor.u32 %v6049_v40, %v4947_v43  ;;  %v5334_v62 = vor.u32 %v6145_v51, %v5331_v53  ;;  %v4883_v37 = vld [vmem:[%s9091_s13 + $0x110] sm:$0xf0] }
 0x734   :  { %1945 = vst.sshfl [vmem:[#allocation1] sm:$0xff pattern:$0x73625140] %v7530_v55  ;;  %3439 = vmatpush.bf16.msra.mxu3 %v5522_v30  ;;  %v5059_v30 = vld [vmem:[%s9091_s13 + $0x270] sm:$0xf0] }
 0x735   :  { %v1938_v44 = vadd.f32 %v6312_v60, %v1932_v31  ;;  %v4787_v60 = vld [vmem:[%s9091_s13 + $0x50] sm:$0xf0]  ;;  %3413 = vmatpush.bf16.msra.mxu2 %v5266_v28  ;;  %v6157_v31 = vld [vmem:[%s9091_s13 + $0x4e4] sm:$0xf]  ;;  %v4873_v53 = vld [vmem:[%s9091_s13 + $0xe8] sm:$0xf] }
 0x736   :  { %v4790_v21 = vor.u32 %v6009_v19, %v4787_v60  ;;  %v5382_v10 = vor.u32 %v6157_v31, %v5379_v54  ;;  %v5110_v19 = vor.u32 %v6089_v9, %v5107_v11  ;;  %v5238_v60 = vor.u32 %v6121_v12, %v5235_v13  ;;  %v6113_v28 = vld [vmem:[%s9091_s13 + $0x384] sm:$0xf]  ;;  %v5139_v40 = vld [vmem:[%s9091_s13 + $0x310] sm:$0xf0] }
 0x737   :  { %v1940_v24 = vmul.f32 0.2, %v1938_v44  ;;  %v4934_v54 = vor.u32 %v6045_v48, %v4931_v59  ;;  %v6137_v9 = vld [vmem:[%s9091_s13 + $0x444] sm:$0xf]  ;;  %v5635_v51 = vld [vmem:[%s9091_s13 + $0x6f0] sm:$0xf0] }
 0x738   :  { %3450 = vmatpush.bf16.msra.mxu0 %v4790_v21  ;;  %v6085_v21 = vld [vmem:[%s9091_s13 + $0x2a4] sm:$0xf]  ;;  %v6032_v48 = vld [vmem:[%s9091_s13 + $0xf4] sm:$0xf0] }
 0x739   :  { %v1942_v15 = vmax.f32 %v1938_v44, %v1940_v24  ;;  %v5254_v24 = vor.u32 %v6125_v2, %v5251_v3  ;;  %v6065_v33 = vld [vmem:[%s9091_s13 + $0x204] sm:$0xf] }
 0x73a   :  { %v6129_v43 = vld [vmem:[%s9091_s13 + $0x404] sm:$0xf] }
 0x73b   :  { %v1947_v56 = vld [vmem:[#allocation1 + $0x1] ss:$4 sm:$0xff]  ;;  %1960 = vst [vmem:[#allocation2 + $0x8] sm:$0x3] %v1942_v15 }
 0x73c   :  { %1949 = vst [vmem:[#allocation2 + $0x2] sm:$0x3] %v1947_v56  ;;  %3451 = vmatpush.bf16.msra.mxu0 %v4774_v47  ;;  %v5091_v56 = vld [vmem:[%s9091_s13 + $0x2b0] sm:$0xf0] }
 0x73d   :  { %1950 = vst.sshfl [vmem:[#allocation1] sm:$0xff pattern:$0x73625140] %v7530_v55  ;;  %v5094_v34 = vor.u32 %v6085_v21, %v5091_v56  ;;  %v5075_v47 = vld [vmem:[%s9091_s13 + $0x290] sm:$0xf0] }
 0x73e   :  { %v6133_v21 = vld [vmem:[%s9091_s13 + $0x424] sm:$0xf]  ;;  %v5283_v56 = vld [vmem:[%s9091_s13 + $0x430] sm:$0xf0] }
 0x740   :  { %3452 = vmatpush.bf16.msra.mxu0 %v4758_v57  ;;  %v5078_v57 = vor.u32 %v6081_v45, %v5075_v47  ;;  %v5267_v45 = vld [vmem:[%s9091_s13 + $0x410] sm:$0xf0] }
 0x741   :  { %v5507_v47 = vld [vmem:[%s9091_s13 + $0x5f0] sm:$0xf0] }
 0x744   :  { %v1952_v16 = vld [vmem:[#allocation1 + $0x2] ss:$4 sm:$0xff] }
 0x745   :  { %1954 = vst [vmem:[#allocation2 + $0x4] sm:$0x3] %v1952_v16  ;;  %v5206_v16 = vor.u32 %v6113_v28, %v5203_v50  ;;  %v6221_v28 = vld [vmem:[%s9091_s13 + $0x6e4] sm:$0xf] }
 0x746   :  { %1955 = vst.sshfl [vmem:[#allocation1] sm:$0xff pattern:$0x73625140] %v7530_v55  ;;  %v6093_v55 = vld [vmem:[%s9091_s13 + $0x2e4] sm:$0xf] }
 0x747   :  { %v5126_v8 = vor.u32 %v6093_v55, %v5123_v0 }
 0x74d   :  { %v1957_v58 = vld [vmem:[#allocation1 + $0x3] ss:$4 sm:$0xff] }
 0x74e   :  { %1959 = vst [vmem:[#allocation2 + $0x6] sm:$0x3] %v1957_v58  ;;  %v6109_v58 = vld [vmem:[%s9091_s13 + $0x364] sm:$0xf] }
 0x74f   :  { %1962 = vst.sshfl [vmem:[#allocation1] sm:$0xff pattern:$0x73625140] %v1942_v15 }
 0x755   :  { %v1972_v61 = vld [vmem:[#allocation2] sm:$0xff] }
 0x756   :  { %v1964_v14 = vld [vmem:[#allocation1 + $0x1] ss:$4 sm:$0xff] }
 0x757   :  { %1966 = vst [vmem:[#allocation2 + $0xa] sm:$0x3] %v1964_v14  ;;  %v5187_v14 = vld [vmem:[%s9091_s13 + $0x370] sm:$0xf0] }
 0x758   :  { %1967 = vst.sshfl [vmem:[#allocation1] sm:$0xff pattern:$0x73625140] %v1942_v15  ;;  %v5363_v15 = vld [vmem:[%s9091_s13 + $0x4d0] sm:$0xf0]  ;;  %v5190_v18 = vor.u32 %v6109_v58, %v5187_v14  ;;  %v5638_v58 = vor.u32 %v6221_v28, %v5635_v51  ;;  %v4874_v14 = vor.u32 %v6032_v48, %v4873_v53 }
 0x759   :  { %1976 = vst [vmem:[#allocation1] ss:$4 sm:$0xff] %v1972_v61  ;;  %v5366_v22 = vor.u32 %v6153_v49, %v5363_v15  ;;  %v6141_v61 = vld [vmem:[%s9091_s13 + $0x464] sm:$0xf]  ;;  %v4899_v15 = vld [vmem:[%s9091_s13 + $0x130] sm:$0xf0] }
 0x75a   :  { %v6037_v49 = vld [vmem:[%s9091_s13 + $0x124] sm:$0xf]  ;;  %v6048_v28 = vld [vmem:[%s9091_s13 + $0x174] sm:$0xf0] }
 0x75b   :  { %v6169_v48 = vld [vmem:[%s9091_s13 + $0x544] sm:$0xf] }
 0x75f   :  { %v1969_v4 = vld [vmem:[#allocation1 + $0x2] ss:$4 sm:$0xff] }
 0x760   :  { %1971 = vst [vmem:[#allocation2 + $0xc] sm:$0x3] %v1969_v4  ;;  %v1979_v5 = vld.sshfl [vmem:[#allocation1] sm:$0xff pattern:$0x73625140] }
 0x761   :  { %v7671_v44 = vpack.c.bf16 %v1979_v5, %v1979_v5  ;;  %v1980_v39 = vld.sshfl [vmem:[#allocation1 + $0x8] sm:$0xff pattern:$0x73625140]  ;;  %v1981_v35 = vld.sshfl [vmem:[#allocation1 + $0x10] sm:$0xff pattern:$0x73625140]  ;;  %v5062_v5 = vor.u32 %v6077_v52, %v5059_v30 }
 0x762   :  { %v7673_v6 = vpack.c.bf16 %v1980_v39, %v1980_v39  ;;  %v7675_v7 = vpack.c.bf16 %v1981_v35, %v1981_v35  ;;  %v1982_v32 = vld.sshfl [vmem:[#allocation1 + $0x18] sm:$0xff pattern:$0x73625140]  ;;  %v5315_v4 = vld [vmem:[%s9091_s13 + $0x470] sm:$0xf0] }
 0x763   :  { %3362 = vmatmul.bf16.vlgmr.msrb.gmra.mxu2 %v7671_v44  ;;  %v7681_v26 = vpack.c.bf16 %v1982_v32, %v1982_v32  ;;  %v4915_v39 = vld [vmem:[%s9091_s13 + $0x150] sm:$0xf0]  ;;  %v6073_v35 = vld [vmem:[%s9091_s13 + $0x244] sm:$0xf]  ;;  %v5001_v52 = vld [vmem:[%s9091_s13 + $0x1e8] sm:$0xf] }
 0x764   :  { %3375 = vmatmul.bf16.vlgmr.msrb.gmra.mxu1 %v7673_v6  ;;  %3388 = vmatmul.bf16.vlgmr.msrb.gmra.mxu3 %v7675_v7  ;;  %v5043_v32 = vld [vmem:[%s9091_s13 + $0x250] sm:$0xf0]  ;;  %v4918_v11 = vor.u32 %v6041_v27, %v4915_v39  ;;  %v6064_v30 = vld [vmem:[%s9091_s13 + $0x1f4] sm:$0xf0] }
 0x765   :  { %3401 = vmatmul.bf16.vlgmr.msrb.gmra.mxu0 %v7681_v26  ;;  %3458 = vmatpush.bf16.msrb.mxu2 %v4998_v23  ;;  %v5318_v23 = vor.u32 %v6141_v61, %v5315_v4  ;;  %v5046_v12 = vor.u32 %v6073_v35, %v5043_v32  ;;  %v6185_v61 = vld [vmem:[%s9091_s13 + $0x5c4] sm:$0xf]  ;;  %v4857_v4 = vld [vmem:[%s9091_s13 + $0xc8] sm:$0xf]  ;;  %v5475_v32 = vld [vmem:[%s9091_s13 + $0x5b0] sm:$0xf0] }
 0x766   :  { %3471 = vmatpush.bf16.msrb.mxu1 %v5126_v8  ;;  %3484 = vmatpush.bf16.msrb.mxu3 %v5254_v24  ;;  %v6105_v8 = vld [vmem:[%s9091_s13 + $0x344] sm:$0xf]  ;;  %v5171_v24 = vld [vmem:[%s9091_s13 + $0x350] sm:$0xf0] }
 0x767   :  { %v1973_v41 = vld [vmem:[#allocation2 + $0x8] sm:$0x3f]  ;;  %3497 = vmatpush.bf16.msrb.mxu0 %v5382_v10  ;;  %v5174_v13 = vor.u32 %v6105_v8, %v5171_v24  ;;  %v6213_v8 = vld [vmem:[%s9091_s13 + $0x6a4] sm:$0xf] }
 0x768   :  { %1978 = vst [vmem:[#allocation1 + $0x20] ss:$4 sm:$0xff] %v1973_v41  ;;  %v5299_v10 = vld [vmem:[%s9091_s13 + $0x450] sm:$0xf0]  ;;  %v4902_v41 = vor.u32 %v6037_v49, %v4899_v15 }
 0x769   :  { %3459 = vmatpush.bf16.msrb.mxu2 %v4982_v17  ;;  %v6069_v17 = vld [vmem:[%s9091_s13 + $0x224] sm:$0xf]  ;;  %v5302_v63 = vor.u32 %v6137_v9, %v5299_v10  ;;  %v5603_v9 = vld [vmem:[%s9091_s13 + $0x6b0] sm:$0xf0]  ;;  %v4841_v10 = vld [vmem:[%s9091_s13 + $0xa8] sm:$0xf] }
 0x76a   :  { %3472 = vmatpush.bf16.msrb.mxu1 %v5110_v19  ;;  %3485 = vmatpush.bf16.msrb.mxu3 %v5238_v60  ;;  %v5027_v19 = vld [vmem:[%s9091_s13 + $0x230] sm:$0xf0]  ;;  %v6101_v60 = vld [vmem:[%s9091_s13 + $0x324] sm:$0xf]  ;;  %v5606_v15 = vor.u32 %v6213_v8, %v5603_v9 }
 0x76b   :  { %3498 = vmatpush.bf16.msrb.mxu0 %v5366_v22  ;;  %v6033_v22 = vld [vmem:[%s9091_s13 + $0x104] sm:$0xf]  ;;  %v5030_v25 = vor.u32 %v6069_v17, %v5027_v19  ;;  %v5158_v42 = vor.u32 %v6101_v60, %v5155_v20  ;;  %v5459_v19 = vld [vmem:[%s9091_s13 + $0x590] sm:$0xf0] }
 0x76c   :  { %v4886_v50 = vor.u32 %v6033_v22, %v4883_v37  ;;  %v6209_v60 = vld [vmem:[%s9091_s13 + $0x684] sm:$0xf]  ;;  %v4953_v22 = vld [vmem:[%s9091_s13 + $0x188] sm:$0xf]  ;;  %v6052_v37 = vld [vmem:[%s9091_s13 + $0x194] sm:$0xf0] }
 0x76d   :  { %3460 = vmatpush.bf16.msrb.mxu2 %v4966_v1  ;;  %v5011_v1 = vld [vmem:[%s9091_s13 + $0x210] sm:$0xf0] }
 0x76e   :  { %3473 = vmatpush.bf16.msrb.mxu1 %v5094_v34  ;;  %3486 = vmatpush.bf16.msrb.mxu3 %v5222_v36  ;;  %v6097_v34 = vld [vmem:[%s9091_s13 + $0x304] sm:$0xf]  ;;  %v5286_v36 = vor.u32 %v6133_v21, %v5283_v56  ;;  %v5587_v21 = vld [vmem:[%s9091_s13 + $0x690] sm:$0xf0]  ;;  %v4825_v56 = vld [vmem:[%s9091_s13 + $0x88] sm:$0xf] }
 0x76f   :  { %3499 = vmatpush.bf16.msrb.mxu0 %v5350_v46  ;;  %v1983_v38 = vld.sshfl [vmem:[#allocation1 + $0x20] sm:$0xff pattern:$0x73625140]  ;;  %v1984_v55 = vld.sshfl [vmem:[#allocation1 + $0x28] sm:$0xff pattern:$0x73625140]  ;;  %v5142_v59 = vor.u32 %v6097_v34, %v5139_v40  ;;  %v4954_v40 = vor.u32 %v6052_v37, %v4953_v22 }
 0x770   :  { %v7770_v0 = vpack.c.bf16 %v1983_v38, %v1983_v38  ;;  %v7772_v2 = vpack.c.bf16 %v1984_v55, %v1984_v55  ;;  %v1985_v3 = vld.sshfl [vmem:[#allocation1 + $0x30] sm:$0xff pattern:$0x73625140]  ;;  %v6189_v46 = vld [vmem:[%s9091_s13 + $0x5e4] sm:$0xf]  ;;  %v5002_v55 = vor.u32 %v6064_v30, %v5001_v52 }
 0x771   :  { %3461 = vmatpush.bf16.msrb.mxu2 %v4950_v29  ;;  %v7777_v31 = vpack.c.bf16 %v1985_v3, %v1985_v3  ;;  %v5014_v29 = vor.u32 %v6065_v33, %v5011_v1  ;;  %v6217_v38 = vld [vmem:[%s9091_s13 + $0x6c4] sm:$0xf]  ;;  %v5619_v3 = vld [vmem:[%s9091_s13 + $0x6d0] sm:$0xf0] }
 0x772   :  { %3474 = vmatpush.bf16.msrb.mxu1 %v5078_v57  ;;  %3487 = vmatpush.bf16.msrb.mxu3 %v5206_v16  ;;  %v5270_v57 = vor.u32 %v6129_v43, %v5267_v45  ;;  %v5510_v16 = vor.u32 %v6189_v46, %v5507_v47  ;;  %v5622_v39 = vor.u32 %v6217_v38, %v5619_v3  ;;  %v6173_v1 = vld [vmem:[%s9091_s13 + $0x564] sm:$0xf]  ;;  %v5443_v34 = vld [vmem:[%s9091_s13 + $0x570] sm:$0xf0]  ;;  %v4809_v45 = vld [vmem:[%s9091_s13 + $0x68] sm:$0xf] }
 0x773   :  { %3500 = vmatpush.bf16.msrb.mxu0 %v5334_v62  ;;  %3414 = vmatmul.bf16.vlgmr.msra.gmra.mxu2 %v7770_v0  ;;  %v5491_v62 = vld [vmem:[%s9091_s13 + $0x5d0] sm:$0xf0]  ;;  %v6016_v46 = vld [vmem:[%s9091_s13 + $0x74] sm:$0xf0]  ;;  %v4937_v47 = vld [vmem:[%s9091_s13 + $0x168] sm:$0xf] }
 0x774   :  { %3427 = vmatmul.bf16.vlgmr.msra.gmra.mxu1 %v7772_v2  ;;  %3440 = vmatmul.bf16.vlgmr.msra.gmra.mxu3 %v7777_v31  ;;  %v5494_v27 = vor.u32 %v6185_v61, %v5491_v62  ;;  %v5571_v43 = vld [vmem:[%s9091_s13 + $0x670] sm:$0xf0]  ;;  %v4810_v53 = vor.u32 %v6016_v46, %v4809_v45  ;;  %v4938_v52 = vor.u32 %v6048_v28, %v4937_v47  ;;  %v5241_v45 = vld [vmem:[%s9091_s13 + $0x3c8] sm:$0xf]  ;;  %v6124_v47 = vld [vmem:[%s9091_s13 + $0x3d4] sm:$0xf0] }
 0x775   :  { %3453 = vmatmul.bf16.vlgmr.msra.gmra.mxu0 %v7671_v44  ;;  %3462 = vmatpush.bf16.msrb.mxu2 %v4934_v54  ;;  %v6028_v54 = vld [vmem:[%s9091_s13 + $0xd4] sm:$0xf0]  ;;  %v5555_v30 = vld [vmem:[%s9091_s13 + $0x650] sm:$0xf0]  ;;  %v5369_v28 = vld [vmem:[%s9091_s13 + $0x4c8] sm:$0xf] }
 0x776   :  { %3475 = vmatpush.bf16.msrb.mxu1 %v5062_v5  ;;  %3488 = vmatpush.bf16.msrb.mxu3 %v5190_v18  ;;  %v4985_v5 = vld [vmem:[%s9091_s13 + $0x1c8] sm:$0xf]  ;;  %v6060_v18 = vld [vmem:[%s9091_s13 + $0x1d4] sm:$0xf0]  ;;  %v4858_v35 = vor.u32 %v6028_v54, %v4857_v4  ;;  %v5411_v3 = vld [vmem:[%s9091_s13 + $0x530] sm:$0xf0] }
 0x777   :  { %3501 = vmatpush.bf16.msrb.mxu0 %v5318_v23  ;;  %v6181_v23 = vld [vmem:[%s9091_s13 + $0x5a4] sm:$0xf]  ;;  %v4986_v24 = vor.u32 %v6060_v18, %v4985_v5  ;;  %v5539_v5 = vld [vmem:[%s9091_s13 + $0x630] sm:$0xf0]  ;;  %v4777_v18 = vld [vmem:[%s9091_s13 + $0x28] sm:$0xf] }
 0x778   :  { %v5478_v49 = vor.u32 %v6181_v23, %v5475_v32  ;;  %v6197_v4 = vld [vmem:[%s9091_s13 + $0x624] sm:$0xf]  ;;  %v5395_v8 = vld [vmem:[%s9091_s13 + $0x510] sm:$0xf0] }
 0x779   :  { %3463 = vmatpush.bf16.msrb.mxu2 %v4918_v11  ;;  %v6024_v11 = vld [vmem:[%s9091_s13 + $0xb4] sm:$0xf0]  ;;  %v6161_v32 = vld [vmem:[%s9091_s13 + $0x504] sm:$0xf] }
 0x77a   :  { %3476 = vmatpush.bf16.msrb.mxu1 %v5046_v12  ;;  %3489 = vmatpush.bf16.msrb.mxu3 %v5174_v13  ;;  %v4969_v12 = vld [vmem:[%s9091_s13 + $0x1a8] sm:$0xf]  ;;  %v6056_v13 = vld [vmem:[%s9091_s13 + $0x1b4] sm:$0xf0]  ;;  %v4842_v17 = vor.u32 %v6024_v11, %v4841_v10  ;;  %v6193_v10 = vld [vmem:[%s9091_s13 + $0x604] sm:$0xf] }
 0x77b   :  { %3502 = vmatpush.bf16.msrb.mxu0 %v5302_v63  ;;  %v6177_v63 = vld [vmem:[%s9091_s13 + $0x584] sm:$0xf]  ;;  %v4970_v20 = vor.u32 %v6056_v13, %v4969_v12  ;;  %v5523_v11 = vld [vmem:[%s9091_s13 + $0x610] sm:$0xf0]  ;;  %v4761_v12 = vld [vmem:[%s9091_s13 + $0x8] sm:$0xf] }
 0x77c   :  { %v5526_v22 = vor.u32 %v6193_v10, %v5523_v11  ;;  %v5065_v11 = vld [vmem:[%s9091_s13 + $0x268] sm:$0xf] }
 0x77d   :  { %3464 = vmatpush.bf16.msrb.mxu2 %v4902_v41  ;;  %v6020_v41 = vld [vmem:[%s9091_s13 + $0x94] sm:$0xf0] }
 0x77e   :  { %3477 = vmatpush.bf16.msrb.mxu1 %v5030_v25  ;;  %3490 = vmatpush.bf16.msrb.mxu3 %v5158_v42  ;;  %v5462_v25 = vor.u32 %v6177_v63, %v5459_v19  ;;  %v5590_v42 = vor.u32 %v6209_v60, %v5587_v21  ;;  %v4826_v33 = vor.u32 %v6020_v41, %v4825_v56  ;;  %v5129_v63 = vld [vmem:[%s9091_s13 + $0x2e8] sm:$0xf]  ;;  %v6096_v19 = vld [vmem:[%s9091_s13 + $0x2f4] sm:$0xf0] }
 0x77f   :  { %3503 = vmatpush.bf16.msrb.mxu0 %v5286_v36  ;;  %v6205_v36 = vld [vmem:[%s9091_s13 + $0x664] sm:$0xf]  ;;  %v5257_v60 = vld [vmem:[%s9091_s13 + $0x3e8] sm:$0xf]  ;;  %v6128_v21 = vld [vmem:[%s9091_s13 + $0x3f4] sm:$0xf0] }
 0x780   :  { %v5574_v51 = vor.u32 %v6205_v36, %v5571_v43  ;;  %v5385_v56 = vld [vmem:[%s9091_s13 + $0x4e8] sm:$0xf]  ;;  %v6160_v41 = vld [vmem:[%s9091_s13 + $0x4f4] sm:$0xf0] }
 0x781   :  { %3465 = vmatpush.bf16.msrb.mxu2 %v4886_v50  ;;  %v5446_v50 = vor.u32 %v6173_v1, %v5443_v34  ;;  %v5130_v1 = vor.u32 %v6096_v19, %v5129_v63  ;;  %v5258_v34 = vor.u32 %v6128_v21, %v5257_v60  ;;  %v5386_v36 = vor.u32 %v6160_v41, %v5385_v56  ;;  %v6092_v43 = vld [vmem:[%s9091_s13 + $0x2d4] sm:$0xf0]  ;;  %v5449_v19 = vld [vmem:[%s9091_s13 + $0x568] sm:$0xf] }
 0x782   :  { %3478 = vmatpush.bf16.msrb.mxu1 %v5014_v29  ;;  %3491 = vmatpush.bf16.msrb.mxu3 %v5142_v59  ;;  %v5427_v29 = vld [vmem:[%s9091_s13 + $0x550] sm:$0xf0]  ;;  %v6201_v59 = vld [vmem:[%s9091_s13 + $0x644] sm:$0xf]  ;;  %v6144_v63 = vld [vmem:[%s9091_s13 + $0x474] sm:$0xf0] }
 0x783   :  { %3504 = vmatpush.bf16.msrb.mxu0 %v5270_v57  ;;  %v4793_v57 = vld [vmem:[%s9091_s13 + $0x48] sm:$0xf]  ;;  %v5430_v61 = vor.u32 %v6169_v48, %v5427_v29  ;;  %v5558_v62 = vor.u32 %v6201_v59, %v5555_v30  ;;  %v5242_v29 = vor.u32 %v6124_v47, %v5241_v45  ;;  %v6088_v30 = vld [vmem:[%s9091_s13 + $0x2b4] sm:$0xf0] }
 0x784   :  { %3466 = vmatmul.bf16.vlgmr.msrb.gmra.mxu2 %v7673_v6  ;;  %v6176_v60 = vld [vmem:[%s9091_s13 + $0x574] sm:$0xf0]  ;;  %v5049_v41 = vld [vmem:[%s9091_s13 + $0x248] sm:$0xf] }
 0x785   :  { %3510 = vmatpush.bf16.msra.mxu2 %v5510_v16  ;;  %3479 = vmatmul.bf16.vlgmr.msrb.gmra.mxu1 %v7675_v7  ;;  %v6012_v16 = vld [vmem:[%s9091_s13 + $0x54] sm:$0xf0] }
 0x786   :  { %3523 = vmatpush.bf16.msra.mxu1 %v5638_v58  ;;  %3536 = vmatpush.bf16.msra.mxu3 %v4874_v14  ;;  %v4921_v58 = vld [vmem:[%s9091_s13 + $0x148] sm:$0xf]  ;;  %v6044_v14 = vld [vmem:[%s9091_s13 + $0x154] sm:$0xf0]  ;;  %v4794_v38 = vor.u32 %v6012_v16, %v4793_v57 }
 0x787   :  { %3549 = vmatpush.bf16.msra.mxu0 %v5002_v55  ;;  %3492 = vmatmul.bf16.vlgmr.msrb.gmra.mxu3 %v7681_v26  ;;  %v6165_v55 = vld [vmem:[%s9091_s13 + $0x524] sm:$0xf]  ;;  %v4922_v54 = vor.u32 %v6044_v14, %v4921_v58  ;;  %v5225_v57 = vld [vmem:[%s9091_s13 + $0x3a8] sm:$0xf]  ;;  %v6120_v58 = vld [vmem:[%s9091_s13 + $0x3b4] sm:$0xf0] }
 0x788   :  { %3505 = vmatmul.bf16.vlgmr.msrb.gmra.mxu0 %v7770_v0  ;;  %v5414_v23 = vor.u32 %v6165_v55, %v5411_v3  ;;  %v5353_v14 = vld [vmem:[%s9091_s13 + $0x4a8] sm:$0xf]  ;;  %v5226_v3 = vor.u32 %v6120_v58, %v5225_v57  ;;  %v6072_v47 = vld [vmem:[%s9091_s13 + $0x234] sm:$0xf0] }
 0x789   :  { %3511 = vmatpush.bf16.msra.mxu2 %v5494_v27  ;;  %v6008_v27 = vld [vmem:[%s9091_s13 + $0x34] sm:$0xf0] }
 0x78a   :  { %3524 = vmatpush.bf16.msra.mxu1 %v5622_v39  ;;  %3537 = vmatpush.bf16.msra.mxu3 %v4858_v35  ;;  %v4905_v39 = vld [vmem:[%s9091_s13 + $0x128] sm:$0xf]  ;;  %v6040_v35 = vld [vmem:[%s9091_s13 + $0x134] sm:$0xf0]  ;;  %v4778_v9 = vor.u32 %v6008_v27, %v4777_v18 }
 0x78b   :  { %3550 = vmatpush.bf16.msra.mxu0 %v4986_v24  ;;  %v5542_v24 = vor.u32 %v6197_v4, %v5539_v5  ;;  %v4906_v13 = vor.u32 %v6040_v35, %v4905_v39  ;;  %v6084_v5 = vld [vmem:[%s9091_s13 + $0x294] sm:$0xf0]  ;;  %v5209_v18 = vld [vmem:[%s9091_s13 + $0x388] sm:$0xf] }
 0x78c   :  { %v6116_v39 = vld [vmem:[%s9091_s13 + $0x394] sm:$0xf0]  ;;  %v5337_v35 = vld [vmem:[%s9091_s13 + $0x488] sm:$0xf] }
 0x78d   :  { %3512 = vmatpush.bf16.msra.mxu2 %v5478_v49  ;;  %v6004_v49 = vld [vmem:[%s9091_s13 + $0x14] sm:$0xf0] }
 0x78e   :  { %3525 = vmatpush.bf16.msra.mxu1 %v5606_v15  ;;  %3538 = vmatpush.bf16.msra.mxu3 %v4842_v17  ;;  %v4889_v15 = vld [vmem:[%s9091_s13 + $0x108] sm:$0xf]  ;;  %v6036_v17 = vld [vmem:[%s9091_s13 + $0x114] sm:$0xf0]  ;;  %v4762_v37 = vor.u32 %v6004_v49, %v4761_v12 }
 0x78f   :  { %3551 = vmatpush.bf16.msra.mxu0 %v4970_v20  ;;  %v5398_v20 = vor.u32 %v6161_v32, %v5395_v8  ;;  %v5465_v32 = vld [vmem:[%s9091_s13 + $0x588] sm:$0xf]  ;;  %v6180_v8 = vld [vmem:[%s9091_s13 + $0x594] sm:$0xf0] }
 0x790   :  { %v6080_v12 = vld [vmem:[%s9091_s13 + $0x274] sm:$0xf0]  ;;  %v5466_v49 = vor.u32 %v6180_v8, %v5465_v32 }
 0x791   :  { %3513 = vmatpush.bf16.msra.mxu2 %v5462_v25  ;;  %v5513_v25 = vld [vmem:[%s9091_s13 + $0x5e8] sm:$0xf]  ;;  %v6068_v57 = vld [vmem:[%s9091_s13 + $0x214] sm:$0xf0] }
 0x792   :  { %3526 = vmatpush.bf16.msra.mxu1 %v5590_v42  ;;  %3539 = vmatpush.bf16.msra.mxu3 %v4826_v33  ;;  %v6192_v42 = vld [vmem:[%s9091_s13 + $0x5f4] sm:$0xf0]  ;;  %v4890_v33 = vor.u32 %v6036_v17, %v4889_v15  ;;  %v5321_v17 = vld [vmem:[%s9091_s13 + $0x468] sm:$0xf] }
 0x793   :  { %3552 = vmatpush.bf16.msra.mxu0 %v4954_v40  ;;  %v5113_v40 = vld [vmem:[%s9091_s13 + $0x2c8] sm:$0xf]  ;;  %v5514_v46 = vor.u32 %v6192_v42, %v5513_v25  ;;  %v6112_v15 = vld [vmem:[%s9091_s13 + $0x374] sm:$0xf0]  ;;  %v5322_v56 = vor.u32 %v6144_v63, %v5321_v17  ;;  %v5450_v25 = vor.u32 %v6176_v60, %v5449_v19  ;;  %v6026_v17 = vld [vmem:[%s9091_s13 + $0xcc] sm:$0xf] }
 0x794   :  { %v5114_v48 = vor.u32 %v6092_v43, %v5113_v40  ;;  %v6108_v42 = vld [vmem:[%s9091_s13 + $0x354] sm:$0xf0]  ;;  %v4859_v19 = vld [vmem:[%s9091_s13 + $0xd8] sm:$0xf0]  ;;  %v6058_v60 = vld [vmem:[%s9091_s13 + $0x1cc] sm:$0xf] }
 0x795   :  { %3514 = vmatpush.bf16.msra.mxu2 %v5446_v50  ;;  %v6156_v50 = vld [vmem:[%s9091_s13 + $0x4d4] sm:$0xf0] }
 0x796   :  { %3527 = vmatpush.bf16.msra.mxu1 %v5574_v51  ;;  %3540 = vmatpush.bf16.msra.mxu3 %v4810_v53  ;;  %v5497_v51 = vld [vmem:[%s9091_s13 + $0x5c8] sm:$0xf]  ;;  %v6188_v53 = vld [vmem:[%s9091_s13 + $0x5d4] sm:$0xf0]  ;;  %v5370_v59 = vor.u32 %v6156_v50, %v5369_v28 }
 0x797   :  { %3553 = vmatpush.bf16.msra.mxu0 %v4938_v52  ;;  %v5097_v52 = vld [vmem:[%s9091_s13 + $0x2a8] sm:$0xf]  ;;  %v5498_v16 = vor.u32 %v6188_v53, %v5497_v51  ;;  %v6104_v51 = vld [vmem:[%s9091_s13 + $0x334] sm:$0xf0] }
 0x798   :  { %v5098_v55 = vor.u32 %v6088_v30, %v5097_v52  ;;  %v5161_v28 = vld [vmem:[%s9091_s13 + $0x328] sm:$0xf] }
 0x799   :  { %3515 = vmatpush.bf16.msra.mxu2 %v5430_v61  ;;  %v6152_v61 = vld [vmem:[%s9091_s13 + $0x4b4] sm:$0xf0]  ;;  %v5289_v53 = vld [vmem:[%s9091_s13 + $0x428] sm:$0xf] }
 0x79a   :  { %3528 = vmatpush.bf16.msra.mxu1 %v5558_v62  ;;  %3541 = vmatpush.bf16.msra.mxu3 %v4794_v38  ;;  %v5481_v62 = vld [vmem:[%s9091_s13 + $0x5a8] sm:$0xf]  ;;  %v6184_v38 = vld [vmem:[%s9091_s13 + $0x5b4] sm:$0xf0]  ;;  %v5354_v4 = vor.u32 %v6152_v61, %v5353_v14 }
 0x79b   :  { %3554 = vmatpush.bf16.msra.mxu0 %v4922_v54  ;;  %v5081_v54 = vld [vmem:[%s9091_s13 + $0x288] sm:$0xf]  ;;  %v5482_v27 = vor.u32 %v6184_v38, %v5481_v62  ;;  %v6100_v61 = vld [vmem:[%s9091_s13 + $0x314] sm:$0xf0] }
 0x79c   :  { %v5017_v30 = vld [vmem:[%s9091_s13 + $0x208] sm:$0xf] }
 0x79d   :  { %3516 = vmatpush.bf16.msra.mxu2 %v5414_v23  ;;  %v6148_v23 = vld [vmem:[%s9091_s13 + $0x494] sm:$0xf0]  ;;  %v5145_v14 = vld [vmem:[%s9091_s13 + $0x308] sm:$0xf] }
 0x79e   :  { %3529 = vmatpush.bf16.msra.mxu1 %v5542_v24  ;;  %3542 = vmatpush.bf16.msra.mxu3 %v4778_v9  ;;  %v5082_v24 = vor.u32 %v6084_v5, %v5081_v54  ;;  %v5210_v9 = vor.u32 %v6116_v39, %v5209_v18  ;;  %v5338_v10 = vor.u32 %v6148_v23, %v5337_v35  ;;  %v5273_v62 = vld [vmem:[%s9091_s13 + $0x408] sm:$0xf]  ;;  %v6224_v5 = vld [vmem:[%s9091_s13 + $0x6f4] sm:$0xf0]  ;;  %v6030_v18 = vld [vmem:[%s9091_s13 + $0xec] sm:$0xf] }
 0x79f   :  { %3555 = vmatpush.bf16.msra.mxu0 %v4906_v13  ;;  %v5193_v13 = vld [vmem:[%s9091_s13 + $0x368] sm:$0xf]  ;;  %v4875_v39 = vld [vmem:[%s9091_s13 + $0xf8] sm:$0xf0]  ;;  %v6062_v35 = vld [vmem:[%s9091_s13 + $0x1ec] sm:$0xf]  ;;  %v5146_v32 = vor.u32 %v6100_v61, %v5145_v14 }
 0x7a0   :  { %v5194_v21 = vor.u32 %v6112_v15, %v5193_v13  ;;  %v5641_v54 = vld [vmem:[%s9091_s13 + $0x6e8] sm:$0xf]  ;;  %v5003_v23 = vld [vmem:[%s9091_s13 + $0x1f8] sm:$0xf0]  ;;  %v6220_v15 = vld [vmem:[%s9091_s13 + $0x6d4] sm:$0xf0] }
 0x7a1   :  { %3517 = vmatpush.bf16.msra.mxu2 %v5398_v20  ;;  %v5066_v20 = vor.u32 %v6080_v12, %v5065_v11  ;;  %v5642_v11 = vor.u32 %v6224_v5, %v5641_v54  ;;  %v4878_v12 = vor.u32 %v6030_v18, %v4875_v39  ;;  %v5006_v13 = vor.u32 %v6062_v35, %v5003_v23  ;;  %v5577_v61 = vld [vmem:[%s9091_s13 + $0x668] sm:$0xf]  ;;  %v4939_v54 = vld [vmem:[%s9091_s13 + $0x178] sm:$0xf0]  ;;  %v6078_v5 = vld [vmem:[%s9091_s13 + $0x26c] sm:$0xf] }
 0x7a2   :  { %3530 = vmatpush.bf16.msra.mxu1 %v5526_v22  ;;  %3543 = vmatpush.bf16.msra.mxu3 %v4762_v37  ;;  %v6076_v22 = vld [vmem:[%s9091_s13 + $0x254] sm:$0xf0]  ;;  %v5177_v37 = vld [vmem:[%s9091_s13 + $0x348] sm:$0xf]  ;;  %v5067_v18 = vld [vmem:[%s9091_s13 + $0x278] sm:$0xf0] }
 0x7a3   :  { %3556 = vmatpush.bf16.msra.mxu0 %v4890_v33  ;;  %v5305_v33 = vld [vmem:[%s9091_s13 + $0x448] sm:$0xf]  ;;  %v5050_v40 = vor.u32 %v6076_v22, %v5049_v41  ;;  %v5178_v43 = vor.u32 %v6108_v42, %v5177_v37  ;;  %v4862_v22 = vor.u32 %v6026_v17, %v4859_v19  ;;  %v6216_v42 = vld [vmem:[%s9091_s13 + $0x6b4] sm:$0xf0] }
 0x7a4   :  { %3518 = vmatmul.bf16.vlgmr.msra.gmra.mxu2 %v7772_v2  ;;  %v5561_v23 = vld [vmem:[%s9091_s13 + $0x648] sm:$0xf]  ;;  %v6200_v19 = vld [vmem:[%s9091_s13 + $0x634] sm:$0xf0] }
 0x7a5   :  { %3562 = vmatpush.bf16.msrb.mxu2 %v5130_v1  ;;  %3531 = vmatmul.bf16.vlgmr.msra.gmra.mxu1 %v7777_v31  ;;  %v6140_v1 = vld [vmem:[%s9091_s13 + $0x454] sm:$0xf0] }
 0x7a6   :  { %3575 = vmatpush.bf16.msrb.mxu1 %v5258_v34  ;;  %3588 = vmatpush.bf16.msrb.mxu3 %v5386_v36  ;;  %v5433_v34 = vld [vmem:[%s9091_s13 + $0x548] sm:$0xf]  ;;  %v6172_v36 = vld [vmem:[%s9091_s13 + $0x554] sm:$0xf0]  ;;  %v5306_v45 = vor.u32 %v6140_v1, %v5305_v33  ;;  %v6022_v33 = vld [vmem:[%s9091_s13 + $0xac] sm:$0xf] }
 0x7a7   :  { %3601 = vmatpush.bf16.msrb.mxu0 %v5514_v46  ;;  %3544 = vmatmul.bf16.vlgmr.msra.gmra.mxu3 %v7671_v44  ;;  %v5033_v46 = vld [vmem:[%s9091_s13 + $0x228] sm:$0xf]  ;;  %v5434_v50 = vor.u32 %v6172_v36, %v5433_v34  ;;  %v4843_v34 = vld [vmem:[%s9091_s13 + $0xb8] sm:$0xf0]  ;;  %v6054_v36 = vld [vmem:[%s9091_s13 + $0x1ac] sm:$0xf] }
 0x7a8   :  { %3557 = vmatmul.bf16.vlgmr.msra.gmra.mxu0 %v7673_v6  ;;  %v5034_v52 = vor.u32 %v6072_v47, %v5033_v46  ;;  %v4846_v47 = vor.u32 %v6022_v33, %v4843_v34  ;;  %v6196_v33 = vld [vmem:[%s9091_s13 + $0x614] sm:$0xf0] }
 0x7a9   :  { %3563 = vmatpush.bf16.msrb.mxu2 %v5114_v48  ;;  %v6136_v48 = vld [vmem:[%s9091_s13 + $0x434] sm:$0xf0] }
 0x7aa   :  { %3576 = vmatpush.bf16.msrb.mxu1 %v5242_v29  ;;  %3589 = vmatpush.bf16.msrb.mxu3 %v5370_v59  ;;  %v5417_v29 = vld [vmem:[%s9091_s13 + $0x528] sm:$0xf]  ;;  %v6168_v59 = vld [vmem:[%s9091_s13 + $0x534] sm:$0xf0]  ;;  %v5290_v58 = vor.u32 %v6136_v48, %v5289_v53  ;;  %v6018_v53 = vld [vmem:[%s9091_s13 + $0x8c] sm:$0xf] }
 0x7ab   :  { %3602 = vmatpush.bf16.msrb.mxu0 %v5498_v16  ;;  %v5162_v16 = vor.u32 %v6104_v51, %v5161_v28  ;;  %v5418_v38 = vor.u32 %v6168_v59, %v5417_v29  ;;  %v6212_v51 = vld [vmem:[%s9091_s13 + $0x694] sm:$0xf0]  ;;  %v4827_v29 = vld [vmem:[%s9091_s13 + $0x98] sm:$0xf0]  ;;  %v6050_v59 = vld [vmem:[%s9091_s13 + $0x18c] sm:$0xf] }
 0x7ad   :  { %3564 = vmatpush.bf16.msrb.mxu2 %v5098_v55  ;;  %v6132_v55 = vld [vmem:[%s9091_s13 + $0x414] sm:$0xf0] }
 0x7ae   :  { %3577 = vmatpush.bf16.msrb.mxu1 %v5226_v3  ;;  %3590 = vmatpush.bf16.msrb.mxu3 %v5354_v4  ;;  %v5401_v3 = vld [vmem:[%s9091_s13 + $0x508] sm:$0xf]  ;;  %v6164_v4 = vld [vmem:[%s9091_s13 + $0x514] sm:$0xf0]  ;;  %v5274_v8 = vor.u32 %v6132_v55, %v5273_v62 }
 0x7af   :  { %3603 = vmatpush.bf16.msrb.mxu0 %v5482_v27  ;;  %v5018_v27 = vor.u32 %v6068_v57, %v5017_v30  ;;  %v6082_v30 = vld [vmem:[%s9091_s13 + $0x28c] sm:$0xf]  ;;  %v5083_v57 = vld [vmem:[%s9091_s13 + $0x298] sm:$0xf0]  ;;  %v6208_v62 = vld [vmem:[%s9091_s13 + $0x674] sm:$0xf0] }
 0x7b0   :  { %v5086_v55 = vor.u32 %v6082_v30, %v5083_v57 }
 0x7b1   :  { %3565 = vmatpush.bf16.msrb.mxu2 %v5082_v24  ;;  %v6094_v24 = vld [vmem:[%s9091_s13 + $0x2ec] sm:$0xf] }
 0x7b2   :  { %3578 = vmatpush.bf16.msrb.mxu1 %v5210_v9  ;;  %3591 = vmatpush.bf16.msrb.mxu3 %v5338_v10  ;;  %v5131_v9 = vld [vmem:[%s9091_s13 + $0x2f8] sm:$0xf0]  ;;  %v5402_v10 = vor.u32 %v6164_v4, %v5401_v3  ;;  %v6046_v4 = vld [vmem:[%s9091_s13 + $0x16c] sm:$0xf] }
 0x7b3   :  { %3604 = vmatpush.bf16.msrb.mxu0 %v5466_v49  ;;  %v5625_v49 = vld [vmem:[%s9091_s13 + $0x6c8] sm:$0xf]  ;;  %v5134_v63 = vor.u32 %v6094_v24, %v5131_v9  ;;  %v4811_v3 = vld [vmem:[%s9091_s13 + $0x78] sm:$0xf0]  ;;  %v4942_v35 = vor.u32 %v6046_v4, %v4939_v54  ;;  %v5070_v24 = vor.u32 %v6078_v5, %v5067_v18  ;;  %v6154_v4 = vld [vmem:[%s9091_s13 + $0x4cc] sm:$0xf] }
 0x7b4   :  { %v5626_v41 = vor.u32 %v6220_v15, %v5625_v49  ;;  %v4795_v9 = vld [vmem:[%s9091_s13 + $0x58] sm:$0xf0]  ;;  %v6186_v18 = vld [vmem:[%s9091_s13 + $0x5cc] sm:$0xf] }
 0x7b5   :  { %3566 = vmatpush.bf16.msrb.mxu2 %v5066_v20  ;;  %v4987_v20 = vld [vmem:[%s9091_s13 + $0x1d8] sm:$0xf0] }
 0x7b6   :  { %3579 = vmatpush.bf16.msrb.mxu1 %v5194_v21  ;;  %3592 = vmatpush.bf16.msrb.mxu3 %v5322_v56  ;;  %v6090_v21 = vld [vmem:[%s9091_s13 + $0x2cc] sm:$0xf]  ;;  %v5115_v56 = vld [vmem:[%s9091_s13 + $0x2d8] sm:$0xf0]  ;;  %v4990_v37 = vor.u32 %v6058_v60, %v4987_v20 }
 0x7b7   :  { %3605 = vmatpush.bf16.msrb.mxu0 %v5450_v25  ;;  %v5609_v25 = vld [vmem:[%s9091_s13 + $0x6a8] sm:$0xf]  ;;  %v5118_v1 = vor.u32 %v6090_v21, %v5115_v56  ;;  %v6006_v60 = vld [vmem:[%s9091_s13 + $0x2c] sm:$0xf]  ;;  %v4779_v21 = vld [vmem:[%s9091_s13 + $0x38] sm:$0xf0] }
 0x7b8   :  { %v5610_v46 = vor.u32 %v6216_v42, %v5609_v25  ;;  %v6038_v56 = vld [vmem:[%s9091_s13 + $0x12c] sm:$0xf]  ;;  %v5529_v42 = vld [vmem:[%s9091_s13 + $0x608] sm:$0xf]  ;;  %v5371_v5 = vld [vmem:[%s9091_s13 + $0x4d8] sm:$0xf0] }
 0x7b9   :  { %3567 = vmatpush.bf16.msrb.mxu2 %v5050_v40  ;;  %v4971_v40 = vld [vmem:[%s9091_s13 + $0x1b8] sm:$0xf0] }
 0x7ba   :  { %3580 = vmatpush.bf16.msrb.mxu1 %v5178_v43  ;;  %3593 = vmatpush.bf16.msrb.mxu3 %v5306_v45  ;;  %v6086_v43 = vld [vmem:[%s9091_s13 + $0x2ac] sm:$0xf]  ;;  %v5099_v45 = vld [vmem:[%s9091_s13 + $0x2b8] sm:$0xf0]  ;;  %v4974_v28 = vor.u32 %v6054_v36, %v4971_v40 }
 0x7bb   :  { %3606 = vmatpush.bf16.msrb.mxu0 %v5434_v50  ;;  %v5593_v50 = vld [vmem:[%s9091_s13 + $0x688] sm:$0xf]  ;;  %v5102_v48 = vor.u32 %v6086_v43, %v5099_v45  ;;  %v6002_v36 = vld [vmem:[%s9091_s13 + $0xc] sm:$0xf]  ;;  %v4763_v40 = vld [vmem:[%s9091_s13 + $0x18] sm:$0xf0] }
 0x7bc   :  { %v6034_v43 = vld [vmem:[%s9091_s13 + $0x10c] sm:$0xf]  ;;  %v4766_v30 = vor.u32 %v6002_v36, %v4763_v40 }
 0x7bd   :  { %3568 = vmatpush.bf16.msrb.mxu2 %v5034_v52  ;;  %v4955_v52 = vld [vmem:[%s9091_s13 + $0x198] sm:$0xf0]  ;;  %v6110_v40 = vld [vmem:[%s9091_s13 + $0x36c] sm:$0xf] }
 0x7be   :  { %3581 = vmatpush.bf16.msrb.mxu1 %v5162_v16  ;;  %3594 = vmatpush.bf16.msrb.mxu3 %v5290_v58  ;;  %v5594_v16 = vor.u32 %v6212_v51, %v5593_v50  ;;  %v4830_v58 = vor.u32 %v6018_v53, %v4827_v29  ;;  %v4958_v14 = vor.u32 %v6050_v59, %v4955_v52  ;;  %v6126_v50 = vld [vmem:[%s9091_s13 + $0x3ec] sm:$0xf]  ;;  %v5259_v51 = vld [vmem:[%s9091_s13 + $0x3f8] sm:$0xf0] }
 0x7bf   :  { %3607 = vmatpush.bf16.msrb.mxu0 %v5418_v38  ;;  %v6014_v38 = vld [vmem:[%s9091_s13 + $0x6c] sm:$0xf]  ;;  %v5387_v29 = vld [vmem:[%s9091_s13 + $0x4f8] sm:$0xf0] }
 0x7c0   :  { %v4814_v39 = vor.u32 %v6014_v38, %v4811_v3  ;;  %v6158_v53 = vld [vmem:[%s9091_s13 + $0x4ec] sm:$0xf]  ;;  %v5515_v52 = vld [vmem:[%s9091_s13 + $0x5f8] sm:$0xf0] }
 0x7c1   :  { %3569 = vmatpush.bf16.msrb.mxu2 %v5018_v27  ;;  %v5578_v27 = vor.u32 %v6208_v62, %v5577_v61  ;;  %v6190_v59 = vld [vmem:[%s9091_s13 + $0x5ec] sm:$0xf]  ;;  %v5262_v61 = vor.u32 %v6126_v50, %v5259_v51  ;;  %v5390_v62 = vor.u32 %v6158_v53, %v5387_v29  ;;  %v5243_v3 = vld [vmem:[%s9091_s13 + $0x3d8] sm:$0xf0] }
 0x7c2   :  { %3582 = vmatpush.bf16.msrb.mxu1 %v5146_v32  ;;  %3595 = vmatpush.bf16.msrb.mxu3 %v5274_v8  ;;  %v6204_v32 = vld [vmem:[%s9091_s13 + $0x654] sm:$0xf0]  ;;  %v6010_v8 = vld [vmem:[%s9091_s13 + $0x4c] sm:$0xf]  ;;  %v5518_v38 = vor.u32 %v6190_v59, %v5515_v52  ;;  %v5451_v51 = vld [vmem:[%s9091_s13 + $0x578] sm:$0xf0] }
 0x7c3   :  { %3608 = vmatpush.bf16.msrb.mxu0 %v5402_v10  ;;  %v6042_v10 = vld [vmem:[%s9091_s13 + $0x14c] sm:$0xf]  ;;  %v5562_v49 = vor.u32 %v6204_v32, %v5561_v23  ;;  %v4798_v15 = vor.u32 %v6010_v8, %v4795_v9  ;;  %v5374_v32 = vor.u32 %v6154_v4, %v5371_v5  ;;  %v5227_v9 = vld [vmem:[%s9091_s13 + $0x3b8] sm:$0xf0] }
 0x7c4   :  { %3570 = vmatmul.bf16.vlgmr.msrb.gmra.mxu2 %v7675_v7  ;;  %v6174_v50 = vld [vmem:[%s9091_s13 + $0x56c] sm:$0xf]  ;;  %v5563_v4 = vld [vmem:[%s9091_s13 + $0x658] sm:$0xf0] }
 0x7c5   :  { %3614 = vmatpush.bf16.msra.mxu2 %v5642_v11  ;;  %3583 = vmatmul.bf16.vlgmr.msrb.gmra.mxu1 %v7681_v26  ;;  %v4923_v11 = vld [vmem:[%s9091_s13 + $0x158] sm:$0xf0]  ;;  %v6206_v53 = vld [vmem:[%s9091_s13 + $0x66c] sm:$0xf] }
 0x7c6   :  { %3627 = vmatpush.bf16.msra.mxu1 %v4878_v12  ;;  %3640 = vmatpush.bf16.msra.mxu3 %v5006_v13  ;;  %v6074_v12 = vld [vmem:[%s9091_s13 + $0x24c] sm:$0xf]  ;;  %v5051_v13 = vld [vmem:[%s9091_s13 + $0x258] sm:$0xf0]  ;;  %v4926_v17 = vor.u32 %v6042_v10, %v4923_v11 }
 0x7c7   :  { %3653 = vmatpush.bf16.msra.mxu0 %v5134_v63  ;;  %3596 = vmatmul.bf16.vlgmr.msrb.gmra.mxu3 %v7770_v0  ;;  %v5545_v63 = vld [vmem:[%s9091_s13 + $0x628] sm:$0xf]  ;;  %v5054_v20 = vor.u32 %v6074_v12, %v5051_v13  ;;  %v6150_v10 = vld [vmem:[%s9091_s13 + $0x4ac] sm:$0xf]  ;;  %v5355_v12 = vld [vmem:[%s9091_s13 + $0x4b8] sm:$0xf0] }
 0x7c8   :  { %3609 = vmatmul.bf16.vlgmr.msrb.gmra.mxu0 %v7772_v2  ;;  %v5546_v25 = vor.u32 %v6200_v19, %v5545_v63  ;;  %v6182_v13 = vld [vmem:[%s9091_s13 + $0x5ac] sm:$0xf] }
 0x7c9   :  { %3615 = vmatpush.bf16.msra.mxu2 %v5626_v41  ;;  %v4907_v41 = vld [vmem:[%s9091_s13 + $0x138] sm:$0xf0] }
 0x7ca   :  { %3628 = vmatpush.bf16.msra.mxu1 %v4862_v22  ;;  %3641 = vmatpush.bf16.msra.mxu3 %v4990_v37  ;;  %v6070_v22 = vld [vmem:[%s9091_s13 + $0x22c] sm:$0xf]  ;;  %v5035_v37 = vld [vmem:[%s9091_s13 + $0x238] sm:$0xf0]  ;;  %v4910_v34 = vor.u32 %v6038_v56, %v4907_v41 }
 0x7cb   :  { %3654 = vmatpush.bf16.msra.mxu0 %v5118_v1  ;;  %v4782_v1 = vor.u32 %v6006_v60, %v4779_v21  ;;  %v5038_v45 = vor.u32 %v6070_v22, %v5035_v37  ;;  %v5358_v60 = vor.u32 %v6150_v10, %v5355_v12  ;;  %v5211_v21 = vld [vmem:[%s9091_s13 + $0x398] sm:$0xf0]  ;;  %v6178_v22 = vld [vmem:[%s9091_s13 + $0x58c] sm:$0xf] }
 0x7cc   :  { %v5339_v41 = vld [vmem:[%s9091_s13 + $0x498] sm:$0xf0]  ;;  %v6166_v10 = vld [vmem:[%s9091_s13 + $0x52c] sm:$0xf] }
 0x7cd   :  { %3616 = vmatpush.bf16.msra.mxu2 %v5610_v46  ;;  %v4891_v46 = vld [vmem:[%s9091_s13 + $0x118] sm:$0xf0]  ;;  %v6198_v12 = vld [vmem:[%s9091_s13 + $0x62c] sm:$0xf] }
 0x7ce   :  { %3629 = vmatpush.bf16.msra.mxu1 %v4846_v47  ;;  %3642 = vmatpush.bf16.msra.mxu3 %v4974_v28  ;;  %v6066_v47 = vld [vmem:[%s9091_s13 + $0x20c] sm:$0xf]  ;;  %v5019_v28 = vld [vmem:[%s9091_s13 + $0x218] sm:$0xf0]  ;;  %v4894_v57 = vor.u32 %v6034_v43, %v4891_v46 }
 0x7cf   :  { %3655 = vmatpush.bf16.msra.mxu0 %v5102_v48  ;;  %v5530_v48 = vor.u32 %v6196_v33, %v5529_v42  ;;  %v5467_v37 = vld [vmem:[%s9091_s13 + $0x598] sm:$0xf0] }
 0x7d0   :  { %v5595_v42 = vld [vmem:[%s9091_s13 + $0x698] sm:$0xf0] }
 0x7d1   :  { %3617 = vmatpush.bf16.msra.mxu2 %v5594_v16  ;;  %v6222_v16 = vld [vmem:[%s9091_s13 + $0x6ec] sm:$0xf]  ;;  %v5195_v43 = vld [vmem:[%s9091_s13 + $0x378] sm:$0xf0] }
 0x7d2   :  { %3630 = vmatpush.bf16.msra.mxu1 %v4830_v58  ;;  %3643 = vmatpush.bf16.msra.mxu3 %v4958_v14  ;;  %v5643_v58 = vld [vmem:[%s9091_s13 + $0x6f8] sm:$0xf0]  ;;  %v5022_v14 = vor.u32 %v6066_v47, %v5019_v28  ;;  %v5198_v29 = vor.u32 %v6110_v40, %v5195_v43  ;;  %v5769_v40 = vld [vmem:[%s9093_s15 + $0xf0] sm:$0xf]  ;;  %v6256_v43 = vld [vmem:[%s9093_s15 + $0xf4] sm:$0xf0] }
 0x7d3   :  { %3656 = vmatpush.bf16.msra.mxu0 %v5086_v55  ;;  %v6122_v55 = vld [vmem:[%s9091_s13 + $0x3cc] sm:$0xf]  ;;  %v5646_v54 = vor.u32 %v6222_v16, %v5643_v58  ;;  %v5323_v28 = vld [vmem:[%s9091_s13 + $0x478] sm:$0xf0] }
 0x7d4   :  { %v5246_v23 = vor.u32 %v6122_v55, %v5243_v3  ;;  %v6106_v16 = vld [vmem:[%s9091_s13 + $0x34c] sm:$0xf]  ;;  %v5179_v58 = vld [vmem:[%s9091_s13 + $0x358] sm:$0xf0] }
 0x7d5   :  { %3618 = vmatpush.bf16.msra.mxu2 %v5578_v27  ;;  %v5499_v27 = vld [vmem:[%s9091_s13 + $0x5d8] sm:$0xf0]  ;;  %v6202_v3 = vld [vmem:[%s9091_s13 + $0x64c] sm:$0xf]  ;;  %v5182_v5 = vor.u32 %v6106_v16, %v5179_v58 }
 0x7d6   :  { %3631 = vmatpush.bf16.msra.mxu1 %v4814_v39  ;;  %3644 = vmatpush.bf16.msra.mxu3 %v4942_v35  ;;  %v6218_v39 = vld [vmem:[%s9091_s13 + $0x6cc] sm:$0xf]  ;;  %v5627_v35 = vld [vmem:[%s9091_s13 + $0x6d8] sm:$0xf0]  ;;  %v5502_v8 = vor.u32 %v6186_v18, %v5499_v27 }
 0x7d7   :  { %3657 = vmatpush.bf16.msra.mxu0 %v5070_v24  ;;  %v6118_v24 = vld [vmem:[%s9091_s13 + $0x3ac] sm:$0xf]  ;;  %v5630_v11 = vor.u32 %v6218_v39, %v5627_v35  ;;  %v5435_v55 = vld [vmem:[%s9091_s13 + $0x558] sm:$0xf0] }
 0x7d8   :  { %v5230_v63 = vor.u32 %v6118_v24, %v5227_v9  ;;  %v6102_v35 = vld [vmem:[%s9091_s13 + $0x32c] sm:$0xf]  ;;  %v5291_v9 = vld [vmem:[%s9091_s13 + $0x438] sm:$0xf0] }
 0x7d9   :  { %3619 = vmatpush.bf16.msra.mxu2 %v5562_v49  ;;  %v5483_v49 = vld [vmem:[%s9091_s13 + $0x5b8] sm:$0xf0] }
 0x7da   :  { %3632 = vmatpush.bf16.msra.mxu1 %v4798_v15  ;;  %3645 = vmatpush.bf16.msra.mxu3 %v4926_v17  ;;  %v6214_v15 = vld [vmem:[%s9091_s13 + $0x6ac] sm:$0xf]  ;;  %v5611_v17 = vld [vmem:[%s9091_s13 + $0x6b8] sm:$0xf0] }
 0x7db   :  { %3658 = vmatpush.bf16.msra.mxu0 %v5054_v20  ;;  %v5614_v56 = vor.u32 %v6214_v15, %v5611_v17 }
 0x7dd   :  { %3620 = vmatpush.bf16.msra.mxu2 %v5546_v25  ;;  %v6210_v25 = vld [vmem:[%s9091_s13 + $0x68c] sm:$0xf] }
 0x7de   :  { %3633 = vmatpush.bf16.msra.mxu1 %v4782_v1  ;;  %3646 = vmatpush.bf16.msra.mxu3 %v4910_v34  ;;  %v5470_v34 = vor.u32 %v6178_v22, %v5467_v37  ;;  %v5598_v46 = vor.u32 %v6210_v25, %v5595_v42  ;;  %v6162_v22 = vld [vmem:[%s9091_s13 + $0x50c] sm:$0xf]  ;;  %v5403_v37 = vld [vmem:[%s9091_s13 + $0x518] sm:$0xf0] }
 0x7df   :  { %3659 = vmatpush.bf16.msra.mxu0 %v5038_v45  ;;  %v6142_v45 = vld [vmem:[%s9091_s13 + $0x46c] sm:$0xf]  ;;  %v5531_v42 = vld [vmem:[%s9091_s13 + $0x618] sm:$0xf0] }
 0x7e0   :  { %v5326_v52 = vor.u32 %v6142_v45, %v5323_v28  ;;  %v6194_v25 = vld [vmem:[%s9091_s13 + $0x60c] sm:$0xf]  ;;  %v5406_v28 = vor.u32 %v6162_v22, %v5403_v37  ;;  %v5657_v22 = vld [vmem:[%s9093_s15 + $0x10] sm:$0xf]  ;;  %v6228_v37 = vld [vmem:[%s9093_s15 + $0x14] sm:$0xf0] }
 0x7e1   :  { %3621 = vmatpush.bf16.msra.mxu2 %v5530_v48  ;;  %v8519_v19 = vpop.f32.mrf.mxu1  ;;  %v5579_v48 = vld [vmem:[%s9091_s13 + $0x678] sm:$0xf0] }
 0x7e2   :  { %3634 = vmatpush.bf16.msra.mxu1 %v4766_v30  ;;  %3647 = vmatpush.bf16.msra.mxu3 %v4894_v57  ;;  %v8521_v20 = vpop.f32.mrf.mxu0  ;;  %v5454_v30 = vor.u32 %v6174_v50, %v5451_v51  ;;  %v5534_v51 = vor.u32 %v6194_v25, %v5531_v42  ;;  %v5721_v42 = vld [vmem:[%s9093_s15 + $0x90] sm:$0xf] }
 0x7e3   :  { %3660 = vmatpush.bf16.msra.mxu0 %v5022_v14  ;;  %v6138_v14 = vld [vmem:[%s9091_s13 + $0x44c] sm:$0xf] }
 0x7e4   :  { %3622 = vmatmul.bf16.vlgmr.msra.gmra.mxu2 %v7777_v31 }
 0x7e5   :  { %3666 = vmatpush.bf16.msrb.mxu2 %v5262_v61  ;;  %3635 = vmatmul.bf16.vlgmr.msra.gmra.mxu1 %v7671_v44  ;;  %v5486_v44 = vor.u32 %v6182_v13, %v5483_v49  ;;  %v5582_v61 = vor.u32 %v6206_v53, %v5579_v48  ;;  %v5547_v13 = vld [vmem:[%s9091_s13 + $0x638] sm:$0xf0] }
 0x7e6   :  { %3679 = vmatpush.bf16.msrb.mxu1 %v5390_v62  ;;  %3692 = vmatpush.bf16.msrb.mxu3 %v5518_v38  ;;  %v8547_v36 = vpop.f32.mrf.mxu2  ;;  %v5307_v62 = vld [vmem:[%s9091_s13 + $0x458] sm:$0xf0]  ;;  %v6170_v38 = vld [vmem:[%s9091_s13 + $0x54c] sm:$0xf] }
 0x7e7   :  { %3705 = vmatpush.bf16.msrb.mxu0 %v5646_v54  ;;  %3648 = vmatmul.bf16.vlgmr.msra.gmra.mxu3 %v7673_v6  ;;  %v6114_v6 = vld [vmem:[%s9091_s13 + $0x38c] sm:$0xf]  ;;  %v8558_v47 = vpop.f32.mrf.mxu3  ;;  %v8602_v54 = vld [vmem:[%s9092_s14] sm:$0xf]  ;;  %v5310_v18 = vor.u32 %v6138_v14, %v5307_v62  ;;  %v5438_v27 = vor.u32 %v6170_v38, %v5435_v55  ;;  %v6236_v62 = vld [vmem:[%s9093_s15 + $0x54] sm:$0xf0] }
 0x7e8   :  { %3661 = vmatmul.bf16.vlgmr.msra.gmra.mxu0 %v7675_v7  ;;  %v6146_v7 = vld [vmem:[%s9091_s13 + $0x48c] sm:$0xf]  ;;  %v5214_v33 = vor.u32 %v6114_v6, %v5211_v21  ;;  %v2226_v49 = vperm.slane %v8602_v54, 0  ;;  %v5147_v21 = vld [vmem:[%s9091_s13 + $0x318] sm:$0xf0] }
 0x7e9   :  { %3667 = vmatpush.bf16.msrb.mxu2 %v5246_v23  ;;  %v5342_v1 = vor.u32 %v6146_v7, %v5339_v41  ;;  %v3378_v59 = vpop.f32.mrf.mxu1  ;;  %v5163_v23 = vld [vmem:[%s9091_s13 + $0x338] sm:$0xf0]  ;;  %v6130_v7 = vld [vmem:[%s9091_s13 + $0x40c] sm:$0xf]  ;;  %v5550_v41 = vor.u32 %v6198_v12, %v5547_v13 }
 0x7ea   :  { %3680 = vmatpush.bf16.msrb.mxu1 %v5374_v32  ;;  %3693 = vmatpush.bf16.msrb.mxu3 %v5502_v8  ;;  %v3404_v57 = vpop.f32.mrf.mxu0  ;;  %v6134_v32 = vld [vmem:[%s9091_s13 + $0x42c] sm:$0xf]  ;;  %v5566_v8 = vor.u32 %v6202_v3, %v5563_v4  ;;  %v5166_v15 = vor.u32 %v6102_v35, %v5163_v23  ;;  %v3364_v45 = vadd.f32 %v8547_v36, %v2226_v49  ;;  %v6238_v59 = vld [vmem:[%s9093_s15 + $0x64] sm:$0xf0]  ;;  %v5665_v49 = vld [vmem:[%s9093_s15 + $0x20] sm:$0xf] }
 0x7eb   :  { %3706 = vmatpush.bf16.msrb.mxu0 %v5630_v11  ;;  %v5419_v11 = vld [vmem:[%s9091_s13 + $0x538] sm:$0xf0]  ;;  %v6254_v57 = vld [vmem:[%s9093_s15 + $0xe4] sm:$0xf0] }
 0x7ec   :  { %v3377_v16 = vadd.f32 %v8519_v19, %v3364_v45  ;;  %v5753_v19 = vld [vmem:[%s9093_s15 + $0xd0] sm:$0xf]  ;;  %v6226_v45 = vld [vmem:[%s9093_s15 + $0x4] sm:$0xf0] }
 0x7ed   :  { %3668 = vmatpush.bf16.msrb.mxu2 %v5230_v63  ;;  %v6098_v63 = vld [vmem:[%s9091_s13 + $0x30c] sm:$0xf] }
 0x7ee   :  { %3681 = vmatpush.bf16.msrb.mxu1 %v5358_v60  ;;  %3694 = vmatpush.bf16.msrb.mxu3 %v5486_v44  ;;  %v3365_v39 = vpop.f32.mrf.mxu2  ;;  %v5294_v60 = vor.u32 %v6134_v32, %v5291_v9  ;;  %v5422_v44 = vor.u32 %v6166_v10, %v5419_v11  ;;  %v3390_v55 = vadd.f32 %v8558_v47, %v3377_v16  ;;  %v5745_v47 = vld [vmem:[%s9093_s15 + $0xc0] sm:$0xf]  ;;  %v6248_v10 = vld [vmem:[%s9093_s15 + $0xb4] sm:$0xf0]  ;;  %v5763_v16 = vld [vmem:[%s9093_s15 + $0xe8] sm:$0xf0] }
 0x7ef   :  { %3707 = vmatpush.bf16.msrb.mxu0 %v5614_v56  ;;  %v3391_v24 = vpop.f32.mrf.mxu3  ;;  %v5275_v56 = vld [vmem:[%s9091_s13 + $0x418] sm:$0xf0] }
 0x7f0   :  { %v6232_v24 = vld [vmem:[%s9093_s15 + $0x34] sm:$0xf0] }
 0x7f1   :  { %3669 = vmatpush.bf16.msrb.mxu2 %v5214_v33  ;;  %v8629_v17 = vpop.f32.mrf.mxu1  ;;  %v5705_v33 = vld [vmem:[%s9093_s15 + $0x70] sm:$0xf] }
 0x7f2   :  { %3682 = vmatpush.bf16.msrb.mxu1 %v5342_v1  ;;  %3695 = vmatpush.bf16.msrb.mxu3 %v5470_v34  ;;  %v8634_v6 = vpop.f32.mrf.mxu0  ;;  %v6240_v1 = vld [vmem:[%s9093_s15 + $0x74] sm:$0xf0]  ;;  %v5150_v34 = vor.u32 %v6098_v63, %v5147_v21 }
 0x7f3   :  { %3708 = vmatpush.bf16.msrb.mxu0 %v5598_v46  ;;  %v5278_v46 = vor.u32 %v6130_v7, %v5275_v56  ;;  %v5706_v53 = vor.u32 %v6240_v1, %v5705_v33  ;;  %v6244_v33 = vld [vmem:[%s9093_s15 + $0x94] sm:$0xf0]  ;;  %v5658_v1 = vor.u32 %v6228_v37, %v5657_v22  ;;  %v5825_v22 = vld [vmem:[%s9093_s15 + $0x160] sm:$0xf]  ;;  %v6270_v37 = vld [vmem:[%s9093_s15 + $0x164] sm:$0xf0] }
 0x7f5   :  { %3670 = vmatpush.bf16.msrb.mxu2 %v5198_v29  ;;  %v5697_v29 = vld [vmem:[%s9093_s15 + $0x60] sm:$0xf] }
 0x7f6   :  { %3683 = vmatpush.bf16.msrb.mxu1 %v5326_v52  ;;  %3696 = vmatpush.bf16.msrb.mxu3 %v5454_v30  ;;  %v3415_v50 = vpop.f32.mrf.mxu2  ;;  %v5770_v52 = vor.u32 %v6256_v43, %v5769_v40  ;;  %v5761_v30 = vld [vmem:[%s9093_s15 + $0xe0] sm:$0xf]  ;;  %v5698_v14 = vor.u32 %v6238_v59, %v5697_v29  ;;  %v2227_v29 = vperm.slane %v8602_v54, 1 }
 0x7f7   :  { %3709 = vmatpush.bf16.msrb.mxu0 %v5582_v61  ;;  %v3441_v48 = vpop.f32.mrf.mxu3  ;;  %v5689_v61 = vld [vmem:[%s9093_s15 + $0x50] sm:$0xf]  ;;  %v5762_v38 = vor.u32 %v6254_v57, %v5761_v30  ;;  %v6253_v57 = vld [vmem:[%s9093_s15 + $0xe4] sm:$0xf] }
 0x7f8   :  { %v5690_v4 = vor.u32 %v6236_v62, %v5689_v61  ;;  %v5766_v61 = vor.u32 %v6253_v57, %v5763_v16  ;;  %v5801_v16 = vld [vmem:[%s9093_s15 + $0x130] sm:$0xf] }
 0x7f9   :  { %3671 = vmatpush.bf16.msrb.mxu2 %v5182_v5  ;;  %v3430_v36 = vpop.f32.mrf.mxu1 }
 0x7fa   :  { %3684 = vmatpush.bf16.msrb.mxu1 %v5310_v18  ;;  %3697 = vmatpush.bf16.msrb.mxu3 %v5438_v27  ;;  %v3456_v58 = vpop.f32.mrf.mxu0  ;;  %v3403_v27 = vadd.f32 %v8521_v20, %v3390_v55  ;;  %v5737_v20 = vld [vmem:[%s9093_s15 + $0xb0] sm:$0xf]  ;;  %v6249_v55 = vld [vmem:[%s9093_s15 + $0xc4] sm:$0xf] }
 0x7fb   :  { %3710 = vmatpush.bf16.msrb.mxu0 %v5566_v8  ;;  %v5673_v8 = vld [vmem:[%s9093_s15 + $0x30] sm:$0xf]  ;;  %v5738_v63 = vor.u32 %v6248_v10, %v5737_v20  ;;  %v3455_v58 = vadd.f32 %v8634_v6, %v2227_v29  ;;  %v6243_v20 = vld [vmem:[%s9093_s15 + $0x94] sm:$0xf]  ;;  %v6266_v29 = vld [vmem:[%s9093_s15 + $0x144] sm:$0xf0] }
 0x7fc   :  { %v3416_v23 = vadd.f32 %v3415_v50, %v3403_v27  ;;  %v5674_v11 = vor.u32 %v6232_v24, %v5673_v8 }
 0x7fd   :  { %3672 = vmatpush.bf16.msrb.mxu2 %v5166_v15  ;;  %v6230_v15 = vld [vmem:[%s9093_s15 + $0x24] sm:$0xf0] }
 0x7fe   :  { %3685 = vmatpush.bf16.msrb.mxu1 %v5294_v60  ;;  %3698 = vmatpush.bf16.msrb.mxu3 %v5422_v44  ;;  %v3417_v3 = vpop.f32.mrf.mxu2  ;;  %v3429_v12 = vadd.f32 %v8629_v17, %v3416_v23  ;;  %v5729_v44 = vld [vmem:[%s9093_s15 + $0xa0] sm:$0xf]  ;;  %v6246_v17 = vld [vmem:[%s9093_s15 + $0xa4] sm:$0xf0]  ;;  %v5666_v7 = vor.u32 %v6230_v15, %v5665_v49  ;;  %v6271_v49 = vld [vmem:[%s9093_s15 + $0x174] sm:$0xf] }
 0x7ff   :  { %3711 = vmatpush.bf16.msrb.mxu0 %v5550_v41  ;;  %v3443_v5 = vpop.f32.mrf.mxu3  ;;  %v5730_v25 = vor.u32 %v6246_v17, %v5729_v44  ;;  %v5747_v3 = vld [vmem:[%s9093_s15 + $0xc8] sm:$0xf0] }
 0x800   :  { %v3442_v56 = vadd.f32 %v3441_v48, %v3429_v12  ;;  %v6242_v48 = vld [vmem:[%s9093_s15 + $0x84] sm:$0xf0]  ;;  %v5833_v12 = vld [vmem:[%s9093_s15 + $0x170] sm:$0xf] }
 0x801   :  { %3673 = vmatpush.bf16.msrb.mxu2 %v5150_v34  ;;  %v5649_v34 = vld [vmem:[%s9093_s15] sm:$0xf] }
 0x802   :  { %3686 = vmatpush.bf16.msrb.mxu1 %v5278_v46  ;;  %3699 = vmatpush.bf16.msrb.mxu3 %v5406_v28  ;;  %v8713_v39 = vpop.f32.mrf.mxu1  ;;  %v3718_v40 = vmul.f32 0.2, %v3442_v56  ;;  %v6255_v46 = vld [vmem:[%s9093_s15 + $0xf4] sm:$0xf]  ;;  %v5722_v28 = vor.u32 %v6244_v33, %v5721_v42  ;;  %v5650_v59 = vor.u32 %v6226_v45, %v5649_v34  ;;  %v5826_v33 = vor.u32 %v6270_v37, %v5825_v22  ;;  %v5817_v34 = vld [vmem:[%s9093_s15 + $0x150] sm:$0xf] }
 0x803   :  { %3712 = vmatpush.bf16.msrb.mxu0 %v5534_v51  ;;  %v5771_v51 = vld [vmem:[%s9093_s15 + $0xf8] sm:$0xf0] }
 0x804   :  { %3674 = vmatmul.bf16.vlgmr.msrb.gmra.mxu2 %v7681_v26  ;;  %v6252_v26 = vld [vmem:[%s9093_s15 + $0xd4] sm:$0xf0]  ;;  %v5774_v36 = vor.u32 %v6255_v46, %v5771_v51 }
 0x805   :  { %4075 = vmatpush.bf16.msra.mxu2 %v5706_v53  ;;  %3687 = vmatmul.bf16.vlgmr.msrb.gmra.mxu1 %v7770_v0  ;;  %v5681_v0 = vld [vmem:[%s9093_s15 + $0x40] sm:$0xf]  ;;  %v5754_v18 = vor.u32 %v6252_v26, %v5753_v19  ;;  %v8715_v32 = vpop.f32.mrf.mxu0  ;;  %v5755_v19 = vld [vmem:[%s9093_s15 + $0xd8] sm:$0xf0] }
 0x806   :  { %4088 = vmatpush.bf16.msra.mxu1 %v5770_v52  ;;  %3700 = vmatmul.bf16.vlgmr.msrb.gmra.mxu3 %v7772_v2  ;;  %v6234_v2 = vld [vmem:[%s9093_s15 + $0x44] sm:$0xf0]  ;;  %v5713_v53 = vld [vmem:[%s9093_s15 + $0x80] sm:$0xf]  ;;  %v3722_v52 = vmax.f32 %v3442_v56, %v3718_v40  ;;  %v5715_v56 = vld [vmem:[%s9093_s15 + $0x88] sm:$0xf0] }
 0x807   :  { %3713 = vmatmul.bf16.vlgmr.msrb.gmra.mxu0 %v7777_v31  ;;  %v6250_v31 = vld [vmem:[%s9093_s15 + $0xc4] sm:$0xf0]  ;;  %v5682_v35 = vor.u32 %v6234_v2, %v5681_v0  ;;  %v3467_v13 = vpop.f32.mrf.mxu2  ;;  %v5714_v30 = vor.u32 %v6242_v48, %v5713_v53  ;;  %v6247_v2 = vld [vmem:[%s9093_s15 + $0xb4] sm:$0xf]  ;;  %v6268_v40 = vld [vmem:[%s9093_s15 + $0x154] sm:$0xf0] }
 0x808   :  { %v5746_v9 = vor.u32 %v6250_v31, %v5745_v47  ;;  %v3468_v62 = vadd.f32 %v3467_v13, %v3455_v58  ;;  %v6272_v13 = vld [vmem:[%s9093_s15 + $0x174] sm:$0xf0]  ;;  %v5818_v53 = vor.u32 %v6268_v40, %v5817_v34  ;;  %v5809_v48 = vld [vmem:[%s9093_s15 + $0x140] sm:$0xf] }
 0x809   :  { %4076 = vmatpush.bf16.msra.mxu2 %v5698_v14  ;;  %v8780_v14 = vpack.c.bf16 %v3722_v52, %v3722_v52  ;;  %v6265_v52 = vld [vmem:[%s9093_s15 + $0x144] sm:$0xf]  ;;  %v6264_v58 = vld [vmem:[%s9093_s15 + $0x134] sm:$0xf0] }
 0x80a   :  { %4089 = vmatpush.bf16.msra.mxu1 %v5762_v38  ;;  %v3493_v60 = vpop.f32.mrf.mxu3  ;;  %v3482_v21 = vpop.f32.mrf.mxu1  ;;  %v6251_v38 = vld [vmem:[%s9093_s15 + $0xd4] sm:$0xf]  ;;  %v3481_v6 = vadd.f32 %v8713_v39, %v3468_v62  ;;  %v6245_v39 = vld [vmem:[%s9093_s15 + $0xa4] sm:$0xf]  ;;  %v5802_v62 = vor.u32 %v6264_v58, %v5801_v16  ;;  %v6276_v34 = vld [vmem:[%s9093_s15 + $0x194] sm:$0xf0] }
 0x80b   :  { %v5758_v26 = vor.u32 %v6251_v38, %v5755_v19  ;;  %v5803_v38 = vld [vmem:[%s9093_s15 + $0x138] sm:$0xf0]  ;;  %v6277_v16 = vld [vmem:[%s9093_s15 + $0x1a4] sm:$0xf] }
 0x80c   :  { %v3494_v5 = vadd.f32 %v3493_v60, %v3481_v6  ;;  %v5835_v60 = vld [vmem:[%s9093_s15 + $0x178] sm:$0xf0]  ;;  %v6262_v6 = vld [vmem:[%s9093_s15 + $0x124] sm:$0xf0] }
 0x80d   :  { %4077 = vmatpush.bf16.msra.mxu2 %v5690_v4  ;;  %v3508_v41 = vpop.f32.mrf.mxu0  ;;  %v5750_v4 = vor.u32 %v6249_v55, %v5747_v3  ;;  %v5838_v17 = vor.u32 %v6271_v49, %v5835_v60  ;;  %v6261_v55 = vld [vmem:[%s9093_s15 + $0x124] sm:$0xf]  ;;  %v5779_v49 = vld [vmem:[%s9093_s15 + $0x108] sm:$0xf0]  ;;  %v5865_v60 = vld [vmem:[%s9093_s15 + $0x1b0] sm:$0xf] }
 0x80e   :  { %4090 = vmatpush.bf16.msra.mxu1 %v5754_v18  ;;  %v5739_v18 = vld [vmem:[%s9093_s15 + $0xb8] sm:$0xf0]  ;;  %v3507_v27 = vadd.f32 %v8715_v32, %v3494_v5  ;;  %v5795_v5 = vld [vmem:[%s9093_s15 + $0x128] sm:$0xf0] }
 0x80f   :  { %v3469_v43 = vpop.f32.mrf.mxu2  ;;  %v5742_v31 = vor.u32 %v6247_v2, %v5739_v18  ;;  %v5723_v32 = vld [vmem:[%s9093_s15 + $0x98] sm:$0xf0]  ;;  %v5798_v2 = vor.u32 %v6261_v55, %v5795_v5  ;;  %v5785_v18 = vld [vmem:[%s9093_s15 + $0x110] sm:$0xf]  ;;  %v6275_v5 = vld [vmem:[%s9093_s15 + $0x194] sm:$0xf] }
 0x810   :  { %v5726_v21 = vor.u32 %v6243_v20, %v5723_v32  ;;  %v5777_v32 = vld [vmem:[%s9093_s15 + $0x100] sm:$0xf] }
 0x811   :  { %4078 = vmatpush.bf16.msra.mxu2 %v5682_v35  ;;  %v5731_v35 = vld [vmem:[%s9093_s15 + $0xa8] sm:$0xf0] }
 0x812   :  { %4091 = vmatpush.bf16.msra.mxu1 %v5746_v9  ;;  %v3495_v50 = vpop.f32.mrf.mxu3  ;;  %v5734_v9 = vor.u32 %v6245_v39, %v5731_v35 }
 0x813   :  { %v5819_v50 = vld [vmem:[%s9093_s15 + $0x158] sm:$0xf0] }
 0x815   :  { %4079 = vmatpush.bf16.msra.mxu2 %v5674_v11 }
 0x816   :  { %4092 = vmatpush.bf16.msra.mxu1 %v5738_v63  ;;  %v5834_v63 = vor.u32 %v6272_v13, %v5833_v12 }
 0x818   :  { %4101 = vmatpush.bf16.msra.mxu3 %v5834_v63  ;;  %v2228_v63 = vperm.slane %v8602_v54, 2 }
 0x819   :  { %4080 = vmatpush.bf16.msra.mxu2 %v5666_v7  ;;  %v6241_v7 = vld [vmem:[%s9093_s15 + $0x84] sm:$0xf] }
 0x81a   :  { %4093 = vmatpush.bf16.msra.mxu1 %v5730_v25  ;;  %v6269_v25 = vld [vmem:[%s9093_s15 + $0x164] sm:$0xf]  ;;  %v5718_v51 = vor.u32 %v6241_v7, %v5715_v56  ;;  %v6278_v56 = vld [vmem:[%s9093_s15 + $0x1a4] sm:$0xf0] }
 0x81c   :  { %4102 = vmatpush.bf16.msra.mxu3 %v5826_v33 }
 0x81d   :  { %4081 = vmatpush.bf16.msra.mxu2 %v5658_v1  ;;  %v5827_v1 = vld [vmem:[%s9093_s15 + $0x168] sm:$0xf0] }
 0x81e   :  { %4094 = vmatpush.bf16.msra.mxu1 %v5722_v28  ;;  %v5830_v46 = vor.u32 %v6269_v25, %v5827_v1  ;;  %v6267_v28 = vld [vmem:[%s9093_s15 + $0x154] sm:$0xf]  ;;  %v5849_v1 = vld [vmem:[%s9093_s15 + $0x190] sm:$0xf] }
 0x81f   :  { %v5850_v40 = vor.u32 %v6276_v34, %v5849_v1 }
 0x820   :  { %4103 = vmatpush.bf16.msra.mxu3 %v5818_v53  ;;  %v6279_v53 = vld [vmem:[%s9093_s15 + $0x1b4] sm:$0xf] }
 0x821   :  { %4082 = vmatpush.bf16.msra.mxu2 %v5650_v59  ;;  %v5822_v59 = vor.u32 %v6267_v28, %v5819_v50  ;;  %v6239_v50 = vld [vmem:[%s9093_s15 + $0x74] sm:$0xf] }
 0x822   :  { %4095 = vmatpush.bf16.msra.mxu1 %v5714_v30  ;;  %v3532_v0 = vpop.f32.mrf.mxu1  ;;  %v5810_v30 = vor.u32 %v6266_v29, %v5809_v48  ;;  %v5867_v29 = vld [vmem:[%s9093_s15 + $0x1b8] sm:$0xf0] }
 0x824   :  { %4083 = vmatmul.bf16.vlgmr.msra.gmra.mxu2 %v8780_v14  ;;  %4104 = vmatpush.bf16.msra.mxu3 %v5810_v30  ;;  %v6237_v30 = vld [vmem:[%s9093_s15 + $0x64] sm:$0xf] }
 0x825   :  { %4140 = vmatpush.bf16.msrb.mxu2 %v5774_v36  ;;  %v8802_v47 = vpop.f32.mrf.mxu0  ;;  %v5811_v36 = vld [vmem:[%s9093_s15 + $0x148] sm:$0xf0] }
 0x826   :  { %4153 = vmatpush.bf16.msrb.mxu1 %v5838_v17  ;;  %v5814_v57 = vor.u32 %v6265_v52, %v5811_v36  ;;  %v5857_v17 = vld [vmem:[%s9093_s15 + $0x1a0] sm:$0xf] }
 0x827   :  { %v3519_v23 = vpop.f32.mrf.mxu2  ;;  %v5858_v22 = vor.u32 %v6278_v56, %v5857_v17  ;;  %v2229_v17 = vperm.slane %v8602_v54, 3  ;;  %v5651_v56 = vld [vmem:[%s9093_s15 + $0x8] sm:$0xf0] }
 0x828   :  { %v3520_v8 = vadd.f32 %v3519_v23, %v3507_v27  ;;  %4105 = vmatpush.bf16.msra.mxu3 %v5802_v62  ;;  %v6259_v27 = vld [vmem:[%s9093_s15 + $0x114] sm:$0xf]  ;;  %v5787_v23 = vld [vmem:[%s9093_s15 + $0x118] sm:$0xf0] }
 0x829   :  { %4141 = vmatpush.bf16.msrb.mxu2 %v5766_v61  ;;  %v6263_v61 = vld [vmem:[%s9093_s15 + $0x134] sm:$0xf] }
 0x82a   :  { %v8811_v24 = vpop.f32.mrf.mxu3  ;;  %v3533_v10 = vadd.f32 %v3532_v0, %v3520_v8  ;;  %v3534_v11 = vpop.f32.mrf.mxu1  ;;  %4154 = vmatpush.bf16.msrb.mxu1 %v5830_v46  ;;  %v5806_v19 = vor.u32 %v6263_v61, %v5803_v38  ;;  %v5859_v38 = vld [vmem:[%s9093_s15 + $0x1a8] sm:$0xf0] }
 0x82b   :  { %v6257_v11 = vld [vmem:[%s9093_s15 + $0x104] sm:$0xf]  ;;  %v3546_v37 = vadd.f32 %v8811_v24, %v2228_v63  ;;  %v6274_v24 = vld [vmem:[%s9093_s15 + $0x184] sm:$0xf0] }
 0x82c   :  { %v3719_v44 = vmul.f32 0.2, %v3533_v10 }
 0x82d   :  { %4142 = vmatpush.bf16.msrb.mxu2 %v5758_v26  ;;  %v3560_v15 = vpop.f32.mrf.mxu0  ;;  %v5793_v26 = vld [vmem:[%s9093_s15 + $0x120] sm:$0xf]  ;;  %v3559_v25 = vadd.f32 %v8802_v47, %v3546_v37 }
 0x82e   :  { %v3723_v41 = vmax.f32 %v3533_v10, %v3719_v44  ;;  %4155 = vmatpush.bf16.msrb.mxu1 %v5822_v59  ;;  %v6258_v10 = vld [vmem:[%s9093_s15 + $0x104] sm:$0xf0]  ;;  %v5782_v15 = vor.u32 %v6257_v11, %v5779_v49  ;;  %v6280_v44 = vld [vmem:[%s9093_s15 + $0x1b4] sm:$0xf0]  ;;  %v5870_v59 = vor.u32 %v6279_v53, %v5867_v29  ;;  %v6231_v11 = vld [vmem:[%s9093_s15 + $0x34] sm:$0xf] }
 0x82f   :  { %v3521_v42 = vpop.f32.mrf.mxu2  ;;  %v5778_v13 = vor.u32 %v6258_v10, %v5777_v32  ;;  %v5866_v7 = vor.u32 %v6280_v44, %v5865_v60  ;;  %v5843_v32 = vld [vmem:[%s9093_s15 + $0x188] sm:$0xf0]  ;;  %v6227_v60 = vld [vmem:[%s9093_s15 + $0x14] sm:$0xf]  ;;  %v5659_v44 = vld [vmem:[%s9093_s15 + $0x18] sm:$0xf0] }
 0x830   :  { %v3727_v43 = vpack.c.bf16 %v3723_v41, %v3723_v41 }
 0x831   :  { %4143 = vmatpush.bf16.msrb.mxu2 %v5750_v4  ;;  %v5794_v4 = vor.u32 %v6262_v6, %v5793_v26  ;;  %4118 = vmatpush.bf16.msra.mxu0 %v5866_v7  ;;  %v6225_v7 = vld [vmem:[%s9093_s15 + $0x4] sm:$0xf] }
 0x832   :  { %v3547_v45 = vpop.f32.mrf.mxu3  ;;  %4096 = vmatmul.bf16.vlgmr.msra.gmra.mxu1 %v3727_v43 }
 0x833   :  { %4156 = vmatpush.bf16.msrb.mxu1 %v5814_v57  ;;  %4106 = vmatpush.bf16.msra.mxu3 %v5794_v4  ;;  %v5699_v57 = vld [vmem:[%s9093_s15 + $0x68] sm:$0xf0]  ;;  %v5691_v4 = vld [vmem:[%s9093_s15 + $0x58] sm:$0xf0] }
 0x834   :  { %v5702_v62 = vor.u32 %v6237_v30, %v5699_v57 }
 0x835   :  { %4144 = vmatpush.bf16.msrb.mxu2 %v5742_v31  ;;  %v6260_v31 = vld [vmem:[%s9093_s15 + $0x114] sm:$0xf0]  ;;  %4119 = vmatpush.bf16.msra.mxu0 %v5858_v22  ;;  %v5654_v22 = vor.u32 %v6225_v7, %v5651_v56 }
 0x836   :  { %v5786_v35 = vor.u32 %v6260_v31, %v5785_v18  ;;  %v5851_v18 = vld [vmem:[%s9093_s15 + $0x198] sm:$0xf0] }
 0x837   :  { %4157 = vmatpush.bf16.msrb.mxu1 %v5806_v19  ;;  %v5862_v19 = vor.u32 %v6277_v16, %v5859_v38  ;;  %v5854_v31 = vor.u32 %v6275_v5, %v5851_v18  ;;  %v6286_v38 = vld [vmem:[%s9095_s17 + $0x28] sm:$0xff]  ;;  %v6293_v18 = vld [vmem:[%s9095_s17 + $0x60] sm:$0xff] }
 0x838   :  { %4107 = vmatpush.bf16.msra.mxu3 %v5786_v35  ;;  %v6233_v35 = vld [vmem:[%s9093_s15 + $0x44] sm:$0xf] }
 0x839   :  { %4145 = vmatpush.bf16.msrb.mxu2 %v5734_v9  ;;  %v5790_v9 = vor.u32 %v6259_v27, %v5787_v23  ;;  %4120 = vmatpush.bf16.msra.mxu0 %v5850_v40  ;;  %v5683_v23 = vld [vmem:[%s9093_s15 + $0x48] sm:$0xf0] }
 0x83b   :  { %4158 = vmatpush.bf16.msrb.mxu1 %v5798_v2 }
 0x83c   :  { %4108 = vmatpush.bf16.msra.mxu3 %v5778_v13  ;;  %v6229_v13 = vld [vmem:[%s9093_s15 + $0x24] sm:$0xf] }
 0x83d   :  { %4146 = vmatpush.bf16.msrb.mxu2 %v5726_v21 }
 0x83f   :  { %4159 = vmatpush.bf16.msrb.mxu1 %v5790_v9 }
 0x840   :  { %4170 = vmatpush.bf16.msrb.mxu3 %v5870_v59  ;;  %v3786_v59 = vld [vmem:[%s9094_s16] sm:$0x3] }
 0x841   :  { %4147 = vmatpush.bf16.msrb.mxu2 %v5718_v51  ;;  %v5707_v51 = vld [vmem:[%s9093_s15 + $0x78] sm:$0xf0] }
 0x842   :  { %v3584_v3 = vpop.f32.mrf.mxu1  ;;  %v5710_v48 = vor.u32 %v6239_v50, %v5707_v51 }
 0x843   :  { %4160 = vmatpush.bf16.msrb.mxu1 %v5782_v15  ;;  %v5667_v15 = vld [vmem:[%s9093_s15 + $0x28] sm:$0xf0] }
 0x844   :  { %4148 = vmatmul.bf16.vlgmr.msrb.gmra.mxu2 %v3727_v43  ;;  %v5841_v43 = vld [vmem:[%s9093_s15 + $0x180] sm:$0xf]  ;;  %4171 = vmatpush.bf16.msrb.mxu3 %v5862_v19  ;;  %v5670_v63 = vor.u32 %v6229_v13, %v5667_v15 }
 0x845   :  { %v3610_v0 = vpop.f32.mrf.mxu0  ;;  %v5842_v47 = vor.u32 %v6274_v24, %v5841_v43  ;;  %v6285_v19 = vld [vmem:[%s9095_s17 + $0x20] sm:$0xff] }
 0x847   :  { %v3571_v39 = vpop.f32.mrf.mxu2  ;;  %4121 = vmatpush.bf16.msra.mxu0 %v5842_v47 }
 0x848   :  { %v3572_v42 = vadd.f32 %v3571_v39, %v3559_v25  ;;  %4172 = vmatpush.bf16.msrb.mxu3 %v5854_v31 }
 0x84a   :  { %v3597_v8 = vpop.f32.mrf.mxu3  ;;  %v3586_v20 = vpop.f32.mrf.mxu1  ;;  %v3585_v33 = vadd.f32 %v3584_v3, %v3572_v42  ;;  %v6235_v3 = vld [vmem:[%s9093_s15 + $0x54] sm:$0xf] }
 0x84b   :  { %4127 = vmatpush.bf16.msrb.mxu0 %v5710_v48  ;;  %v5694_v2 = vor.u32 %v6235_v3, %v5691_v4  ;;  %v5686_v20 = vor.u32 %v6233_v35, %v5683_v23  ;;  %v6282_v3 = vld [vmem:[%s9095_s17 + $0x8] sm:$0xff]  ;;  %v6289_v23 = vld [vmem:[%s9095_s17 + $0x40] sm:$0xff] }
 0x84c   :  { %v3598_v45 = vadd.f32 %v3597_v8, %v3585_v33  ;;  %v6273_v8 = vld [vmem:[%s9093_s15 + $0x184] sm:$0xf]  ;;  %v6290_v35 = vld [vmem:[%s9095_s17 + $0x48] sm:$0xff] }
 0x84d   :  { %v3612_v12 = vpop.f32.mrf.mxu0  ;;  %v5846_v10 = vor.u32 %v6273_v8, %v5843_v32 }
 0x84e   :  { %v3611_v52 = vadd.f32 %v3610_v0, %v3598_v45  ;;  %v5675_v12 = vld [vmem:[%s9093_s15 + $0x38] sm:$0xf0] }
 0x84f   :  { %v3573_v21 = vpop.f32.mrf.mxu2  ;;  %4128 = vmatpush.bf16.msrb.mxu0 %v5702_v62  ;;  %4173 = vmatpush.bf16.msrb.mxu3 %v5846_v10  ;;  %v5678_v49 = vor.u32 %v6231_v11, %v5675_v12  ;;  %v6288_v62 = vld [vmem:[%s9095_s17 + $0x38] sm:$0xff] }
 0x850   :  { %v5662_v21 = vor.u32 %v6227_v60, %v5659_v44 }
 0x852   :  { %v3599_v41 = vpop.f32.mrf.mxu3 }
 0x853   :  { %4129 = vmatpush.bf16.msrb.mxu0 %v5694_v2  ;;  %v6294_v2 = vld [vmem:[%s9095_s17 + $0x68] sm:$0xff] }
 0x857   :  { %4130 = vmatpush.bf16.msrb.mxu0 %v5686_v20 }
 0x85b   :  { %4131 = vmatpush.bf16.msrb.mxu0 %v5678_v49  ;;  %v3789_v49 = vperm.slane %v3786_v59, 1 }
 0x85f   :  { %4132 = vmatpush.bf16.msrb.mxu0 %v5670_v63 }
 0x862   :  { %v3636_v46 = vpop.f32.mrf.mxu1 }
 0x863   :  { %v3637_v41 = vadd.f32 %v3636_v46, %v2229_v17  ;;  %4133 = vmatpush.bf16.msrb.mxu0 %v5662_v21 }
 0x865   :  { %v8948_v28 = vpop.f32.mrf.mxu0 }
 0x867   :  { %v3623_v36 = vpop.f32.mrf.mxu2  ;;  %4134 = vmatpush.bf16.msrb.mxu0 %v5654_v22 }
 0x868   :  { %v3624_v58 = vadd.f32 %v3623_v36, %v3611_v52  ;;  %v3788_v52 = vperm.slane %v3786_v59, 0 }
 0x86a   :  { %v3649_v61 = vpop.f32.mrf.mxu3  ;;  %v3720_v26 = vmul.f32 0.2, %v3624_v58  ;;  %v3638_v6 = vpop.f32.mrf.mxu1 }
 0x86b   :  { %v3650_v37 = vadd.f32 %v3649_v61, %v3637_v41  ;;  %v6283_v6 = vld [vmem:[%s9095_s17 + $0x10] sm:$0xff] }
 0x86c   :  { %v3724_v0 = vmax.f32 %v3624_v58, %v3720_v26  ;;  %v6284_v26 = vld [vmem:[%s9095_s17 + $0x18] sm:$0xff] }
 0x86d   :  { %v3664_v55 = vpop.f32.mrf.mxu0  ;;  %v3663_v33 = vadd.f32 %v8948_v28, %v3650_v37 }
 0x86e   :  { %v3728_v27 = vpack.c.bf16 %v3724_v0, %v3724_v0  ;;  %v6281_v0 = vld [vmem:[%s9095_s17] sm:$0xff] }
 0x86f   :  { %v3625_v39 = vpop.f32.mrf.mxu2 }
 0x870   :  { %4109 = vmatmul.bf16.vlgmr.msra.gmra.mxu3 %v3728_v27  ;;  %4161 = vmatmul.bf16.vlgmr.msrb.gmra.mxu1 %v3728_v27  ;;  %v6292_v27 = vld [vmem:[%s9095_s17 + $0x58] sm:$0xff]  ;;  %v6291_v39 = vld [vmem:[%s9095_s17 + $0x50] sm:$0xff] }
 0x871   :  { %4305 = vmatpush.bf16.msra.mxu3 %v6288_v62 }
 0x872   :  { %v3651_v9 = vpop.f32.mrf.mxu3 }
 0x882   :  { %v3688_v25 = vpop.f32.mrf.mxu1 }
 0x884   :  { %v3714_v42 = vpop.f32.mrf.mxu0 }
 0x887   :  { %v3675_v54 = vpop.f32.mrf.mxu2 }
 0x888   :  { %v3676_v1 = vadd.f32 %v3675_v54, %v3663_v33 }
 0x889   :  { %v3701_v34 = vpop.f32.mrf.mxu3 }
 0x88a   :  { %v3689_v40 = vadd.f32 %v3688_v25, %v3676_v1  ;;  %v3690_v43 = vpop.f32.mrf.mxu1 }
 0x88c   :  { %v3716_v24 = vpop.f32.mrf.mxu0  ;;  %v3702_v47 = vadd.f32 %v3701_v34, %v3689_v40 }
 0x88e   :  { %v3715_v45 = vadd.f32 %v3714_v42, %v3702_v47  ;;  %v6313_v42 = vld [vmem:[%s9096_s18] ss:$0 sm:$0xff] }
 0x88f   :  { %v3677_v50 = vpop.f32.mrf.mxu2 }
 0x890   :  { %v3721_v51 = vmul.f32 0.2, %v3715_v45 }
 0x891   :  { %v3703_v53 = vpop.f32.mrf.mxu3 }
 0x892   :  { %v3725_v46 = vmax.f32 %v3715_v45, %v3721_v51 }
 0x894   :  { %v3729_v48 = vpack.c.bf16 %v3725_v46, %v3725_v46 }
 0x896   :  { %5871 = vmatmul.msk.bf16.vlgmr.msra.gmra.mxu0 %vm1745_vm8, %v3729_v48  ;;  %5872 = vmatmul.msk.bf16.vlgmr.msrb.gmra.mxu3 %vm1745_vm8, %v3729_v48 }
 0x897   :  { %4320 = vmatpush.bf16.msra.mxu0 %v6294_v2 }
 0x89b   :  { %4321 = vmatpush.bf16.msra.mxu0 %v6293_v18 }
 0x89f   :  { %4322 = vmatpush.bf16.msra.mxu0 %v6292_v27 }
 0x8a3   :  { %4323 = vmatpush.bf16.msra.mxu0 %v6291_v39 }
 0x8a6   :  { %4135 = vmatmul.bf16.vlgmr.msrb.gmra.mxu0 %v8780_v14  ;;  %v6287_v14 = vld [vmem:[%s9095_s17 + $0x30] sm:$0xff] }
 0x8a7   :  { %v4084_v29 = vpop.f32.mrf.mxu2  ;;  %4306 = vmatpush.bf16.msra.mxu3 %v6287_v14  ;;  %4324 = vmatpush.bf16.msra.mxu0 %v6290_v35 }
 0x8a8   :  { %v4085_v36 = vadd.f32 %v4084_v29, %v3788_v52 }
 0x8ab   :  { %4307 = vmatpush.bf16.msra.mxu3 %v6286_v38  ;;  %4325 = vmatpush.bf16.msra.mxu0 %v6289_v23 }
 0x8af   :  { %v4086_v28 = vpop.f32.mrf.mxu2  ;;  %v4097_v30 = vpop.f32.mrf.mxu1  ;;  %4308 = vmatpush.bf16.msra.mxu3 %v6285_v19 }
 0x8b0   :  { %v4098_v57 = vadd.f32 %v4097_v30, %v4085_v36 }
 0x8b3   :  { %4309 = vmatpush.bf16.msra.mxu3 %v6284_v26 }
 0x8b7   :  { %v4099_v16 = vpop.f32.mrf.mxu1  ;;  %4310 = vmatpush.bf16.msra.mxu3 %v6283_v6 }
 0x8bb   :  { %4311 = vmatpush.bf16.msra.mxu3 %v6282_v3 }
 0x8bf   :  { %4312 = vmatpush.bf16.msra.mxu3 %v6281_v0 }
 0x8c7   :  { %v4149_v58 = vpop.f32.mrf.mxu2 }
 0x8cf   :  { %v4151_v61 = vpop.f32.mrf.mxu2 }
 0x8ed   :  { %v4162_v55 = vpop.f32.mrf.mxu1 }
 0x8f3   :  { %v4110_v4 = vpop.f32.mrf.mxu3 }
 0x8f4   :  { %v4111_v8 = vadd.f32 %v4110_v4, %v4098_v57 }
 0x8f5   :  { %v4164_v5 = vpop.f32.mrf.mxu1 }
 0x8fb   :  { %v4112_v31 = vpop.f32.mrf.mxu3 }
 0x913   :  { %v4123_v9 = vpop.f32.mrf.mxu0 }
 0x914   :  { %v4124_v20 = vadd.f32 %v4123_v9, %v4111_v8 }
 0x916   :  { %v4179_v32 = vmul.f32 0.2, %v4124_v20 }
 0x918   :  { %v4181_v10 = vmax.f32 %v4124_v20, %v4179_v32 }
 0x919   :  { %v4175_v11 = vpop.f32.mrf.mxu3 }
 0x91a   :  { %v4183_v12 = vpack.c.bf16 %v4181_v10, %v4181_v10 }
 0x91b   :  { %v4125_v13 = vpop.f32.mrf.mxu0 }
 0x91c   :  { %4313 = vmatmul.bf16.vlgmr.msra.gmra.mxu3 %v4183_v12 }
 0x921   :  { %v4177_v15 = vpop.f32.mrf.mxu3 }
 0x923   :  { %v4136_v63 = vpop.f32.mrf.mxu0 }
 0x924   :  { %v4137_v60 = vadd.f32 %v4136_v63, %v3789_v49 }
 0x926   :  { %v4150_v44 = vadd.f32 %v4149_v58, %v4137_v60 }
 0x928   :  { %v4163_v17 = vadd.f32 %v4162_v55, %v4150_v44 }
 0x92a   :  { %v4176_v21 = vadd.f32 %v4175_v11, %v4163_v17 }
 0x92b   :  { %v4138_v7 = vpop.f32.mrf.mxu0 }
 0x92c   :  { %v4180_v56 = vmul.f32 0.2, %v4176_v21 }
 0x92e   :  { %v4182_v41 = vmax.f32 %v4176_v21, %v4180_v56 }
 0x930   :  { %v4184_v22 = vpack.c.bf16 %v4182_v41, %v4182_v41 }
 0x932   :  { %5929 = vmatmul.msk.bf16.vlgmr.msra.gmra.mxu0 %vm4301_vm11, %v4184_v22 }
 0x99f   :  { %v4314_v37 = vpop.f32.mrf.mxu3 }
 0x9a0   :  { %v4315_v33 = vadd.f32 %v6313_v42, %v4314_v37 }
 0x9a7   :  { %v4316_v25 = vpop.f32.mrf.mxu3 }
 0x9af   :  { %v4327_v54 = vpop.f32.mrf.mxu0 }
 0x9b0   :  { %v4328_v1 = vadd.f32 %v4327_v54, %v4315_v33 }
 0x9b2   :  { %6314 = vtanh.f32 %v4328_v1 }
 0x9b7   :  { %v4329_v34 = vpop.f32.mrf.mxu0 }
 0x9b8   :  { %v6315_v40 = vpop.eup %6314 }
 0x9b9   :  { %4333 = vst.msk [vmem:[#allocation3] sm:$0x3] %vm4332_vm12, %v6315_v40 }
 0x9ba   :  { %4344 = dma.vmem_to_hbm [thread:$0]  %s4340_s8, 32, %s4342_s9, [#allocation4]  }
 0x9bb   :  { %6340 = dma.done.wait [#allocation4], 32  }
 0x9bc   :  { %6341 = vsyncadd [#allocation4], 4294967264 }
 0x9bd   :  { %4349 = vsyncpa [#allocation4], 1 }

</bundles_post_ra>
